<compile_context>
chip_gen: v7x
topology: tpu7x:2x2x1
jax: 0.10.0
libtpu: 0.0.40
codegen_flags: <defaults>
</compile_context>

<pallas_src>
import functools

import jax
import jax.numpy as jnp
import numpy as np
from jax.experimental import pallas as pl
from jax.experimental.pallas import tpu as pltpu

C_PAD = 128      # every channel dim is zero-padded to one full lane tile
_HALO = 32       # scratch halo rows (>= W+1 of the first stage), multiple of 8


# ----------------------------- fused Pallas kernel ------------------------------

def _conv3x3_relu_maxpool(a, h, w, w_ref, b_ref, buf_ref):
    """One stage: 3x3 same-conv (+bias+ReLU) fused with a 2x2/2 max-pool.

    a:       (h*w, C_PAD) f32 activation, rows laid out row-major over (y, x).
    w_ref:   (9, C_PAD, C_PAD) bf16 conv weights, tap order k = (dy+1)*3 + (dx+1).
    b_ref:   (1, C_PAD) f32 bias.
    buf_ref: VMEM scratch with >= _HALO rows of slack on each side.
    Returns the pooled activation of shape ((h//2)*(w//2), C_PAD) f32.
    """
    m = h * w
    c = a.shape[1]
    log2w = int(w).bit_length() - 1        # w is a power of two
    p = _HALO

    # Park the stage input in the halo buffer so each of the 9 conv taps is a
    # plain (possibly sublane-unaligned) VMEM read at a static row offset.
    buf_ref[pl.ds(p, m), :] = a

    rows = jax.lax.broadcasted_iota(jnp.int32, (m, c), 0)
    xpos = jnp.bitwise_and(rows, w - 1)    # column index of each flattened row

    acc = jnp.zeros((m, c), jnp.float32)
    k = 0
    for dy in (-1, 0, 1):
        for dx in (-1, 0, 1):
            slab = buf_ref[pl.ds(p + dy * w + dx, m), :]
            # Zero rows whose (y+dy, x+dx) falls outside the image (this also
            # removes the row-wrap artifacts of the flattened layout).
            conds = []
            if dy == -1:
                conds.append(rows >= w)
            elif dy == 1:
                conds.append(rows < m - w)
            if dx == -1:
                conds.append(xpos >= 1)
            elif dx == 1:
                conds.append(xpos < w - 1)
            if conds:
                valid = conds[0]
                for extra in conds[1:]:
                    valid = jnp.logical_and(valid, extra)
                slab = jnp.where(valid, slab, 0.0)
            acc = acc + jnp.dot(slab.astype(jnp.bfloat16), w_ref[k],
                                preferred_element_type=jnp.float32)
            k += 1

    y = jnp.maximum(acc + b_ref[...], 0.0)          # bias + ReLU in f32

    # Fused 2x2/2 max pool: pairwise max against row-shifted copies, then
    # compact the (even y, even x) anchor rows with a 0/1 selection matmul.
    buf_ref[pl.ds(p, m), :] = y
    m1 = jnp.maximum(y, buf_ref[pl.ds(p + 1, m), :])      # horizontal pair max
    buf_ref[pl.ds(p, m), :] = m1
    m2 = jnp.maximum(m1, buf_ref[pl.ds(p + w, m), :])     # vertical pair max

    hh, wh = h // 2, w // 2
    mo = hh * wh
    oi = jax.lax.broadcasted_iota(jnp.int32, (mo, m), 0)
    oj = jax.lax.broadcasted_iota(jnp.int32, (mo, m), 1)
    yh = jnp.right_shift(oi, log2w - 1)                   # oi // wh
    xh = jnp.bitwise_and(oi, wh - 1)                      # oi %  wh
    anchor = jnp.left_shift(yh, log2w + 1) + jnp.left_shift(xh, 1)  # 2*w*yh + 2*xh
    sel = (oj == anchor).astype(jnp.float32)
    return jnp.dot(sel, m2, preferred_element_type=jnp.float32)


def _fused_forward_kernel(x_ref, w1_ref, b1_ref, w2_ref, b2_ref, w3_ref, b3_ref,
                          fcw_ref, fcb_ref, o_ref, buf_ref, *, h, w):
    # Hygiene: make the halo regions deterministic (masking already guarantees
    # correctness, this just avoids reading never-written scratch memory).
    buf_ref[...] = jnp.zeros(buf_ref.shape, buf_ref.dtype)

    a = x_ref[0]                                                   # (h*w, 128) f32
    a = _conv3x3_relu_maxpool(a, h, w, w1_ref, b1_ref, buf_ref)    # (h*w/4,  128)
    a = _conv3x3_relu_maxpool(a, h // 2, w // 2, w2_ref, b2_ref, buf_ref)
    a = _conv3x3_relu_maxpool(a, h // 4, w // 4, w3_ref, b3_ref, buf_ref)

    # GAP (1/HW is folded into fcw) + fc1; sublane-axis sum, bf16 MXU, f32 accum.
    g = jnp.sum(a, axis=0, keepdims=True)                          # (1, 128)
    out = jnp.dot(g.astype(jnp.bfloat16), fcw_ref[...],
                  preferred_element_type=jnp.float32) + fcb_ref[...]
    o_ref[0] = out


# ------------------------------ host-side wrapper --------------------------------

def _prep_conv_weights(w_hwio, b, c):
    """(3,3,Cin,Cout) HWIO weights -> (9, c, c) bf16 with channels zero-padded."""
    kh, kw, cin, cout = w_hwio.shape
    w = jnp.zeros((kh * kw, c, c), jnp.float32)
    w = w.at[:, :cin, :cout].set(w_hwio.astype(jnp.float32).reshape(kh * kw, cin, cout))
    bp = jnp.zeros((1, c), jnp.float32).at[:, :cout].set(b.reshape(1, cout))
    return w.astype(jnp.bfloat16), bp


@jax.jit
def face_recognition_forward(params, x_nchw):
    B, cin, H, W = x_nchw.shape
    assert H == W and H % 8 == 0 and (H & (H - 1)) == 0, "spatial must be pow2 and %8==0"
    E = params["fc1_b"].shape[0]

    # Boundary glue: NCHW -> NHWC, zero-pad channels to 128 lanes, flatten spatial.
    x = jnp.transpose(x_nchw, (0, 2, 3, 1)).astype(jnp.float32)
    x = jnp.pad(x, ((0, 0), (0, 0), (0, 0), (0, C_PAD - cin)))
    x = x.reshape(B, H * W, C_PAD)

    w1, b1 = _prep_conv_weights(params["conv1_w"], params["conv1_b"], C_PAD)
    w2, b2 = _prep_conv_weights(params["conv2_w"], params["conv2_b"], C_PAD)
    w3, b3 = _prep_conv_weights(params["conv3_w"], params["conv3_b"], C_PAD)
    hw_final = (H // 8) * (W // 8)                 # spatial positions left after 3 pools
    fcw = (params["fc1_w"].astype(jnp.float32) / hw_final).astype(jnp.bfloat16)
    fcb = params["fc1_b"].reshape(1, E).astype(jnp.float32)

    kernel = functools.partial(_fused_forward_kernel, h=H, w=W)
    out = pl.pallas_call(
        kernel,
        out_shape=jax.ShapeDtypeStruct((B, 1, E), jnp.float32),
        grid=(B,),
        in_specs=[
            pl.BlockSpec((1, H * W, C_PAD), lambda b: (b, 0, 0)),   # per-image activation
            pl.BlockSpec((9, C_PAD, C_PAD), lambda b: (0, 0, 0)),   # conv1 weights
            pl.BlockSpec((1, C_PAD), lambda b: (0, 0)),             # conv1 bias
            pl.BlockSpec((9, C_PAD, C_PAD), lambda b: (0, 0, 0)),   # conv2 weights
            pl.BlockSpec((1, C_PAD), lambda b: (0, 0)),             # conv2 bias
            pl.BlockSpec((9, C_PAD, C_PAD), lambda b: (0, 0, 0)),   # conv3 weights
            pl.BlockSpec((1, C_PAD), lambda b: (0, 0)),             # conv3 bias
            pl.BlockSpec((C_PAD, E), lambda b: (0, 0)),             # fc1 weights (1/HW folded)
            pl.BlockSpec((1, E), lambda b: (0, 0)),                 # fc1 bias
        ],
        out_specs=pl.BlockSpec((1, 1, E), lambda b: (b, 0, 0)),
        scratch_shapes=[pltpu.VMEM((_HALO + H * W + _HALO, C_PAD), jnp.float32)],
        compiler_params=pltpu.CompilerParams(dimension_semantics=("parallel",)),
    )(x, w1, b1, w2, b2, w3, b3, fcw, fcb)
    return out.reshape(B, E)


# --------------------------- deterministic parameters -----------------------------

def init_params(key, embedding_size=128):
    ks = jax.random.split(key, 8)

    def conv_w(k, cin, cout):
        fan_in = cin * 9
        return jax.random.normal(k, (3, 3, cin, cout), jnp.float32) * (2.0 / fan_in) ** 0.5

    return {
        "conv1_w": conv_w(ks[0], 3, 32),
        "conv1_b": jax.random.normal(ks[1], (32,), jnp.float32) * 0.01,
        "conv2_w": conv_w(ks[2], 32, 64),
        "conv2_b": jax.random.normal(ks[3], (64,), jnp.float32) * 0.01,
        "conv3_w": conv_w(ks[4], 64, 128),
        "conv3_b": jax.random.normal(ks[5], (128,), jnp.float32) * 0.01,
        "fc1_w": jax.random.normal(ks[6], (128, embedding_size), jnp.float32) * (1.0 / 128) ** 0.5,
        "fc1_b": jax.random.normal(ks[7], (embedding_size,), jnp.float32) * 0.01,
    }


# ------------------------------- pure-JAX reference --------------------------------

def reference_forward(params, x_nchw):
    x = jnp.transpose(x_nchw, (0, 2, 3, 1)).astype(jnp.float32)

    def conv(x, w, b):
        y = jax.lax.conv_general_dilated(
            x, w, window_strides=(1, 1), padding="SAME",
            dimension_numbers=("NHWC", "HWIO", "NHWC"))
        return jax.nn.relu(y + b)

    def pool(x):
        return jax.lax.reduce_window(
            x, -jnp.inf, jax.lax.max, (1, 2, 2, 1), (1, 2, 2, 1), "VALID")

    x = pool(conv(x, params["conv1_w"], params["conv1_b"]))
    x = pool(conv(x, params["conv2_w"], params["conv2_b"]))
    x = pool(conv(x, params["conv3_w"], params["conv3_b"]))
    g = jnp.mean(x, axis=(1, 2))
    return g @ params["fc1_w"] + params["fc1_b"]


if __name__ == "__main__":
    key = jax.random.PRNGKey(0)
    pkey, xkey = jax.random.split(key)
    params = init_params(pkey, embedding_size=128)

    # PyTorch-style NCHW input: batch=2, channels=3 (RGB), spatial=16x16
    x = jax.random.normal(xkey, (2, 3, 16, 16), jnp.float32)

    out = face_recognition_forward(params, x)
    out = jax.block_until_ready(out)
    assert out.shape == (2, 128)

    ref = reference_forward(params, x)
    # Kernel feeds the MXU bf16 operands with f32 accumulation (reference is pure f32),
    # hence the slightly loosened tolerance.
    np.testing.assert_allclose(np.asarray(out), np.asarray(ref), rtol=5e-2, atol=5e-2)

    print("KERNEL_OK")
</pallas_src>

<mosaic_0001>
module attributes {stable_mosaic.version = 11 : i64} {
  func.func @_fused_forward_kernel(%arg0: i32, %arg1: memref<1x256x128xf32, #tpu.memory_space<vmem>>, %arg2: memref<9x128x128xbf16, #tpu.memory_space<vmem>>, %arg3: memref<1x128xf32, #tpu.memory_space<vmem>>, %arg4: memref<9x128x128xbf16, #tpu.memory_space<vmem>>, %arg5: memref<1x128xf32, #tpu.memory_space<vmem>>, %arg6: memref<9x128x128xbf16, #tpu.memory_space<vmem>>, %arg7: memref<1x128xf32, #tpu.memory_space<vmem>>, %arg8: memref<128x128xbf16, #tpu.memory_space<vmem>>, %arg9: memref<1x128xf32, #tpu.memory_space<vmem>>, %arg10: memref<1x1x128xf32, #tpu.memory_space<vmem>>, %arg11: memref<320x128xf32, #tpu.memory_space<vmem>>) attributes {dimension_semantics = [#tpu.dimension_semantics<parallel>], iteration_bounds = array<i64: 2>, scalar_prefetch = 0 : i64, scratch_operands = 1 : i64, tpu.core_type = #tpu.core_type<tc>, window_params = [{transform_indices = @transform_0, window_bounds = array<i64: 1, 256, 128>}, {pipeline_mode = #tpu.pipeline_mode<synchronous>, transform_indices = @transform_1, window_bounds = array<i64: 9, 128, 128>}, {pipeline_mode = #tpu.pipeline_mode<synchronous>, transform_indices = @transform_2, window_bounds = array<i64: 1, 128>}, {pipeline_mode = #tpu.pipeline_mode<synchronous>, transform_indices = @transform_3, window_bounds = array<i64: 9, 128, 128>}, {pipeline_mode = #tpu.pipeline_mode<synchronous>, transform_indices = @transform_4, window_bounds = array<i64: 1, 128>}, {pipeline_mode = #tpu.pipeline_mode<synchronous>, transform_indices = @transform_5, window_bounds = array<i64: 9, 128, 128>}, {pipeline_mode = #tpu.pipeline_mode<synchronous>, transform_indices = @transform_6, window_bounds = array<i64: 1, 128>}, {pipeline_mode = #tpu.pipeline_mode<synchronous>, transform_indices = @transform_7, window_bounds = array<i64: 128, 128>}, {pipeline_mode = #tpu.pipeline_mode<synchronous>, transform_indices = @transform_8, window_bounds = array<i64: 1, 128>}, {transform_indices = @transform_9, window_bounds = array<i64: 1, 1, 128>}]} {
    %cst = arith.constant 0.000000e+00 : f32
    %0 = vector.broadcast %cst : f32 to vector<320x128xf32>
    %c0 = arith.constant 0 : index
    %c0_0 = arith.constant 0 : index
    %1 = vector.load %arg11[%c0, %c0_0] : memref<320x128xf32, #tpu.memory_space<vmem>>, vector<320x128xf32>
    tpu.vector_store %arg11[%c0, %c0_0], %0 {strides = array<i32>} : memref<320x128xf32, #tpu.memory_space<vmem>>, vector<320x128xf32>,
    %c0_1 = arith.constant 0 : index
    %c0_2 = arith.constant 0 : index
    %c0_3 = arith.constant 0 : index
    %2 = vector.load %arg1[%c0_1, %c0_2, %c0_3] : memref<1x256x128xf32, #tpu.memory_space<vmem>>, vector<1x256x128xf32>
    %3 = vector.shape_cast %2 : vector<1x256x128xf32> to vector<256x128xf32>
    %c32 = arith.constant 32 : index
    %c0_4 = arith.constant 0 : index
    %4 = vector.load %arg11[%c32, %c0_4] : memref<320x128xf32, #tpu.memory_space<vmem>>, vector<256x128xf32>
    tpu.vector_store %arg11[%c32, %c0_4], %3 {strides = array<i32>} : memref<320x128xf32, #tpu.memory_space<vmem>>, vector<256x128xf32>,
    %5 = tpu.iota {dimensions = array<i32: 0>} : vector<256x128xi32>
    %c15_i32 = arith.constant 15 : i32
    %6 = vector.broadcast %c15_i32 : i32 to vector<256x128xi32>
    %7 = arith.andi %5, %6 : vector<256x128xi32>
    %cst_5 = arith.constant 0.000000e+00 : f32
    %8 = vector.broadcast %cst_5 : f32 to vector<256x128xf32>
    %c15 = arith.constant 15 : index
    %c0_6 = arith.constant 0 : index
    %9 = vector.load %arg11[%c15, %c0_6] : memref<320x128xf32, #tpu.memory_space<vmem>>, vector<256x128xf32>
    %c16_i32 = arith.constant 16 : i32
    %10 = vector.broadcast %c16_i32 : i32 to vector<256x128xi32>
    %11 = arith.cmpi sge, %5, %10 : vector<256x128xi32>
    %c1_i32 = arith.constant 1 : i32
    %12 = vector.broadcast %c1_i32 : i32 to vector<256x128xi32>
    %13 = arith.cmpi sge, %7, %12 : vector<256x128xi32>
    %14 = arith.andi %11, %13 : vector<256x128xi1>
    %cst_7 = arith.constant 0.000000e+00 : f32
    %15 = vector.broadcast %cst_7 : f32 to vector<256x128xf32>
    %16 = arith.select %14, %9, %15 : vector<256x128xi1>, vector<256x128xf32>
    %17 = arith.truncf %16 : vector<256x128xf32> to vector<256x128xbf16>
    %c0_8 = arith.constant 0 : index
    %c0_9 = arith.constant 0 : index
    %c0_10 = arith.constant 0 : index
    %18 = vector.load %arg2[%c0_8, %c0_9, %c0_10] : memref<9x128x128xbf16, #tpu.memory_space<vmem>>, vector<1x128x128xbf16>
    %19 = vector.shape_cast %18 : vector<1x128x128xbf16> to vector<128x128xbf16>
    %cst_11 = arith.constant dense<0.000000e+00> : vector<256x128xf32>
    %20 = tpu.matmul %17, %19, %cst_11 {dimension_numbers = #tpu.dot_dimension_numbers<[1], [0], [0], [1], [0, 0, 1, 1], [], []>} : vector<256x128xbf16>, vector<128x128xbf16>, vector<256x128xf32> -> vector<256x128xf32>
    %21 = arith.addf %8, %20 : vector<256x128xf32>
    %c16 = arith.constant 16 : index
    %c0_12 = arith.constant 0 : index
    %22 = vector.load %arg11[%c16, %c0_12] : memref<320x128xf32, #tpu.memory_space<vmem>>, vector<256x128xf32>
    %c16_i32_13 = arith.constant 16 : i32
    %23 = vector.broadcast %c16_i32_13 : i32 to vector<256x128xi32>
    %24 = arith.cmpi sge, %5, %23 : vector<256x128xi32>
    %cst_14 = arith.constant 0.000000e+00 : f32
    %25 = vector.broadcast %cst_14 : f32 to vector<256x128xf32>
    %26 = arith.select %24, %22, %25 : vector<256x128xi1>, vector<256x128xf32>
    %27 = arith.truncf %26 : vector<256x128xf32> to vector<256x128xbf16>
    %c1 = arith.constant 1 : index
    %c0_15 = arith.constant 0 : index
    %c0_16 = arith.constant 0 : index
    %28 = vector.load %arg2[%c1, %c0_15, %c0_16] : memref<9x128x128xbf16, #tpu.memory_space<vmem>>, vector<1x128x128xbf16>
    %29 = vector.shape_cast %28 : vector<1x128x128xbf16> to vector<128x128xbf16>
    %cst_17 = arith.constant dense<0.000000e+00> : vector<256x128xf32>
    %30 = tpu.matmul %27, %29, %cst_17 {dimension_numbers = #tpu.dot_dimension_numbers<[1], [0], [0], [1], [0, 0, 1, 1], [], []>} : vector<256x128xbf16>, vector<128x128xbf16>, vector<256x128xf32> -> vector<256x128xf32>
    %31 = arith.addf %21, %30 : vector<256x128xf32>
    %c17 = arith.constant 17 : index
    %c0_18 = arith.constant 0 : index
    %32 = vector.load %arg11[%c17, %c0_18] : memref<320x128xf32, #tpu.memory_space<vmem>>, vector<256x128xf32>
    %c16_i32_19 = arith.constant 16 : i32
    %33 = vector.broadcast %c16_i32_19 : i32 to vector<256x128xi32>
    %34 = arith.cmpi sge, %5, %33 : vector<256x128xi32>
    %c15_i32_20 = arith.constant 15 : i32
    %35 = vector.broadcast %c15_i32_20 : i32 to vector<256x128xi32>
    %36 = arith.cmpi slt, %7, %35 : vector<256x128xi32>
    %37 = arith.andi %34, %36 : vector<256x128xi1>
    %cst_21 = arith.constant 0.000000e+00 : f32
    %38 = vector.broadcast %cst_21 : f32 to vector<256x128xf32>
    %39 = arith.select %37, %32, %38 : vector<256x128xi1>, vector<256x128xf32>
    %40 = arith.truncf %39 : vector<256x128xf32> to vector<256x128xbf16>
    %c2 = arith.constant 2 : index
    %c0_22 = arith.constant 0 : index
    %c0_23 = arith.constant 0 : index
    %41 = vector.load %arg2[%c2, %c0_22, %c0_23] : memref<9x128x128xbf16, #tpu.memory_space<vmem>>, vector<1x128x128xbf16>
    %42 = vector.shape_cast %41 : vector<1x128x128xbf16> to vector<128x128xbf16>
    %cst_24 = arith.constant dense<0.000000e+00> : vector<256x128xf32>
    %43 = tpu.matmul %40, %42, %cst_24 {dimension_numbers = #tpu.dot_dimension_numbers<[1], [0], [0], [1], [0, 0, 1, 1], [], []>} : vector<256x128xbf16>, vector<128x128xbf16>, vector<256x128xf32> -> vector<256x128xf32>
    %44 = arith.addf %31, %43 : vector<256x128xf32>
    %c31 = arith.constant 31 : index
    %c0_25 = arith.constant 0 : index
    %45 = vector.load %arg11[%c31, %c0_25] : memref<320x128xf32, #tpu.memory_space<vmem>>, vector<256x128xf32>
    %c1_i32_26 = arith.constant 1 : i32
    %46 = vector.broadcast %c1_i32_26 : i32 to vector<256x128xi32>
    %47 = arith.cmpi sge, %7, %46 : vector<256x128xi32>
    %cst_27 = arith.constant 0.000000e+00 : f32
    %48 = vector.broadcast %cst_27 : f32 to vector<256x128xf32>
    %49 = arith.select %47, %45, %48 : vector<256x128xi1>, vector<256x128xf32>
    %50 = arith.truncf %49 : vector<256x128xf32> to vector<256x128xbf16>
    %c3 = arith.constant 3 : index
    %c0_28 = arith.constant 0 : index
    %c0_29 = arith.constant 0 : index
    %51 = vector.load %arg2[%c3, %c0_28, %c0_29] : memref<9x128x128xbf16, #tpu.memory_space<vmem>>, vector<1x128x128xbf16>
    %52 = vector.shape_cast %51 : vector<1x128x128xbf16> to vector<128x128xbf16>
    %cst_30 = arith.constant dense<0.000000e+00> : vector<256x128xf32>
    %53 = tpu.matmul %50, %52, %cst_30 {dimension_numbers = #tpu.dot_dimension_numbers<[1], [0], [0], [1], [0, 0, 1, 1], [], []>} : vector<256x128xbf16>, vector<128x128xbf16>, vector<256x128xf32> -> vector<256x128xf32>
    %54 = arith.addf %44, %53 : vector<256x128xf32>
    %c32_31 = arith.constant 32 : index
    %c0_32 = arith.constant 0 : index
    %55 = vector.load %arg11[%c32_31, %c0_32] : memref<320x128xf32, #tpu.memory_space<vmem>>, vector<256x128xf32>
    %56 = arith.truncf %55 : vector<256x128xf32> to vector<256x128xbf16>
    %c4 = arith.constant 4 : index
    %c0_33 = arith.constant 0 : index
    %c0_34 = arith.constant 0 : index
    %57 = vector.load %arg2[%c4, %c0_33, %c0_34] : memref<9x128x128xbf16, #tpu.memory_space<vmem>>, vector<1x128x128xbf16>
    %58 = vector.shape_cast %57 : vector<1x128x128xbf16> to vector<128x128xbf16>
    %cst_35 = arith.constant dense<0.000000e+00> : vector<256x128xf32>
    %59 = tpu.matmul %56, %58, %cst_35 {dimension_numbers = #tpu.dot_dimension_numbers<[1], [0], [0], [1], [0, 0, 1, 1], [], []>} : vector<256x128xbf16>, vector<128x128xbf16>, vector<256x128xf32> -> vector<256x128xf32>
    %60 = arith.addf %54, %59 : vector<256x128xf32>
    %c33 = arith.constant 33 : index
    %c0_36 = arith.constant 0 : index
    %61 = vector.load %arg11[%c33, %c0_36] : memref<320x128xf32, #tpu.memory_space<vmem>>, vector<256x128xf32>
    %c15_i32_37 = arith.constant 15 : i32
    %62 = vector.broadcast %c15_i32_37 : i32 to vector<256x128xi32>
    %63 = arith.cmpi slt, %7, %62 : vector<256x128xi32>
    %cst_38 = arith.constant 0.000000e+00 : f32
    %64 = vector.broadcast %cst_38 : f32 to vector<256x128xf32>
    %65 = arith.select %63, %61, %64 : vector<256x128xi1>, vector<256x128xf32>
    %66 = arith.truncf %65 : vector<256x128xf32> to vector<256x128xbf16>
    %c5 = arith.constant 5 : index
    %c0_39 = arith.constant 0 : index
    %c0_40 = arith.constant 0 : index
    %67 = vector.load %arg2[%c5, %c0_39, %c0_40] : memref<9x128x128xbf16, #tpu.memory_space<vmem>>, vector<1x128x128xbf16>
    %68 = vector.shape_cast %67 : vector<1x128x128xbf16> to vector<128x128xbf16>
    %cst_41 = arith.constant dense<0.000000e+00> : vector<256x128xf32>
    %69 = tpu.matmul %66, %68, %cst_41 {dimension_numbers = #tpu.dot_dimension_numbers<[1], [0], [0], [1], [0, 0, 1, 1], [], []>} : vector<256x128xbf16>, vector<128x128xbf16>, vector<256x128xf32> -> vector<256x128xf32>
    %70 = arith.addf %60, %69 : vector<256x128xf32>
    %c47 = arith.constant 47 : index
    %c0_42 = arith.constant 0 : index
    %71 = vector.load %arg11[%c47, %c0_42] : memref<320x128xf32, #tpu.memory_space<vmem>>, vector<256x128xf32>
    %c240_i32 = arith.constant 240 : i32
    %72 = vector.broadcast %c240_i32 : i32 to vector<256x128xi32>
    %73 = arith.cmpi slt, %5, %72 : vector<256x128xi32>
    %c1_i32_43 = arith.constant 1 : i32
    %74 = vector.broadcast %c1_i32_43 : i32 to vector<256x128xi32>
    %75 = arith.cmpi sge, %7, %74 : vector<256x128xi32>
    %76 = arith.andi %73, %75 : vector<256x128xi1>
    %cst_44 = arith.constant 0.000000e+00 : f32
    %77 = vector.broadcast %cst_44 : f32 to vector<256x128xf32>
    %78 = arith.select %76, %71, %77 : vector<256x128xi1>, vector<256x128xf32>
    %79 = arith.truncf %78 : vector<256x128xf32> to vector<256x128xbf16>
    %c6 = arith.constant 6 : index
    %c0_45 = arith.constant 0 : index
    %c0_46 = arith.constant 0 : index
    %80 = vector.load %arg2[%c6, %c0_45, %c0_46] : memref<9x128x128xbf16, #tpu.memory_space<vmem>>, vector<1x128x128xbf16>
    %81 = vector.shape_cast %80 : vector<1x128x128xbf16> to vector<128x128xbf16>
    %cst_47 = arith.constant dense<0.000000e+00> : vector<256x128xf32>
    %82 = tpu.matmul %79, %81, %cst_47 {dimension_numbers = #tpu.dot_dimension_numbers<[1], [0], [0], [1], [0, 0, 1, 1], [], []>} : vector<256x128xbf16>, vector<128x128xbf16>, vector<256x128xf32> -> vector<256x128xf32>
    %83 = arith.addf %70, %82 : vector<256x128xf32>
    %c48 = arith.constant 48 : index
    %c0_48 = arith.constant 0 : index
    %84 = vector.load %arg11[%c48, %c0_48] : memref<320x128xf32, #tpu.memory_space<vmem>>, vector<256x128xf32>
    %c240_i32_49 = arith.constant 240 : i32
    %85 = vector.broadcast %c240_i32_49 : i32 to vector<256x128xi32>
    %86 = arith.cmpi slt, %5, %85 : vector<256x128xi32>
    %cst_50 = arith.constant 0.000000e+00 : f32
    %87 = vector.broadcast %cst_50 : f32 to vector<256x128xf32>
    %88 = arith.select %86, %84, %87 : vector<256x128xi1>, vector<256x128xf32>
    %89 = arith.truncf %88 : vector<256x128xf32> to vector<256x128xbf16>
    %c7 = arith.constant 7 : index
    %c0_51 = arith.constant 0 : index
    %c0_52 = arith.constant 0 : index
    %90 = vector.load %arg2[%c7, %c0_51, %c0_52] : memref<9x128x128xbf16, #tpu.memory_space<vmem>>, vector<1x128x128xbf16>
    %91 = vector.shape_cast %90 : vector<1x128x128xbf16> to vector<128x128xbf16>
    %cst_53 = arith.constant dense<0.000000e+00> : vector<256x128xf32>
    %92 = tpu.matmul %89, %91, %cst_53 {dimension_numbers = #tpu.dot_dimension_numbers<[1], [0], [0], [1], [0, 0, 1, 1], [], []>} : vector<256x128xbf16>, vector<128x128xbf16>, vector<256x128xf32> -> vector<256x128xf32>
    %93 = arith.addf %83, %92 : vector<256x128xf32>
    %c49 = arith.constant 49 : index
    %c0_54 = arith.constant 0 : index
    %94 = vector.load %arg11[%c49, %c0_54] : memref<320x128xf32, #tpu.memory_space<vmem>>, vector<256x128xf32>
    %c240_i32_55 = arith.constant 240 : i32
    %95 = vector.broadcast %c240_i32_55 : i32 to vector<256x128xi32>
    %96 = arith.cmpi slt, %5, %95 : vector<256x128xi32>
    %c15_i32_56 = arith.constant 15 : i32
    %97 = vector.broadcast %c15_i32_56 : i32 to vector<256x128xi32>
    %98 = arith.cmpi slt, %7, %97 : vector<256x128xi32>
    %99 = arith.andi %96, %98 : vector<256x128xi1>
    %cst_57 = arith.constant 0.000000e+00 : f32
    %100 = vector.broadcast %cst_57 : f32 to vector<256x128xf32>
    %101 = arith.select %99, %94, %100 : vector<256x128xi1>, vector<256x128xf32>
    %102 = arith.truncf %101 : vector<256x128xf32> to vector<256x128xbf16>
    %c8 = arith.constant 8 : index
    %c0_58 = arith.constant 0 : index
    %c0_59 = arith.constant 0 : index
    %103 = vector.load %arg2[%c8, %c0_58, %c0_59] : memref<9x128x128xbf16, #tpu.memory_space<vmem>>, vector<1x128x128xbf16>
    %104 = vector.shape_cast %103 : vector<1x128x128xbf16> to vector<128x128xbf16>
    %cst_60 = arith.constant dense<0.000000e+00> : vector<256x128xf32>
    %105 = tpu.matmul %102, %104, %cst_60 {dimension_numbers = #tpu.dot_dimension_numbers<[1], [0], [0], [1], [0, 0, 1, 1], [], []>} : vector<256x128xbf16>, vector<128x128xbf16>, vector<256x128xf32> -> vector<256x128xf32>
    %106 = arith.addf %93, %105 : vector<256x128xf32>
    %c0_61 = arith.constant 0 : index
    %c0_62 = arith.constant 0 : index
    %107 = vector.load %arg3[%c0_61, %c0_62] : memref<1x128xf32, #tpu.memory_space<vmem>>, vector<1x128xf32>
    %108 = vector.broadcast %107 : vector<1x128xf32> to vector<256x128xf32>
    %109 = arith.addf %106, %108 : vector<256x128xf32>
    %cst_63 = arith.constant 0.000000e+00 : f32
    %110 = vector.broadcast %cst_63 : f32 to vector<256x128xf32>
    %111 = arith.maximumf %109, %110 : vector<256x128xf32>
    %c32_64 = arith.constant 32 : index
    %c0_65 = arith.constant 0 : index
    %112 = vector.load %arg11[%c32_64, %c0_65] : memref<320x128xf32, #tpu.memory_space<vmem>>, vector<256x128xf32>
    tpu.vector_store %arg11[%c32_64, %c0_65], %111 {strides = array<i32>} : memref<320x128xf32, #tpu.memory_space<vmem>>, vector<256x128xf32>,
    %c33_66 = arith.constant 33 : index
    %c0_67 = arith.constant 0 : index
    %113 = vector.load %arg11[%c33_66, %c0_67] : memref<320x128xf32, #tpu.memory_space<vmem>>, vector<256x128xf32>
    %114 = arith.maximumf %111, %113 : vector<256x128xf32>
    %c32_68 = arith.constant 32 : index
    %c0_69 = arith.constant 0 : index
    %115 = vector.load %arg11[%c32_68, %c0_69] : memref<320x128xf32, #tpu.memory_space<vmem>>, vector<256x128xf32>
    tpu.vector_store %arg11[%c32_68, %c0_69], %114 {strides = array<i32>} : memref<320x128xf32, #tpu.memory_space<vmem>>, vector<256x128xf32>,
    %c48_70 = arith.constant 48 : index
    %c0_71 = arith.constant 0 : index
    %116 = vector.load %arg11[%c48_70, %c0_71] : memref<320x128xf32, #tpu.memory_space<vmem>>, vector<256x128xf32>
    %117 = arith.maximumf %114, %116 : vector<256x128xf32>
    %118 = tpu.iota {dimensions = array<i32: 0>} : vector<64x256xi32>
    %119 = tpu.iota {dimensions = array<i32: 1>} : vector<64x256xi32>
    %c3_i32 = arith.constant 3 : i32
    %120 = vector.broadcast %c3_i32 : i32 to vector<64x256xi32>
    %121 = arith.shrsi %118, %120 : vector<64x256xi32>
    %c7_i32 = arith.constant 7 : i32
    %122 = vector.broadcast %c7_i32 : i32 to vector<64x256xi32>
    %123 = arith.andi %118, %122 : vector<64x256xi32>
    %c5_i32 = arith.constant 5 : i32
    %124 = vector.broadcast %c5_i32 : i32 to vector<64x256xi32>
    %125 = arith.shli %121, %124 : vector<64x256xi32>
    %c1_i32_72 = arith.constant 1 : i32
    %126 = vector.broadcast %c1_i32_72 : i32 to vector<64x256xi32>
    %127 = arith.shli %123, %126 : vector<64x256xi32>
    %128 = arith.addi %125, %127 : vector<64x256xi32>
    %129 = arith.cmpi eq, %119, %128 : vector<64x256xi32>
    %130 = arith.extui %129 : vector<64x256xi1> to vector<64x256xi32>
    %131 = arith.sitofp %130 : vector<64x256xi32> to vector<64x256xf32>
    %cst_73 = arith.constant dense<0.000000e+00> : vector<64x128xf32>
    %132 = tpu.matmul %131, %117, %cst_73 {dimension_numbers = #tpu.dot_dimension_numbers<[1], [0], [0], [1], [0, 0, 1, 1], [], []>} : vector<64x256xf32>, vector<256x128xf32>, vector<64x128xf32> -> vector<64x128xf32>
    %c32_74 = arith.constant 32 : index
    %c0_75 = arith.constant 0 : index
    %133 = vector.load %arg11[%c32_74, %c0_75] : memref<320x128xf32, #tpu.memory_space<vmem>>, vector<64x128xf32>
    tpu.vector_store %arg11[%c32_74, %c0_75], %132 {strides = array<i32>} : memref<320x128xf32, #tpu.memory_space<vmem>>, vector<64x128xf32>,
    %134 = tpu.iota {dimensions = array<i32: 0>} : vector<64x128xi32>
    %c7_i32_76 = arith.constant 7 : i32
    %135 = vector.broadcast %c7_i32_76 : i32 to vector<64x128xi32>
    %136 = arith.andi %134, %135 : vector<64x128xi32>
    %cst_77 = arith.constant 0.000000e+00 : f32
    %137 = vector.broadcast %cst_77 : f32 to vector<64x128xf32>
    %c23 = arith.constant 23 : index
    %c0_78 = arith.constant 0 : index
    %138 = vector.load %arg11[%c23, %c0_78] : memref<320x128xf32, #tpu.memory_space<vmem>>, vector<64x128xf32>
    %c8_i32 = arith.constant 8 : i32
    %139 = vector.broadcast %c8_i32 : i32 to vector<64x128xi32>
    %140 = arith.cmpi sge, %134, %139 : vector<64x128xi32>
    %c1_i32_79 = arith.constant 1 : i32
    %141 = vector.broadcast %c1_i32_79 : i32 to vector<64x128xi32>
    %142 = arith.cmpi sge, %136, %141 : vector<64x128xi32>
    %143 = arith.andi %140, %142 : vector<64x128xi1>
    %cst_80 = arith.constant 0.000000e+00 : f32
    %144 = vector.broadcast %cst_80 : f32 to vector<64x128xf32>
    %145 = arith.select %143, %138, %144 : vector<64x128xi1>, vector<64x128xf32>
    %146 = arith.truncf %145 : vector<64x128xf32> to vector<64x128xbf16>
    %c0_81 = arith.constant 0 : index
    %c0_82 = arith.constant 0 : index
    %c0_83 = arith.constant 0 : index
    %147 = vector.load %arg4[%c0_81, %c0_82, %c0_83] : memref<9x128x128xbf16, #tpu.memory_space<vmem>>, vector<1x128x128xbf16>
    %148 = vector.shape_cast %147 : vector<1x128x128xbf16> to vector<128x128xbf16>
    %cst_84 = arith.constant dense<0.000000e+00> : vector<64x128xf32>
    %149 = tpu.matmul %146, %148, %cst_84 {dimension_numbers = #tpu.dot_dimension_numbers<[1], [0], [0], [1], [0, 0, 1, 1], [], []>} : vector<64x128xbf16>, vector<128x128xbf16>, vector<64x128xf32> -> vector<64x128xf32>
    %150 = arith.addf %137, %149 : vector<64x128xf32>
    %c24 = arith.constant 24 : index
    %c0_85 = arith.constant 0 : index
    %151 = vector.load %arg11[%c24, %c0_85] : memref<320x128xf32, #tpu.memory_space<vmem>>, vector<64x128xf32>
    %c8_i32_86 = arith.constant 8 : i32
    %152 = vector.broadcast %c8_i32_86 : i32 to vector<64x128xi32>
    %153 = arith.cmpi sge, %134, %152 : vector<64x128xi32>
    %cst_87 = arith.constant 0.000000e+00 : f32
    %154 = vector.broadcast %cst_87 : f32 to vector<64x128xf32>
    %155 = arith.select %153, %151, %154 : vector<64x128xi1>, vector<64x128xf32>
    %156 = arith.truncf %155 : vector<64x128xf32> to vector<64x128xbf16>
    %c1_88 = arith.constant 1 : index
    %c0_89 = arith.constant 0 : index
    %c0_90 = arith.constant 0 : index
    %157 = vector.load %arg4[%c1_88, %c0_89, %c0_90] : memref<9x128x128xbf16, #tpu.memory_space<vmem>>, vector<1x128x128xbf16>
    %158 = vector.shape_cast %157 : vector<1x128x128xbf16> to vector<128x128xbf16>
    %cst_91 = arith.constant dense<0.000000e+00> : vector<64x128xf32>
    %159 = tpu.matmul %156, %158, %cst_91 {dimension_numbers = #tpu.dot_dimension_numbers<[1], [0], [0], [1], [0, 0, 1, 1], [], []>} : vector<64x128xbf16>, vector<128x128xbf16>, vector<64x128xf32> -> vector<64x128xf32>
    %160 = arith.addf %150, %159 : vector<64x128xf32>
    %c25 = arith.constant 25 : index
    %c0_92 = arith.constant 0 : index
    %161 = vector.load %arg11[%c25, %c0_92] : memref<320x128xf32, #tpu.memory_space<vmem>>, vector<64x128xf32>
    %c8_i32_93 = arith.constant 8 : i32
    %162 = vector.broadcast %c8_i32_93 : i32 to vector<64x128xi32>
    %163 = arith.cmpi sge, %134, %162 : vector<64x128xi32>
    %c7_i32_94 = arith.constant 7 : i32
    %164 = vector.broadcast %c7_i32_94 : i32 to vector<64x128xi32>
    %165 = arith.cmpi slt, %136, %164 : vector<64x128xi32>
    %166 = arith.andi %163, %165 : vector<64x128xi1>
    %cst_95 = arith.constant 0.000000e+00 : f32
    %167 = vector.broadcast %cst_95 : f32 to vector<64x128xf32>
    %168 = arith.select %166, %161, %167 : vector<64x128xi1>, vector<64x128xf32>
    %169 = arith.truncf %168 : vector<64x128xf32> to vector<64x128xbf16>
    %c2_96 = arith.constant 2 : index
    %c0_97 = arith.constant 0 : index
    %c0_98 = arith.constant 0 : index
    %170 = vector.load %arg4[%c2_96, %c0_97, %c0_98] : memref<9x128x128xbf16, #tpu.memory_space<vmem>>, vector<1x128x128xbf16>
    %171 = vector.shape_cast %170 : vector<1x128x128xbf16> to vector<128x128xbf16>
    %cst_99 = arith.constant dense<0.000000e+00> : vector<64x128xf32>
    %172 = tpu.matmul %169, %171, %cst_99 {dimension_numbers = #tpu.dot_dimension_numbers<[1], [0], [0], [1], [0, 0, 1, 1], [], []>} : vector<64x128xbf16>, vector<128x128xbf16>, vector<64x128xf32> -> vector<64x128xf32>
    %173 = arith.addf %160, %172 : vector<64x128xf32>
    %c31_100 = arith.constant 31 : index
    %c0_101 = arith.constant 0 : index
    %174 = vector.load %arg11[%c31_100, %c0_101] : memref<320x128xf32, #tpu.memory_space<vmem>>, vector<64x128xf32>
    %c1_i32_102 = arith.constant 1 : i32
    %175 = vector.broadcast %c1_i32_102 : i32 to vector<64x128xi32>
    %176 = arith.cmpi sge, %136, %175 : vector<64x128xi32>
    %cst_103 = arith.constant 0.000000e+00 : f32
    %177 = vector.broadcast %cst_103 : f32 to vector<64x128xf32>
    %178 = arith.select %176, %174, %177 : vector<64x128xi1>, vector<64x128xf32>
    %179 = arith.truncf %178 : vector<64x128xf32> to vector<64x128xbf16>
    %c3_104 = arith.constant 3 : index
    %c0_105 = arith.constant 0 : index
    %c0_106 = arith.constant 0 : index
    %180 = vector.load %arg4[%c3_104, %c0_105, %c0_106] : memref<9x128x128xbf16, #tpu.memory_space<vmem>>, vector<1x128x128xbf16>
    %181 = vector.shape_cast %180 : vector<1x128x128xbf16> to vector<128x128xbf16>
    %cst_107 = arith.constant dense<0.000000e+00> : vector<64x128xf32>
    %182 = tpu.matmul %179, %181, %cst_107 {dimension_numbers = #tpu.dot_dimension_numbers<[1], [0], [0], [1], [0, 0, 1, 1], [], []>} : vector<64x128xbf16>, vector<128x128xbf16>, vector<64x128xf32> -> vector<64x128xf32>
    %183 = arith.addf %173, %182 : vector<64x128xf32>
    %c32_108 = arith.constant 32 : index
    %c0_109 = arith.constant 0 : index
    %184 = vector.load %arg11[%c32_108, %c0_109] : memref<320x128xf32, #tpu.memory_space<vmem>>, vector<64x128xf32>
    %185 = arith.truncf %184 : vector<64x128xf32> to vector<64x128xbf16>
    %c4_110 = arith.constant 4 : index
    %c0_111 = arith.constant 0 : index
    %c0_112 = arith.constant 0 : index
    %186 = vector.load %arg4[%c4_110, %c0_111, %c0_112] : memref<9x128x128xbf16, #tpu.memory_space<vmem>>, vector<1x128x128xbf16>
    %187 = vector.shape_cast %186 : vector<1x128x128xbf16> to vector<128x128xbf16>
    %cst_113 = arith.constant dense<0.000000e+00> : vector<64x128xf32>
    %188 = tpu.matmul %185, %187, %cst_113 {dimension_numbers = #tpu.dot_dimension_numbers<[1], [0], [0], [1], [0, 0, 1, 1], [], []>} : vector<64x128xbf16>, vector<128x128xbf16>, vector<64x128xf32> -> vector<64x128xf32>
    %189 = arith.addf %183, %188 : vector<64x128xf32>
    %c33_114 = arith.constant 33 : index
    %c0_115 = arith.constant 0 : index
    %190 = vector.load %arg11[%c33_114, %c0_115] : memref<320x128xf32, #tpu.memory_space<vmem>>, vector<64x128xf32>
    %c7_i32_116 = arith.constant 7 : i32
    %191 = vector.broadcast %c7_i32_116 : i32 to vector<64x128xi32>
    %192 = arith.cmpi slt, %136, %191 : vector<64x128xi32>
    %cst_117 = arith.constant 0.000000e+00 : f32
    %193 = vector.broadcast %cst_117 : f32 to vector<64x128xf32>
    %194 = arith.select %192, %190, %193 : vector<64x128xi1>, vector<64x128xf32>
    %195 = arith.truncf %194 : vector<64x128xf32> to vector<64x128xbf16>
    %c5_118 = arith.constant 5 : index
    %c0_119 = arith.constant 0 : index
    %c0_120 = arith.constant 0 : index
    %196 = vector.load %arg4[%c5_118, %c0_119, %c0_120] : memref<9x128x128xbf16, #tpu.memory_space<vmem>>, vector<1x128x128xbf16>
    %197 = vector.shape_cast %196 : vector<1x128x128xbf16> to vector<128x128xbf16>
    %cst_121 = arith.constant dense<0.000000e+00> : vector<64x128xf32>
    %198 = tpu.matmul %195, %197, %cst_121 {dimension_numbers = #tpu.dot_dimension_numbers<[1], [0], [0], [1], [0, 0, 1, 1], [], []>} : vector<64x128xbf16>, vector<128x128xbf16>, vector<64x128xf32> -> vector<64x128xf32>
    %199 = arith.addf %189, %198 : vector<64x128xf32>
    %c39 = arith.constant 39 : index
    %c0_122 = arith.constant 0 : index
    %200 = vector.load %arg11[%c39, %c0_122] : memref<320x128xf32, #tpu.memory_space<vmem>>, vector<64x128xf32>
    %c56_i32 = arith.constant 56 : i32
    %201 = vector.broadcast %c56_i32 : i32 to vector<64x128xi32>
    %202 = arith.cmpi slt, %134, %201 : vector<64x128xi32>
    %c1_i32_123 = arith.constant 1 : i32
    %203 = vector.broadcast %c1_i32_123 : i32 to vector<64x128xi32>
    %204 = arith.cmpi sge, %136, %203 : vector<64x128xi32>
    %205 = arith.andi %202, %204 : vector<64x128xi1>
    %cst_124 = arith.constant 0.000000e+00 : f32
    %206 = vector.broadcast %cst_124 : f32 to vector<64x128xf32>
    %207 = arith.select %205, %200, %206 : vector<64x128xi1>, vector<64x128xf32>
    %208 = arith.truncf %207 : vector<64x128xf32> to vector<64x128xbf16>
    %c6_125 = arith.constant 6 : index
    %c0_126 = arith.constant 0 : index
    %c0_127 = arith.constant 0 : index
    %209 = vector.load %arg4[%c6_125, %c0_126, %c0_127] : memref<9x128x128xbf16, #tpu.memory_space<vmem>>, vector<1x128x128xbf16>
    %210 = vector.shape_cast %209 : vector<1x128x128xbf16> to vector<128x128xbf16>
    %cst_128 = arith.constant dense<0.000000e+00> : vector<64x128xf32>
    %211 = tpu.matmul %208, %210, %cst_128 {dimension_numbers = #tpu.dot_dimension_numbers<[1], [0], [0], [1], [0, 0, 1, 1], [], []>} : vector<64x128xbf16>, vector<128x128xbf16>, vector<64x128xf32> -> vector<64x128xf32>
    %212 = arith.addf %199, %211 : vector<64x128xf32>
    %c40 = arith.constant 40 : index
    %c0_129 = arith.constant 0 : index
    %213 = vector.load %arg11[%c40, %c0_129] : memref<320x128xf32, #tpu.memory_space<vmem>>, vector<64x128xf32>
    %c56_i32_130 = arith.constant 56 : i32
    %214 = vector.broadcast %c56_i32_130 : i32 to vector<64x128xi32>
    %215 = arith.cmpi slt, %134, %214 : vector<64x128xi32>
    %cst_131 = arith.constant 0.000000e+00 : f32
    %216 = vector.broadcast %cst_131 : f32 to vector<64x128xf32>
    %217 = arith.select %215, %213, %216 : vector<64x128xi1>, vector<64x128xf32>
    %218 = arith.truncf %217 : vector<64x128xf32> to vector<64x128xbf16>
    %c7_132 = arith.constant 7 : index
    %c0_133 = arith.constant 0 : index
    %c0_134 = arith.constant 0 : index
    %219 = vector.load %arg4[%c7_132, %c0_133, %c0_134] : memref<9x128x128xbf16, #tpu.memory_space<vmem>>, vector<1x128x128xbf16>
    %220 = vector.shape_cast %219 : vector<1x128x128xbf16> to vector<128x128xbf16>
    %cst_135 = arith.constant dense<0.000000e+00> : vector<64x128xf32>
    %221 = tpu.matmul %218, %220, %cst_135 {dimension_numbers = #tpu.dot_dimension_numbers<[1], [0], [0], [1], [0, 0, 1, 1], [], []>} : vector<64x128xbf16>, vector<128x128xbf16>, vector<64x128xf32> -> vector<64x128xf32>
    %222 = arith.addf %212, %221 : vector<64x128xf32>
    %c41 = arith.constant 41 : index
    %c0_136 = arith.constant 0 : index
    %223 = vector.load %arg11[%c41, %c0_136] : memref<320x128xf32, #tpu.memory_space<vmem>>, vector<64x128xf32>
    %c56_i32_137 = arith.constant 56 : i32
    %224 = vector.broadcast %c56_i32_137 : i32 to vector<64x128xi32>
    %225 = arith.cmpi slt, %134, %224 : vector<64x128xi32>
    %c7_i32_138 = arith.constant 7 : i32
    %226 = vector.broadcast %c7_i32_138 : i32 to vector<64x128xi32>
    %227 = arith.cmpi slt, %136, %226 : vector<64x128xi32>
    %228 = arith.andi %225, %227 : vector<64x128xi1>
    %cst_139 = arith.constant 0.000000e+00 : f32
    %229 = vector.broadcast %cst_139 : f32 to vector<64x128xf32>
    %230 = arith.select %228, %223, %229 : vector<64x128xi1>, vector<64x128xf32>
    %231 = arith.truncf %230 : vector<64x128xf32> to vector<64x128xbf16>
    %c8_140 = arith.constant 8 : index
    %c0_141 = arith.constant 0 : index
    %c0_142 = arith.constant 0 : index
    %232 = vector.load %arg4[%c8_140, %c0_141, %c0_142] : memref<9x128x128xbf16, #tpu.memory_space<vmem>>, vector<1x128x128xbf16>
    %233 = vector.shape_cast %232 : vector<1x128x128xbf16> to vector<128x128xbf16>
    %cst_143 = arith.constant dense<0.000000e+00> : vector<64x128xf32>
    %234 = tpu.matmul %231, %233, %cst_143 {dimension_numbers = #tpu.dot_dimension_numbers<[1], [0], [0], [1], [0, 0, 1, 1], [], []>} : vector<64x128xbf16>, vector<128x128xbf16>, vector<64x128xf32> -> vector<64x128xf32>
    %235 = arith.addf %222, %234 : vector<64x128xf32>
    %c0_144 = arith.constant 0 : index
    %c0_145 = arith.constant 0 : index
    %236 = vector.load %arg5[%c0_144, %c0_145] : memref<1x128xf32, #tpu.memory_space<vmem>>, vector<1x128xf32>
    %237 = vector.broadcast %236 : vector<1x128xf32> to vector<64x128xf32>
    %238 = arith.addf %235, %237 : vector<64x128xf32>
    %cst_146 = arith.constant 0.000000e+00 : f32
    %239 = vector.broadcast %cst_146 : f32 to vector<64x128xf32>
    %240 = arith.maximumf %238, %239 : vector<64x128xf32>
    %c32_147 = arith.constant 32 : index
    %c0_148 = arith.constant 0 : index
    %241 = vector.load %arg11[%c32_147, %c0_148] : memref<320x128xf32, #tpu.memory_space<vmem>>, vector<64x128xf32>
    tpu.vector_store %arg11[%c32_147, %c0_148], %240 {strides = array<i32>} : memref<320x128xf32, #tpu.memory_space<vmem>>, vector<64x128xf32>,
    %c33_149 = arith.constant 33 : index
    %c0_150 = arith.constant 0 : index
    %242 = vector.load %arg11[%c33_149, %c0_150] : memref<320x128xf32, #tpu.memory_space<vmem>>, vector<64x128xf32>
    %243 = arith.maximumf %240, %242 : vector<64x128xf32>
    %c32_151 = arith.constant 32 : index
    %c0_152 = arith.constant 0 : index
    %244 = vector.load %arg11[%c32_151, %c0_152] : memref<320x128xf32, #tpu.memory_space<vmem>>, vector<64x128xf32>
    tpu.vector_store %arg11[%c32_151, %c0_152], %243 {strides = array<i32>} : memref<320x128xf32, #tpu.memory_space<vmem>>, vector<64x128xf32>,
    %c40_153 = arith.constant 40 : index
    %c0_154 = arith.constant 0 : index
    %245 = vector.load %arg11[%c40_153, %c0_154] : memref<320x128xf32, #tpu.memory_space<vmem>>, vector<64x128xf32>
    %246 = arith.maximumf %243, %245 : vector<64x128xf32>
    %247 = tpu.iota {dimensions = array<i32: 0>} : vector<16x64xi32>
    %248 = tpu.iota {dimensions = array<i32: 1>} : vector<16x64xi32>
    %c2_i32 = arith.constant 2 : i32
    %249 = vector.broadcast %c2_i32 : i32 to vector<16x64xi32>
    %250 = arith.shrsi %247, %249 : vector<16x64xi32>
    %c3_i32_155 = arith.constant 3 : i32
    %251 = vector.broadcast %c3_i32_155 : i32 to vector<16x64xi32>
    %252 = arith.andi %247, %251 : vector<16x64xi32>
    %c4_i32 = arith.constant 4 : i32
    %253 = vector.broadcast %c4_i32 : i32 to vector<16x64xi32>
    %254 = arith.shli %250, %253 : vector<16x64xi32>
    %c1_i32_156 = arith.constant 1 : i32
    %255 = vector.broadcast %c1_i32_156 : i32 to vector<16x64xi32>
    %256 = arith.shli %252, %255 : vector<16x64xi32>
    %257 = arith.addi %254, %256 : vector<16x64xi32>
    %258 = arith.cmpi eq, %248, %257 : vector<16x64xi32>
    %259 = arith.extui %258 : vector<16x64xi1> to vector<16x64xi32>
    %260 = arith.sitofp %259 : vector<16x64xi32> to vector<16x64xf32>
    %cst_157 = arith.constant dense<0.000000e+00> : vector<16x128xf32>
    %261 = tpu.matmul %260, %246, %cst_157 {dimension_numbers = #tpu.dot_dimension_numbers<[1], [0], [0], [1], [0, 0, 1, 1], [], []>} : vector<16x64xf32>, vector<64x128xf32>, vector<16x128xf32> -> vector<16x128xf32>
    %c32_158 = arith.constant 32 : index
    %c0_159 = arith.constant 0 : index
    %262 = vector.load %arg11[%c32_158, %c0_159] : memref<320x128xf32, #tpu.memory_space<vmem>>, vector<16x128xf32>
    tpu.vector_store %arg11[%c32_158, %c0_159], %261 {strides = array<i32>} : memref<320x128xf32, #tpu.memory_space<vmem>>, vector<16x128xf32>,
    %263 = tpu.iota {dimensions = array<i32: 0>} : vector<16x128xi32>
    %c3_i32_160 = arith.constant 3 : i32
    %264 = vector.broadcast %c3_i32_160 : i32 to vector<16x128xi32>
    %265 = arith.andi %263, %264 : vector<16x128xi32>
    %cst_161 = arith.constant 0.000000e+00 : f32
    %266 = vector.broadcast %cst_161 : f32 to vector<16x128xf32>
    %c27 = arith.constant 27 : index
    %c0_162 = arith.constant 0 : index
    %267 = vector.load %arg11[%c27, %c0_162] : memref<320x128xf32, #tpu.memory_space<vmem>>, vector<16x128xf32>
    %c4_i32_163 = arith.constant 4 : i32
    %268 = vector.broadcast %c4_i32_163 : i32 to vector<16x128xi32>
    %269 = arith.cmpi sge, %263, %268 : vector<16x128xi32>
    %c1_i32_164 = arith.constant 1 : i32
    %270 = vector.broadcast %c1_i32_164 : i32 to vector<16x128xi32>
    %271 = arith.cmpi sge, %265, %270 : vector<16x128xi32>
    %272 = arith.andi %269, %271 : vector<16x128xi1>
    %cst_165 = arith.constant 0.000000e+00 : f32
    %273 = vector.broadcast %cst_165 : f32 to vector<16x128xf32>
    %274 = arith.select %272, %267, %273 : vector<16x128xi1>, vector<16x128xf32>
    %275 = arith.truncf %274 : vector<16x128xf32> to vector<16x128xbf16>
    %c0_166 = arith.constant 0 : index
    %c0_167 = arith.constant 0 : index
    %c0_168 = arith.constant 0 : index
    %276 = vector.load %arg6[%c0_166, %c0_167, %c0_168] : memref<9x128x128xbf16, #tpu.memory_space<vmem>>, vector<1x128x128xbf16>
    %277 = vector.shape_cast %276 : vector<1x128x128xbf16> to vector<128x128xbf16>
    %cst_169 = arith.constant dense<0.000000e+00> : vector<16x128xf32>
    %278 = tpu.matmul %275, %277, %cst_169 {dimension_numbers = #tpu.dot_dimension_numbers<[1], [0], [0], [1], [0, 0, 1, 1], [], []>} : vector<16x128xbf16>, vector<128x128xbf16>, vector<16x128xf32> -> vector<16x128xf32>
    %279 = arith.addf %266, %278 : vector<16x128xf32>
    %c28 = arith.constant 28 : index
    %c0_170 = arith.constant 0 : index
    %280 = vector.load %arg11[%c28, %c0_170] : memref<320x128xf32, #tpu.memory_space<vmem>>, vector<16x128xf32>
    %c4_i32_171 = arith.constant 4 : i32
    %281 = vector.broadcast %c4_i32_171 : i32 to vector<16x128xi32>
    %282 = arith.cmpi sge, %263, %281 : vector<16x128xi32>
    %cst_172 = arith.constant 0.000000e+00 : f32
    %283 = vector.broadcast %cst_172 : f32 to vector<16x128xf32>
    %284 = arith.select %282, %280, %283 : vector<16x128xi1>, vector<16x128xf32>
    %285 = arith.truncf %284 : vector<16x128xf32> to vector<16x128xbf16>
    %c1_173 = arith.constant 1 : index
    %c0_174 = arith.constant 0 : index
    %c0_175 = arith.constant 0 : index
    %286 = vector.load %arg6[%c1_173, %c0_174, %c0_175] : memref<9x128x128xbf16, #tpu.memory_space<vmem>>, vector<1x128x128xbf16>
    %287 = vector.shape_cast %286 : vector<1x128x128xbf16> to vector<128x128xbf16>
    %cst_176 = arith.constant dense<0.000000e+00> : vector<16x128xf32>
    %288 = tpu.matmul %285, %287, %cst_176 {dimension_numbers = #tpu.dot_dimension_numbers<[1], [0], [0], [1], [0, 0, 1, 1], [], []>} : vector<16x128xbf16>, vector<128x128xbf16>, vector<16x128xf32> -> vector<16x128xf32>
    %289 = arith.addf %279, %288 : vector<16x128xf32>
    %c29 = arith.constant 29 : index
    %c0_177 = arith.constant 0 : index
    %290 = vector.load %arg11[%c29, %c0_177] : memref<320x128xf32, #tpu.memory_space<vmem>>, vector<16x128xf32>
    %c4_i32_178 = arith.constant 4 : i32
    %291 = vector.broadcast %c4_i32_178 : i32 to vector<16x128xi32>
    %292 = arith.cmpi sge, %263, %291 : vector<16x128xi32>
    %c3_i32_179 = arith.constant 3 : i32
    %293 = vector.broadcast %c3_i32_179 : i32 to vector<16x128xi32>
    %294 = arith.cmpi slt, %265, %293 : vector<16x128xi32>
    %295 = arith.andi %292, %294 : vector<16x128xi1>
    %cst_180 = arith.constant 0.000000e+00 : f32
    %296 = vector.broadcast %cst_180 : f32 to vector<16x128xf32>
    %297 = arith.select %295, %290, %296 : vector<16x128xi1>, vector<16x128xf32>
    %298 = arith.truncf %297 : vector<16x128xf32> to vector<16x128xbf16>
    %c2_181 = arith.constant 2 : index
    %c0_182 = arith.constant 0 : index
    %c0_183 = arith.constant 0 : index
    %299 = vector.load %arg6[%c2_181, %c0_182, %c0_183] : memref<9x128x128xbf16, #tpu.memory_space<vmem>>, vector<1x128x128xbf16>
    %300 = vector.shape_cast %299 : vector<1x128x128xbf16> to vector<128x128xbf16>
    %cst_184 = arith.constant dense<0.000000e+00> : vector<16x128xf32>
    %301 = tpu.matmul %298, %300, %cst_184 {dimension_numbers = #tpu.dot_dimension_numbers<[1], [0], [0], [1], [0, 0, 1, 1], [], []>} : vector<16x128xbf16>, vector<128x128xbf16>, vector<16x128xf32> -> vector<16x128xf32>
    %302 = arith.addf %289, %301 : vector<16x128xf32>
    %c31_185 = arith.constant 31 : index
    %c0_186 = arith.constant 0 : index
    %303 = vector.load %arg11[%c31_185, %c0_186] : memref<320x128xf32, #tpu.memory_space<vmem>>, vector<16x128xf32>
    %c1_i32_187 = arith.constant 1 : i32
    %304 = vector.broadcast %c1_i32_187 : i32 to vector<16x128xi32>
    %305 = arith.cmpi sge, %265, %304 : vector<16x128xi32>
    %cst_188 = arith.constant 0.000000e+00 : f32
    %306 = vector.broadcast %cst_188 : f32 to vector<16x128xf32>
    %307 = arith.select %305, %303, %306 : vector<16x128xi1>, vector<16x128xf32>
    %308 = arith.truncf %307 : vector<16x128xf32> to vector<16x128xbf16>
    %c3_189 = arith.constant 3 : index
    %c0_190 = arith.constant 0 : index
    %c0_191 = arith.constant 0 : index
    %309 = vector.load %arg6[%c3_189, %c0_190, %c0_191] : memref<9x128x128xbf16, #tpu.memory_space<vmem>>, vector<1x128x128xbf16>
    %310 = vector.shape_cast %309 : vector<1x128x128xbf16> to vector<128x128xbf16>
    %cst_192 = arith.constant dense<0.000000e+00> : vector<16x128xf32>
    %311 = tpu.matmul %308, %310, %cst_192 {dimension_numbers = #tpu.dot_dimension_numbers<[1], [0], [0], [1], [0, 0, 1, 1], [], []>} : vector<16x128xbf16>, vector<128x128xbf16>, vector<16x128xf32> -> vector<16x128xf32>
    %312 = arith.addf %302, %311 : vector<16x128xf32>
    %c32_193 = arith.constant 32 : index
    %c0_194 = arith.constant 0 : index
    %313 = vector.load %arg11[%c32_193, %c0_194] : memref<320x128xf32, #tpu.memory_space<vmem>>, vector<16x128xf32>
    %314 = arith.truncf %313 : vector<16x128xf32> to vector<16x128xbf16>
    %c4_195 = arith.constant 4 : index
    %c0_196 = arith.constant 0 : index
    %c0_197 = arith.constant 0 : index
    %315 = vector.load %arg6[%c4_195, %c0_196, %c0_197] : memref<9x128x128xbf16, #tpu.memory_space<vmem>>, vector<1x128x128xbf16>
    %316 = vector.shape_cast %315 : vector<1x128x128xbf16> to vector<128x128xbf16>
    %cst_198 = arith.constant dense<0.000000e+00> : vector<16x128xf32>
    %317 = tpu.matmul %314, %316, %cst_198 {dimension_numbers = #tpu.dot_dimension_numbers<[1], [0], [0], [1], [0, 0, 1, 1], [], []>} : vector<16x128xbf16>, vector<128x128xbf16>, vector<16x128xf32> -> vector<16x128xf32>
    %318 = arith.addf %312, %317 : vector<16x128xf32>
    %c33_199 = arith.constant 33 : index
    %c0_200 = arith.constant 0 : index
    %319 = vector.load %arg11[%c33_199, %c0_200] : memref<320x128xf32, #tpu.memory_space<vmem>>, vector<16x128xf32>
    %c3_i32_201 = arith.constant 3 : i32
    %320 = vector.broadcast %c3_i32_201 : i32 to vector<16x128xi32>
    %321 = arith.cmpi slt, %265, %320 : vector<16x128xi32>
    %cst_202 = arith.constant 0.000000e+00 : f32
    %322 = vector.broadcast %cst_202 : f32 to vector<16x128xf32>
    %323 = arith.select %321, %319, %322 : vector<16x128xi1>, vector<16x128xf32>
    %324 = arith.truncf %323 : vector<16x128xf32> to vector<16x128xbf16>
    %c5_203 = arith.constant 5 : index
    %c0_204 = arith.constant 0 : index
    %c0_205 = arith.constant 0 : index
    %325 = vector.load %arg6[%c5_203, %c0_204, %c0_205] : memref<9x128x128xbf16, #tpu.memory_space<vmem>>, vector<1x128x128xbf16>
    %326 = vector.shape_cast %325 : vector<1x128x128xbf16> to vector<128x128xbf16>
    %cst_206 = arith.constant dense<0.000000e+00> : vector<16x128xf32>
    %327 = tpu.matmul %324, %326, %cst_206 {dimension_numbers = #tpu.dot_dimension_numbers<[1], [0], [0], [1], [0, 0, 1, 1], [], []>} : vector<16x128xbf16>, vector<128x128xbf16>, vector<16x128xf32> -> vector<16x128xf32>
    %328 = arith.addf %318, %327 : vector<16x128xf32>
    %c35 = arith.constant 35 : index
    %c0_207 = arith.constant 0 : index
    %329 = vector.load %arg11[%c35, %c0_207] : memref<320x128xf32, #tpu.memory_space<vmem>>, vector<16x128xf32>
    %c12_i32 = arith.constant 12 : i32
    %330 = vector.broadcast %c12_i32 : i32 to vector<16x128xi32>
    %331 = arith.cmpi slt, %263, %330 : vector<16x128xi32>
    %c1_i32_208 = arith.constant 1 : i32
    %332 = vector.broadcast %c1_i32_208 : i32 to vector<16x128xi32>
    %333 = arith.cmpi sge, %265, %332 : vector<16x128xi32>
    %334 = arith.andi %331, %333 : vector<16x128xi1>
    %cst_209 = arith.constant 0.000000e+00 : f32
    %335 = vector.broadcast %cst_209 : f32 to vector<16x128xf32>
    %336 = arith.select %334, %329, %335 : vector<16x128xi1>, vector<16x128xf32>
    %337 = arith.truncf %336 : vector<16x128xf32> to vector<16x128xbf16>
    %c6_210 = arith.constant 6 : index
    %c0_211 = arith.constant 0 : index
    %c0_212 = arith.constant 0 : index
    %338 = vector.load %arg6[%c6_210, %c0_211, %c0_212] : memref<9x128x128xbf16, #tpu.memory_space<vmem>>, vector<1x128x128xbf16>
    %339 = vector.shape_cast %338 : vector<1x128x128xbf16> to vector<128x128xbf16>
    %cst_213 = arith.constant dense<0.000000e+00> : vector<16x128xf32>
    %340 = tpu.matmul %337, %339, %cst_213 {dimension_numbers = #tpu.dot_dimension_numbers<[1], [0], [0], [1], [0, 0, 1, 1], [], []>} : vector<16x128xbf16>, vector<128x128xbf16>, vector<16x128xf32> -> vector<16x128xf32>
    %341 = arith.addf %328, %340 : vector<16x128xf32>
    %c36 = arith.constant 36 : index
    %c0_214 = arith.constant 0 : index
    %342 = vector.load %arg11[%c36, %c0_214] : memref<320x128xf32, #tpu.memory_space<vmem>>, vector<16x128xf32>
    %c12_i32_215 = arith.constant 12 : i32
    %343 = vector.broadcast %c12_i32_215 : i32 to vector<16x128xi32>
    %344 = arith.cmpi slt, %263, %343 : vector<16x128xi32>
    %cst_216 = arith.constant 0.000000e+00 : f32
    %345 = vector.broadcast %cst_216 : f32 to vector<16x128xf32>
    %346 = arith.select %344, %342, %345 : vector<16x128xi1>, vector<16x128xf32>
    %347 = arith.truncf %346 : vector<16x128xf32> to vector<16x128xbf16>
    %c7_217 = arith.constant 7 : index
    %c0_218 = arith.constant 0 : index
    %c0_219 = arith.constant 0 : index
    %348 = vector.load %arg6[%c7_217, %c0_218, %c0_219] : memref<9x128x128xbf16, #tpu.memory_space<vmem>>, vector<1x128x128xbf16>
    %349 = vector.shape_cast %348 : vector<1x128x128xbf16> to vector<128x128xbf16>
    %cst_220 = arith.constant dense<0.000000e+00> : vector<16x128xf32>
    %350 = tpu.matmul %347, %349, %cst_220 {dimension_numbers = #tpu.dot_dimension_numbers<[1], [0], [0], [1], [0, 0, 1, 1], [], []>} : vector<16x128xbf16>, vector<128x128xbf16>, vector<16x128xf32> -> vector<16x128xf32>
    %351 = arith.addf %341, %350 : vector<16x128xf32>
    %c37 = arith.constant 37 : index
    %c0_221 = arith.constant 0 : index
    %352 = vector.load %arg11[%c37, %c0_221] : memref<320x128xf32, #tpu.memory_space<vmem>>, vector<16x128xf32>
    %c12_i32_222 = arith.constant 12 : i32
    %353 = vector.broadcast %c12_i32_222 : i32 to vector<16x128xi32>
    %354 = arith.cmpi slt, %263, %353 : vector<16x128xi32>
    %c3_i32_223 = arith.constant 3 : i32
    %355 = vector.broadcast %c3_i32_223 : i32 to vector<16x128xi32>
    %356 = arith.cmpi slt, %265, %355 : vector<16x128xi32>
    %357 = arith.andi %354, %356 : vector<16x128xi1>
    %cst_224 = arith.constant 0.000000e+00 : f32
    %358 = vector.broadcast %cst_224 : f32 to vector<16x128xf32>
    %359 = arith.select %357, %352, %358 : vector<16x128xi1>, vector<16x128xf32>
    %360 = arith.truncf %359 : vector<16x128xf32> to vector<16x128xbf16>
    %c8_225 = arith.constant 8 : index
    %c0_226 = arith.constant 0 : index
    %c0_227 = arith.constant 0 : index
    %361 = vector.load %arg6[%c8_225, %c0_226, %c0_227] : memref<9x128x128xbf16, #tpu.memory_space<vmem>>, vector<1x128x128xbf16>
    %362 = vector.shape_cast %361 : vector<1x128x128xbf16> to vector<128x128xbf16>
    %cst_228 = arith.constant dense<0.000000e+00> : vector<16x128xf32>
    %363 = tpu.matmul %360, %362, %cst_228 {dimension_numbers = #tpu.dot_dimension_numbers<[1], [0], [0], [1], [0, 0, 1, 1], [], []>} : vector<16x128xbf16>, vector<128x128xbf16>, vector<16x128xf32> -> vector<16x128xf32>
    %364 = arith.addf %351, %363 : vector<16x128xf32>
    %c0_229 = arith.constant 0 : index
    %c0_230 = arith.constant 0 : index
    %365 = vector.load %arg7[%c0_229, %c0_230] : memref<1x128xf32, #tpu.memory_space<vmem>>, vector<1x128xf32>
    %366 = vector.broadcast %365 : vector<1x128xf32> to vector<16x128xf32>
    %367 = arith.addf %364, %366 : vector<16x128xf32>
    %cst_231 = arith.constant 0.000000e+00 : f32
    %368 = vector.broadcast %cst_231 : f32 to vector<16x128xf32>
    %369 = arith.maximumf %367, %368 : vector<16x128xf32>
    %c32_232 = arith.constant 32 : index
    %c0_233 = arith.constant 0 : index
    %370 = vector.load %arg11[%c32_232, %c0_233] : memref<320x128xf32, #tpu.memory_space<vmem>>, vector<16x128xf32>
    tpu.vector_store %arg11[%c32_232, %c0_233], %369 {strides = array<i32>} : memref<320x128xf32, #tpu.memory_space<vmem>>, vector<16x128xf32>,
    %c33_234 = arith.constant 33 : index
    %c0_235 = arith.constant 0 : index
    %371 = vector.load %arg11[%c33_234, %c0_235] : memref<320x128xf32, #tpu.memory_space<vmem>>, vector<16x128xf32>
    %372 = arith.maximumf %369, %371 : vector<16x128xf32>
    %c32_236 = arith.constant 32 : index
    %c0_237 = arith.constant 0 : index
    %373 = vector.load %arg11[%c32_236, %c0_237] : memref<320x128xf32, #tpu.memory_space<vmem>>, vector<16x128xf32>
    tpu.vector_store %arg11[%c32_236, %c0_237], %372 {strides = array<i32>} : memref<320x128xf32, #tpu.memory_space<vmem>>, vector<16x128xf32>,
    %c36_238 = arith.constant 36 : index
    %c0_239 = arith.constant 0 : index
    %374 = vector.load %arg11[%c36_238, %c0_239] : memref<320x128xf32, #tpu.memory_space<vmem>>, vector<16x128xf32>
    %375 = arith.maximumf %372, %374 : vector<16x128xf32>
    %376 = tpu.iota {dimensions = array<i32: 0>} : vector<4x16xi32>
    %377 = tpu.iota {dimensions = array<i32: 1>} : vector<4x16xi32>
    %c1_i32_240 = arith.constant 1 : i32
    %378 = vector.broadcast %c1_i32_240 : i32 to vector<4x16xi32>
    %379 = arith.shrsi %376, %378 : vector<4x16xi32>
    %c1_i32_241 = arith.constant 1 : i32
    %380 = vector.broadcast %c1_i32_241 : i32 to vector<4x16xi32>
    %381 = arith.andi %376, %380 : vector<4x16xi32>
    %c3_i32_242 = arith.constant 3 : i32
    %382 = vector.broadcast %c3_i32_242 : i32 to vector<4x16xi32>
    %383 = arith.shli %379, %382 : vector<4x16xi32>
    %c1_i32_243 = arith.constant 1 : i32
    %384 = vector.broadcast %c1_i32_243 : i32 to vector<4x16xi32>
    %385 = arith.shli %381, %384 : vector<4x16xi32>
    %386 = arith.addi %383, %385 : vector<4x16xi32>
    %387 = arith.cmpi eq, %377, %386 : vector<4x16xi32>
    %388 = arith.extui %387 : vector<4x16xi1> to vector<4x16xi32>
    %389 = arith.sitofp %388 : vector<4x16xi32> to vector<4x16xf32>
    %cst_244 = arith.constant dense<0.000000e+00> : vector<4x128xf32>
    %390 = tpu.matmul %389, %375, %cst_244 {dimension_numbers = #tpu.dot_dimension_numbers<[1], [0], [0], [1], [0, 0, 1, 1], [], []>} : vector<4x16xf32>, vector<16x128xf32>, vector<4x128xf32> -> vector<4x128xf32>
    %cst_245 = arith.constant dense<0.000000e+00> : vector<128xf32>
    %391 = vector.multi_reduction <add>, %390, %cst_245 [0] : vector<4x128xf32> to vector<128xf32>
    %392 = vector.shape_cast %391 : vector<128xf32> to vector<1x128xf32>
    %393 = arith.truncf %392 : vector<1x128xf32> to vector<1x128xbf16>
    %c0_246 = arith.constant 0 : index
    %c0_247 = arith.constant 0 : index
    %394 = vector.load %arg8[%c0_246, %c0_247] : memref<128x128xbf16, #tpu.memory_space<vmem>>, vector<128x128xbf16>
    %cst_248 = arith.constant dense<0.000000e+00> : vector<1x128xf32>
    %395 = tpu.matmul %393, %394, %cst_248 {dimension_numbers = #tpu.dot_dimension_numbers<[1], [0], [0], [1], [0, 0, 1, 1], [], []>} : vector<1x128xbf16>, vector<128x128xbf16>, vector<1x128xf32> -> vector<1x128xf32>
    %c0_249 = arith.constant 0 : index
    %c0_250 = arith.constant 0 : index
    %396 = vector.load %arg9[%c0_249, %c0_250] : memref<1x128xf32, #tpu.memory_space<vmem>>, vector<1x128xf32>
    %397 = arith.addf %395, %396 : vector<1x128xf32>
    %c0_251 = arith.constant 0 : index
    %c0_252 = arith.constant 0 : index
    %c0_253 = arith.constant 0 : index
    %398 = vector.load %arg10[%c0_251, %c0_252, %c0_253] : memref<1x1x128xf32, #tpu.memory_space<vmem>>, vector<1x1x128xf32>
    %399 = vector.shape_cast %398 : vector<1x1x128xf32> to vector<1x128xf32>
    %400 = vector.shape_cast %397 : vector<1x128xf32> to vector<1x1x128xf32>
    tpu.vector_store %arg10[%c0_251, %c0_252, %c0_253], %400 {strides = array<i32>} : memref<1x1x128xf32, #tpu.memory_space<vmem>>, vector<1x1x128xf32>,
    return
  }
  func.func @transform_0(%arg0: i32) -> (i32, i32, i32) {
    %c0_i32 = arith.constant 0 : i32
    %c0_i32_0 = arith.constant 0 : i32
    %c0_i32_1 = arith.constant 0 : i32
    return %arg0, %c0_i32, %c0_i32_0 : i32, i32, i32
  }
  func.func @transform_1(%arg0: i32) -> (i32, i32, i32) {
    %c0_i32 = arith.constant 0 : i32
    %c0_i32_0 = arith.constant 0 : i32
    %c0_i32_1 = arith.constant 0 : i32
    %c0_i32_2 = arith.constant 0 : i32
    return %c0_i32, %c0_i32_0, %c0_i32_1 : i32, i32, i32
  }
  func.func @transform_2(%arg0: i32) -> (i32, i32) {
    %c0_i32 = arith.constant 0 : i32
    %c0_i32_0 = arith.constant 0 : i32
    %c0_i32_1 = arith.constant 0 : i32
    return %c0_i32, %c0_i32_0 : i32, i32
  }
  func.func @transform_3(%arg0: i32) -> (i32, i32, i32) {
    %c0_i32 = arith.constant 0 : i32
    %c0_i32_0 = arith.constant 0 : i32
    %c0_i32_1 = arith.constant 0 : i32
    %c0_i32_2 = arith.constant 0 : i32
    return %c0_i32, %c0_i32_0, %c0_i32_1 : i32, i32, i32
  }
  func.func @transform_4(%arg0: i32) -> (i32, i32) {
    %c0_i32 = arith.constant 0 : i32
    %c0_i32_0 = arith.constant 0 : i32
    %c0_i32_1 = arith.constant 0 : i32
    return %c0_i32, %c0_i32_0 : i32, i32
  }
  func.func @transform_5(%arg0: i32) -> (i32, i32, i32) {
    %c0_i32 = arith.constant 0 : i32
    %c0_i32_0 = arith.constant 0 : i32
    %c0_i32_1 = arith.constant 0 : i32
    %c0_i32_2 = arith.constant 0 : i32
    return %c0_i32, %c0_i32_0, %c0_i32_1 : i32, i32, i32
  }
  func.func @transform_6(%arg0: i32) -> (i32, i32) {
    %c0_i32 = arith.constant 0 : i32
    %c0_i32_0 = arith.constant 0 : i32
    %c0_i32_1 = arith.constant 0 : i32
    return %c0_i32, %c0_i32_0 : i32, i32
  }
  func.func @transform_7(%arg0: i32) -> (i32, i32) {
    %c0_i32 = arith.constant 0 : i32
    %c0_i32_0 = arith.constant 0 : i32
    %c0_i32_1 = arith.constant 0 : i32
    return %c0_i32, %c0_i32_0 : i32, i32
  }
  func.func @transform_8(%arg0: i32) -> (i32, i32) {
    %c0_i32 = arith.constant 0 : i32
    %c0_i32_0 = arith.constant 0 : i32
    %c0_i32_1 = arith.constant 0 : i32
    return %c0_i32, %c0_i32_0 : i32, i32
  }
  func.func @transform_9(%arg0: i32) -> (i32, i32, i32) {
    %c0_i32 = arith.constant 0 : i32
    %c0_i32_0 = arith.constant 0 : i32
    %c0_i32_1 = arith.constant 0 : i32
    return %arg0, %c0_i32, %c0_i32_0 : i32, i32, i32
  }
}

</mosaic_0001>

<bundles_post_ra>
// kernel: face_recognition_forward.1
= control target key start
LH: loop header
LB: loop body
LE: loop exit
PB: predicated region body
PF: predicated region fallthrough
CT: control target
= control target key end

     0   :  { %14 = vsyncpa [#allocation4], 0  ;;  %s12641_s0 = inlined_call_operand.vmem [shape: f32[2,256,128], index: 0, kind: input, shape index: {}]   ;;  %s12642_s1 = inlined_call_operand.vmem [shape: bf16[9,128,128], index: 1, kind: input, shape index: {}]   ;;  %s12643_s2 = inlined_call_operand.vmem [shape: f32[1,128], index: 2, kind: input, shape index: {}]   ;;  %s12644_s3 = inlined_call_operand.vmem [shape: bf16[9,128,128], index: 3, kind: input, shape index: {}]   ;;  %s12645_s4 = inlined_call_operand.vmem [shape: f32[1,128], index: 4, kind: input, shape index: {}]   ;;  %s12646_s5 = inlined_call_operand.vmem [shape: bf16[9,128,128], index: 5, kind: input, shape index: {}]   ;;  %s12647_s6 = inlined_call_operand.vmem [shape: f32[1,128], index: 6, kind: input, shape index: {}]   ;;  %s12648_s7 = inlined_call_operand.vmem [shape: bf16[128,128], index: 7, kind: input, shape index: {}]   ;;  %s12649_s8 = inlined_call_operand.vmem [shape: f32[1,128], index: 8, kind: input, shape index: {}]   ;;  %s12650_s9 = inlined_call_operand.hbm [shape: f32[2,1,128], index: 9, kind: output, shape index: {}]  }
   0x1   :  { %16 = vsyncpa [#allocation4 + $0x1], 0  ;;  %s10266_s30 = smov 0   ;;  %s10268_s10 = smov 0  }
   0x2   :  { %s10270_s11 = smov 0   ;;  %s10272_s12 = smov 0  }
   0x3 LB: > { %s10287_s13 = sadd.s32 4294967295, %s10208_s12   ;;  %s7114_s14 = sadd.s32 4294967294, %s10208_s12   ;;  %s10208_s12 = sphi %s10272_s12, %s12921_s12   ;;  %s10204_s11 = sphi %s10270_s11, %s12920_s11   ;;  %s10200_s10 = sphi %s10268_s10, %s12919_s10   ;;  %s10196_s30 = sphi %s10266_s30, %s12918_s30  }
   0x4   : > { %s10291_s15 = sadd.s32 1, %s10208_s12   ;;  %s223_s16 = sadd.s32 1, %s10204_s11 }
   0x5   : > { %s220_s17 = ssub.s32 %s10208_s12, %s10291_s15  ;;  %p233_p0 = scmp.ne.s32.totalorder %s10204_s11, %s10200_s10 }
   0x6   : > { %p221_p1 = scmp.eq.s32.totalorder %s220_s17, 0  ;;  %p234_p2 = scmp.eq.s32.totalorder %s10287_s13, 1 }
   0x7   : > { %p239_p3 = scmp.ne.s32.totalorder %s10200_s10, %s10196_s30  ;;  %p240_p4 = scmp.eq.s32.totalorder %s7114_s14, 1 }
   0x8   : > { %s10302_s18 = scalar_select %p221_p1, %s10204_s11, %s223_s16  }
   0x9   : > { %p10304_p5 = por %p234_p2, %p233_p0  ;;  %p10308_p6 = por %p240_p4, %p239_p3 }
   0xa   : > { %p7117_p7 = scmp.ge.s32.totalorder %s10208_s12, 1  ;;  %p290_p8 = scmp.lt.s32.totalorder %s10208_s12, 3 }
   0xc   : > { %p291_p9 = pnand %p7117_p7, %p290_p8 }
   0xe   : > { %294 = sbr.rel (%p291_p9) target bundleno = 2752 (0xac0), region = 56 }
  0x15   : > { %v9917_v0 = vld [vmem:[%s12642_s1 + $0x40] sm:$0xff]   ;;  %v9918_v1 = vld [vmem:[%s12642_s1 + $0x48] sm:$0xff]   ;;  %v12669_v2 = vmov 0.0|0.0   ;;  %p325_p10 = scmp.lt.s32.totalorder %s10287_s13, 1  ;;  %v10211_v3 = vmov 0.0   ;;  %v9919_v4 = vld [vmem:[%s12642_s1 + $0x50] sm:$0xff]   ;;  %v12664_v59 = vlaneseq }
  0x16   : > { %8644 = vmatprep.mubr.bf16.mxu0 %v12669_v2  ;;  %8628 = vmatprep.subr.bf16.mxu0 %v9917_v0  ;;  %331 = vst [vmem:[#allocation2] sm:$0xff] %v10211_v3  ;;  %334 = vst [vmem:[#allocation2 + $0x18] sm:$0xff] %v10211_v3  ;;  %v9920_v5 = vld [vmem:[%s12642_s1 + $0x58] sm:$0xff]   ;;  %v9921_v12 = vld [vmem:[%s12642_s1 + $0x60] sm:$0xff]   ;;  %vm12714_vm4 = vmmov 1   ;;  %s323_s27 = sand.u32 1, %s10200_s10  }
  0x17   : > { %8629 = vmatpush3.bf16.msra.mxu0 %v9917_v0  ;;  %s326_s25 = scalar_select %p325_p10, %s10287_s13, 1  ;;  %367 = vst [vmem:[#allocation2 + $0x120] sm:$0xff] %v10211_v3  ;;  %v9922_v21 = vld [vmem:[%s12642_s1 + $0x68] sm:$0xff]   ;;  %v9923_v26 = vld [vmem:[%s12642_s1 + $0x70] sm:$0xff]   ;;  %v9924_v35 = vld [vmem:[%s12642_s1 + $0x78] sm:$0xff]   ;;  %v10517_v60 = vshrl.u32 %v12664_v59, 7 }
  0x18   : > { %8630 = vmatprep.subr.bf16.mxu0 %v9918_v1  ;;  %v9925_v40 = vld [vmem:[%s12642_s1] sm:$0xff]   ;;  %v9926_v43 = vld [vmem:[%s12642_s1 + $0x8] sm:$0xff]   ;;  %v9927_v44 = vld [vmem:[%s12642_s1 + $0x10] sm:$0xff]   ;;  %s8141_s14 = sshll.u32 %s10287_s13, 4  ;;  %s7047_s24 = scalar_lea.sflag [#allocation4], %s323_s27 }
  0x19   : > { %s8144_s28 = sshll.u32 %s326_s25, 8  ;;  %v9928_v47 = vld [vmem:[%s12642_s1 + $0x18] sm:$0xff]   ;;  %v9929_v48 = vld [vmem:[%s12642_s1 + $0x20] sm:$0xff]   ;;  %v9930_v51 = vld [vmem:[%s12642_s1 + $0x28] sm:$0xff]   ;;  %v10524_v63 = vadd.s32 16, %v10517_v60  ;;  %v10527_v0 = vadd.s32 32, %v10517_v60  ;;  %s12599_s23 = scalar_lea.hbm %s12650_s9, %s8141_s14 }
  0x1a   : > { %s10329_s16 = scalar_lea.vmem %s12641_s0, %s8144_s28  ;;  %v9931_v52 = vld [vmem:[%s12642_s1 + $0x30] sm:$0xff]   ;;  %v9932_v55 = vld [vmem:[%s12642_s1 + $0x38] sm:$0xff]   ;;  %v10509_v56 = vld [vmem:[%s12642_s1 + $0x80] sm:$0xff]   ;;  %v10531_v3 = vadd.s32 48, %v10517_v60  ;;  %s10215_s25 = smov [#allocation3]  }
  0x1b   : > { %8631 = vmatpush3.bf16.msra.mxu0 %v9918_v1  ;;  %v10335_v6 = vld [vmem:[%s10329_s16] sm:$0xff]  ;;  %v10338_v7 = vld [vmem:[%s10329_s16 + $0x8] sm:$0xff]  ;;  %v10343_v8 = vld [vmem:[%s10329_s16 + $0x10] sm:$0xff]  ;;  %12723 = vst [vmem:[#allocation6_spill] sm:$0xff] %v10524_v63  ;;  %v470_v1 = vand.u32 15, %v10524_v63  ;;  %s10150_s26 = sshll.u32 %s10215_s25, 4  ;;  %s10151_s26 = int_to_ptr.vmem [resolvable:$false] %s10150_s26 }
  0x1c   : > { %8632 = vmatprep.subr.bf16.mxu0 %v9919_v4  ;;  %403 = vst [vmem:[#allocation2 + $0x20] sm:$0xff] %v10335_v6  ;;  %404 = vst [vmem:[#allocation2 + $0x28] sm:$0xff] %v10338_v7  ;;  %v10346_v9 = vld [vmem:[%s10329_s16 + $0x18] sm:$0xff]  ;;  %v10350_v10 = vld [vmem:[%s10329_s16 + $0x20] sm:$0xff]  ;;  %v757_v41 = vpack.c.bf16 %v10338_v7, %v10335_v6  ;;  %v472_v6 = vand.u32 15, %v10527_v0  ;;  %s10152_s28 = scalar_lea.vmem %s10151_s26, 32 }
  0x1d   : > { %405 = vst [vmem:[#allocation2 + $0x30] sm:$0xff] %v10343_v8  ;;  %v10353_v11 = vld [vmem:[%s10329_s16 + $0x28] sm:$0xff]  ;;  %406 = vst [vmem:[#allocation2 + $0x38] sm:$0xff] %v10346_v9  ;;  %v10362_v13 = vld [vmem:[%s10329_s16 + $0x30] sm:$0xff]  ;;  %v758_v42 = vpack.c.bf16 %v10346_v9, %v10343_v8  ;;  %vm10539_vm0 = vcmp.ge.s32.totalorder %v470_v1, 1  ;;  %v446_v9 = vadd.s32 80, %v10517_v60 }
  0x1e   : > { %407 = vst [vmem:[#allocation2 + $0x40] sm:$0xff] %v10350_v10  ;;  %408 = vst [vmem:[#allocation2 + $0x48] sm:$0xff] %v10353_v11  ;;  %v10365_v14 = vld [vmem:[%s10329_s16 + $0x38] sm:$0xff]  ;;  %v10368_v15 = vld [vmem:[%s10329_s16 + $0x40] sm:$0xff]  ;;  %v759_v45 = vpack.c.bf16 %v10353_v11, %v10350_v10  ;;  %v474_v11 = vand.u32 15, %v10531_v3  ;;  %vm10546_vm1 = vcmp.ge.s32.totalorder %v472_v6, 1 }
  0x1f   : > { %8633 = vmatpush3.bf16.msra.mxu0 %v9919_v4  ;;  %409 = vst [vmem:[#allocation2 + $0x50] sm:$0xff] %v10362_v13  ;;  %410 = vst [vmem:[#allocation2 + $0x58] sm:$0xff] %v10365_v14  ;;  %v10373_v16 = vld [vmem:[%s10329_s16 + $0x48] sm:$0xff]  ;;  %v10378_v17 = vld [vmem:[%s10329_s16 + $0x50] sm:$0xff]  ;;  %v760_v46 = vpack.c.bf16 %v10365_v14, %v10362_v13  ;;  %v444_v4 = vadd.s32 64, %v10517_v60  ;;  %v448_v14 = vadd.s32 96, %v10517_v60 }
  0x20   : > { %8634 = vmatprep.subr.bf16.mxu0 %v9920_v5  ;;  %411 = vst [vmem:[#allocation2 + $0x60] sm:$0xff] %v10368_v15  ;;  %412 = vst [vmem:[#allocation2 + $0x68] sm:$0xff] %v10373_v16  ;;  %v10381_v18 = vld [vmem:[%s10329_s16 + $0x58] sm:$0xff]  ;;  %v10386_v19 = vld [vmem:[%s10329_s16 + $0x60] sm:$0xff]  ;;  %v761_v49 = vpack.c.bf16 %v10373_v16, %v10368_v15  ;;  %v450_v15 = vadd.s32 112, %v10517_v60  ;;  %v452_v16 = vadd.s32 128, %v10517_v60 }
  0x21   : > { %413 = vst [vmem:[#allocation2 + $0x70] sm:$0xff] %v10378_v17  ;;  %414 = vst [vmem:[#allocation2 + $0x78] sm:$0xff] %v10381_v18  ;;  %v10389_v20 = vld [vmem:[%s10329_s16 + $0x68] sm:$0xff]  ;;  %v10397_v22 = vld [vmem:[%s10329_s16 + $0x70] sm:$0xff]  ;;  %v762_v50 = vpack.c.bf16 %v10381_v18, %v10378_v17  ;;  %v10554_v17 = vadd.s32 144, %v10517_v60  ;;  %v10557_v18 = vadd.s32 160, %v10517_v60 }
  0x22   : > { %415 = vst [vmem:[#allocation2 + $0x80] sm:$0xff] %v10386_v19  ;;  %416 = vst [vmem:[#allocation2 + $0x88] sm:$0xff] %v10389_v20  ;;  %v10400_v23 = vld [vmem:[%s10329_s16 + $0x78] sm:$0xff]  ;;  %v10405_v24 = vld [vmem:[%s10329_s16 + $0x80] sm:$0xff]  ;;  %v763_v53 = vpack.c.bf16 %v10389_v20, %v10386_v19  ;;  %v478_v19 = vand.u32 15, %v446_v9  ;;  %v10560_v20 = vadd.s32 176, %v10517_v60 }
  0x23   : > { %8635 = vmatpush3.bf16.msra.mxu0 %v9920_v5  ;;  %417 = vst [vmem:[#allocation2 + $0x90] sm:$0xff] %v10397_v22  ;;  %418 = vst [vmem:[#allocation2 + $0x98] sm:$0xff] %v10400_v23  ;;  %v10408_v25 = vld [vmem:[%s10329_s16 + $0x88] sm:$0xff]  ;;  %v10416_v27 = vld [vmem:[%s10329_s16 + $0x90] sm:$0xff]  ;;  %v764_v54 = vpack.c.bf16 %v10400_v23, %v10397_v22  ;;  %vm10562_vm2 = vcmp.ge.s32.totalorder %v474_v11, 1  ;;  %v12752_v1 = vmov 0 }
  0x24   : > { %8636 = vmatprep.subr.bf16.mxu0 %v9921_v12  ;;  %419 = vst [vmem:[#allocation2 + $0xa0] sm:$0xff] %v10405_v24  ;;  %420 = vst [vmem:[#allocation2 + $0xa8] sm:$0xff] %v10408_v25  ;;  %v10419_v28 = vld [vmem:[%s10329_s16 + $0x98] sm:$0xff]  ;;  %v10423_v29 = vld [vmem:[%s10329_s16 + $0xa0] sm:$0xff]  ;;  %v765_v57 = vpack.c.bf16 %v10408_v25, %v10405_v24  ;;  %v480_v24 = vand.u32 15, %v448_v14  ;;  %v10573_v25 = vadd.s32 192, %v10517_v60 }
  0x25   : > { %421 = vst [vmem:[#allocation2 + $0xb0] sm:$0xff] %v10416_v27  ;;  %v10426_v30 = vld [vmem:[%s10329_s16 + $0xa8] sm:$0xff]  ;;  %422 = vst [vmem:[#allocation2 + $0xb8] sm:$0xff] %v10419_v28  ;;  %v10432_v31 = vld [vmem:[%s10329_s16 + $0xb0] sm:$0xff]  ;;  %v766_v58 = vpack.c.bf16 %v10419_v28, %v10416_v27  ;;  %v484_v27 = vand.u32 15, %v452_v16  ;;  %v486_v28 = vand.u32 15, %v10554_v17 }
  0x26   : > { %423 = vst [vmem:[#allocation2 + $0xc0] sm:$0xff] %v10423_v29  ;;  %424 = vst [vmem:[#allocation2 + $0xc8] sm:$0xff] %v10426_v30  ;;  %v10435_v32 = vld [vmem:[%s10329_s16 + $0xb8] sm:$0xff]  ;;  %v10438_v33 = vld [vmem:[%s10329_s16 + $0xc0] sm:$0xff]  ;;  %v767_v61 = vpack.c.bf16 %v10426_v30, %v10423_v29  ;;  %v488_v29 = vand.u32 15, %v10557_v18  ;;  %vm10590_vm6 = vcmp.ge.s32.totalorder %v478_v19, 1 }
  0x27   : > { %8637 = vmatpush3.bf16.msra.mxu0 %v9921_v12  ;;  %425 = vst [vmem:[#allocation2 + $0xd0] sm:$0xff] %v10432_v31  ;;  %426 = vst [vmem:[#allocation2 + $0xd8] sm:$0xff] %v10435_v32  ;;  %v10443_v34 = vld [vmem:[%s10329_s16 + $0xc8] sm:$0xff]  ;;  %v10451_v36 = vld [vmem:[%s10329_s16 + $0xd0] sm:$0xff]  ;;  %v768_v62 = vpack.c.bf16 %v10435_v32, %v10432_v31  ;;  %v476_v12 = vand.u32 15, %v444_v4  ;;  %v490_v31 = vand.u32 15, %v10560_v20 }
  0x28   : > { %8638 = vmatprep.subr.bf16.mxu0 %v9922_v21  ;;  %427 = vst [vmem:[#allocation2 + $0xe0] sm:$0xff] %v10438_v33  ;;  %428 = vst [vmem:[#allocation2 + $0xe8] sm:$0xff] %v10443_v34  ;;  %v10454_v37 = vld [vmem:[%s10329_s16 + $0xd8] sm:$0xff]  ;;  %v10459_v38 = vld [vmem:[%s10329_s16 + $0xe0] sm:$0xff]  ;;  %v769_v5 = vpack.c.bf16 %v10443_v34, %v10438_v33  ;;  %v10586_v32 = vadd.s32 208, %v10517_v60  ;;  %vm10602_vm8 = vcmp.ge.s32.totalorder %v480_v24, 1 }
  0x29   : > { %429 = vst [vmem:[#allocation2 + $0xf0] sm:$0xff] %v10451_v36  ;;  %430 = vst [vmem:[#allocation2 + $0xf8] sm:$0xff] %v10454_v37  ;;  %v10462_v39 = vld [vmem:[%s10329_s16 + $0xe8] sm:$0xff]  ;;  %v770_v7 = vpack.c.bf16 %v10454_v37, %v10451_v36  ;;  %v401_v10 = vld [vmem:[%s10329_s16 + $0xf0] sm:$0xff]  ;;  %vm10566_vm3 = vcmp.ge.s32.totalorder %v476_v12, 1  ;;  %v492_v36 = vand.u32 15, %v10573_v25 }
  0x2a   : > { %431 = vst [vmem:[#allocation2 + $0x100] sm:$0xff] %v10459_v38  ;;  %432 = vst [vmem:[#allocation2 + $0x108] sm:$0xff] %v10462_v39  ;;  %v771_v23 = vpack.c.bf16 %v10462_v39, %v10459_v38  ;;  %v503_v33 = vld [vmem:[#allocation2 + $0x27] sm:$0xff]  ;;  %v502_v34 = vld [vmem:[#allocation2 + $0x1f] sm:$0xff]  ;;  %v494_v39 = vand.u32 15, %v10586_v32  ;;  %vm10648_vm12 = vcmp.ge.s32.totalorder %v484_v27, 1 }
  0x2b   : > { %8639 = vmatpush3.bf16.msra.mxu0 %v9922_v21  ;;  %12724 = vst [vmem:[#allocation7_spill] sm:$0xff] %v10527_v0  ;;  %12725 = vst [vmem:[#allocation8_spill] sm:$0xff] %v10531_v3  ;;  %v505_v37 = vld [vmem:[#allocation2 + $0x37] sm:$0xff]  ;;  %v510_v4 = vld [vmem:[#allocation2 + $0x5f] sm:$0xff]  ;;  %vm10683_vm15 = vcmp.ge.s32.totalorder %v486_v28, 1  ;;  %v12760_v16 = vmov 0 }
  0x2c   : > { %8640 = vmatprep.subr.bf16.mxu0 %v9923_v26  ;;  %433 = vst [vmem:[#allocation2 + $0x110] sm:$0xff] %v401_v10  ;;  %vm10580_vm5 = vmpackc.low %vm12714_vm4, %vm10539_vm0  ;;  %v512_v6 = vld [vmem:[#allocation2 + $0x6f] sm:$0xff]  ;;  %v9937_v8 = vld [vmem:[%s12642_s1 + $0xa0] sm:$0xff]   ;;  %vm10687_vm0 = vcmp.ge.s32.totalorder %v488_v29, 1  ;;  %v12765_v29 = vmov 0  ;;  %v12787_v20 = vmov 0 }
  0x2d   : > { %vm10598_vm7 = vmpackc.low %vm12714_vm4, %vm10546_vm1  ;;  %v9938_v13 = vld [vmem:[%s12642_s1 + $0xa8] sm:$0xff]   ;;  %v514_v17 = vld [vmem:[#allocation2 + $0x7f] sm:$0xff]  ;;  %v457_v38 = vadd.s32 168, %v10517_v60  ;;  %v12805_v32 = vmov 0 }
  0x2e   : > { %vm10622_vm9 = vmpackc.low %vm12714_vm4, %vm10562_vm2  ;;  %v515_v18 = vld [vmem:[#allocation2 + $0x87] sm:$0xff]  ;;  %v516_v19 = vld [vmem:[#allocation2 + $0x8f] sm:$0xff] }
  0x2f   : > { %8641 = vmatpush3.bf16.msra.mxu0 %v9923_v26  ;;  %v482_v26 = vand.u32 15, %v450_v15  ;;  %vm10629_vm10 = vmpackc.low %vm12714_vm4, %vm10566_vm3  ;;  %v12758_v15 = vmov 0  ;;  %v517_v21 = vld [vmem:[#allocation2 + $0x97] sm:$0xff]  ;;  %vm10726_vm3 = vcmp.ge.s32.totalorder %v490_v31, 1  ;;  %v12769_v31 = vmov 0  ;;  %v1218_v59 = vld [vmem:[#allocation2 + $0x69] sm:$0xff] }
  0x30   : > { %8642 = vmatprep.subr.bf16.mxu0 %v9924_v35  ;;  %vm10662_vm13 = vmpackc.low %vm12714_vm4, %vm10590_vm6  ;;  %v9939_v22 = vld [vmem:[%s12642_s1 + $0xb0] sm:$0xff]   ;;  %v9940_v27 = vld [vmem:[%s12642_s1 + $0xb8] sm:$0xff]   ;;  %v10735_v28 = vpack.c.bf16 %v517_v21, %v516_v19  ;;  %v445_v19 = vadd.s32 72, %v10517_v60 }
  0x31   : > { %vm10644_vm11 = vcmp.ge.s32.totalorder %v482_v26, 1  ;;  %vm10669_vm14 = vmpackc.low %vm12714_vm4, %vm10602_vm8  ;;  %v10730_v26 = vpack.c.bf16 %v515_v18, %v514_v17  ;;  %vm10746_vm8 = vcmp.ge.s32.totalorder %v492_v36, 1  ;;  %v521_v25 = vld [vmem:[#allocation2 + $0xb7] sm:$0xff]  ;;  %v1214_v18 = vld [vmem:[#allocation2 + $0x49] sm:$0xff] }
  0x32   : > { %v12753_v1 = vsel %vm10669_vm14, 4294967295, %v12752_v1  ;;  %vm10701_vm1 = vmpackc.low %vm12714_vm4, %vm10644_vm11  ;;  %v10850_v21 = vld [vmem:[%s10329_s16 + $0xf8] sm:$0xff]  ;;  %v477_v24 = vand.u32 15, %v445_v19  ;;  %v12797_v19 = vmov 0  ;;  %v1222_v3 = vld [vmem:[#allocation2 + $0x89] sm:$0xff]  ;;  %s324_s16 = scalar_lea.vmem [#allocation3], %s323_s27 }
  0x33   : > { %8643 = vmatpush3.bf16.msra.mxu0 %v9924_v35  ;;  %v504_v35 = vld [vmem:[#allocation2 + $0x2f] sm:$0xff]  ;;  %v12759_v15 = vsel %vm10701_vm1, 4294967295, %v12758_v15  ;;  %vm10708_vm2 = vmpackc.low %vm12714_vm4, %vm10648_vm12  ;;  %vm10771_vm12 = vcmp.ge.s32.totalorder %v494_v39, 1  ;;  %v522_v39 = vld [vmem:[#allocation2 + $0xbf] sm:$0xff]  ;;  %434 = vst [vmem:[#allocation2 + $0x118] sm:$0xff] %v10850_v21  ;;  %s7059_s17 = sshll.u32 %s324_s16, 4  ;;  %s12601_s17 = int_to_ptr.vmem [resolvable:$true] %s7059_s17 }
  0x34   : > { %8676 = vmatprep.subr.bf16.mxu0 %v9925_v40  ;;  %v12761_v16 = vsel %vm10708_vm2, 4294967295, %v12760_v16  ;;  %vm10740_vm6 = vmpackc.low %vm12714_vm4, %vm10683_vm15  ;;  %v1228_v63 = vld [vmem:[#allocation2 + $0xb9] sm:$0xff]  ;;  %s10146_s13 = scalar_lea.vmem %s12601_s17, 16  ;;  %p10153_p0 = scmp.lt.s32.totalorder %s12601_s17, %s10151_s26 }
  0x35   : > { %v12766_v29 = vsel %vm10740_vm6, 4294967295, %v12765_v29  ;;  %vm10753_vm11 = vmpackc.low %vm12714_vm4, %vm10687_vm0  ;;  %v9976_v30 = vld [vmem:[%s12642_s1 + $0x1d8] sm:$0xff]   ;;  %p10147_p11 = scmp.ne.s32.totalorder %s12601_s17, %s10146_s13  ;;  %p10154_p1 = scmp.lt.s32.totalorder %s10152_s28, %s10146_s13 }
  0x36   : > { %8645 = vmatmul.mubr.bf16.vlgmr.msra.gmra.mrb[0].mxu0 %v757_v41  ;;  %v12770_v31 = vsel %vm10753_vm11, 4294967295, %v12769_v31  ;;  %vm10782_vm15 = vmpackc.low %vm12714_vm4, %vm10726_vm3 }
  0x37   : > { %8677 = vmatpush3.bf16.msra.mxu0 %v9925_v40  ;;  %8648 = vmatprep.mubr.bf16.mxu0 %v758_v42  ;;  %v10607_v42 = vadd.s32 224, %v10517_v60  ;;  %vm10799_vm3 = vmpackc.low %vm12714_vm4, %vm10746_vm8  ;;  %v2601_v40 = vld [vmem:[#allocation2 + $0x7f] sm:$0xff]  ;;  %p10148_p12 = pnand %p10147_p11, %p10304_p5  ;;  %p10155_p2 = por %p10154_p1, %p10153_p0 }
  0x38   : > { %8678 = vmatprep.subr.bf16.mxu0 %v9926_v43  ;;  %vm10819_vm8 = vmpackc.low %vm12714_vm4, %vm10771_vm12 }
  0x39   : > { %p10149_p13 = pneg %p10148_p12 }
  0x3b   : > { %8679 = vmatpush3.bf16.msra.mxu0 %v9926_v43  ;;  %v10610_v43 = vadd.s32 240, %v10517_v60  ;;  %p10156_p3 = pnand %p10155_p2, %p10149_p13 }
  0x3c   : > { %8680 = vmatprep.subr.bf16.mxu0 %v9927_v44 }
  0x3d   : > { %v498_v9 = vand.u32 15, %v10610_v43  ;;  %v530_v43 = vld [vmem:[#allocation2 + $0xff] sm:$0xff] }
  0x3e   : > { %8649 = vmatmul.mubr.bf16.gmra.mrb[4].mxu0 %v759_v45  ;;  %v9934_v45 = vld [vmem:[%s12642_s1 + $0x88] sm:$0xff]  }
  0x3f   : > { %8652 = vmatprep.mubr.bf16.mxu0 %v760_v46  ;;  %8681 = vmatpush3.bf16.msra.mxu0 %v9927_v44  ;;  %v10612_v44 = vpack.c.bf16 %v503_v33, %v502_v34  ;;  %v10617_v46 = vpack.c.bf16 %v505_v37, %v504_v35  ;;  %v518_v33 = vld [vmem:[#allocation2 + $0x9f] sm:$0xff]  ;;  %v519_v34 = vld [vmem:[#allocation2 + $0xa7] sm:$0xff]  ;;  %v520_v35 = vld [vmem:[#allocation2 + $0xaf] sm:$0xff]  ;;  %vm594_vm12 = vcmp.ge.s32.totalorder %v498_v9, 1  ;;  %v447_v9 = vadd.s32 88, %v10517_v60 }
  0x40   : > { %8682 = vmatprep.subr.bf16.mxu0 %v9928_v47  ;;  %v10764_v37 = vld [vmem:[%s12642_s1 + $0xc0] sm:$0xff]   ;;  %v10775_v41 = vpack.c.bf16 %v519_v34, %v518_v33  ;;  %v449_v33 = vadd.s32 104, %v10517_v60 }
  0x41   : > { %v1209_v34 = vld [vmem:[#allocation2 + $0x21] sm:$0xff] }
  0x43   : > { %8683 = vmatpush3.bf16.msra.mxu0 %v9928_v47  ;;  %v9978_v47 = vld [vmem:[%s12642_s1 + $0x1e8] sm:$0xff]  }
  0x44   : > { %8684 = vmatprep.subr.bf16.mxu0 %v9929_v48 }
  0x46   : > { %8653 = vmatmul.mubr.bf16.gmra.mrb[8].mxu0 %v761_v49  ;;  %v506_v49 = vld [vmem:[#allocation2 + $0x3f] sm:$0xff] }
  0x47   : > { %8656 = vmatprep.mubr.bf16.mxu0 %v762_v50  ;;  %8685 = vmatpush3.bf16.msra.mxu0 %v9929_v48  ;;  %v507_v50 = vld [vmem:[#allocation2 + $0x47] sm:$0xff]  ;;  %v2605_v48 = vld [vmem:[#allocation2 + $0x9f] sm:$0xff] }
  0x48   : > { %8686 = vmatprep.subr.bf16.mxu0 %v9930_v51 }
  0x4b   : > { %8687 = vmatpush3.bf16.msra.mxu0 %v9930_v51  ;;  %v508_v51 = vld [vmem:[#allocation2 + $0x4f] sm:$0xff] }
  0x4c   : > { %8688 = vmatprep.subr.bf16.mxu0 %v9931_v52 }
  0x4e   : > { %8657 = vmatmul.mubr.bf16.gmra.mrb[12].mxu0 %v763_v53  ;;  %v9935_v53 = vld [vmem:[%s12642_s1 + $0x90] sm:$0xff]  }
  0x4f   : > { %8660 = vmatprep.mubr.bf16.mxu0 %v764_v54  ;;  %8689 = vmatpush3.bf16.msra.mxu0 %v9931_v52  ;;  %v509_v52 = vld [vmem:[#allocation2 + $0x57] sm:$0xff]  ;;  %v496_v54 = vand.u32 15, %v10607_v42  ;;  %v12777_v42 = vmov 0 }
  0x50   : > { %8690 = vmatprep.subr.bf16.mxu0 %v9932_v55  ;;  %v12778_v42 = vsel %vm10799_vm3, 4294967295, %v12777_v42 }
  0x51   : > { %vm10788_vm0 = vcmp.ge.s32.totalorder %v496_v54, 1  ;;  %v10807_v54 = vadd.s32 56, %v10517_v60 }
  0x53   : > { %8691 = vmatpush3.bf16.msra.mxu0 %v9932_v55  ;;  %12780 = vst [vmem:[#allocation11_spill] sm:$0xff] %v10807_v54  ;;  %v475_v11 = vand.u32 15, %v10807_v54  ;;  %v1221_v54 = vld [vmem:[#allocation2 + $0x81] sm:$0xff] }
  0x54   : > { %8724 = vmatprep.subr.bf16.mxu0 %v10509_v56  ;;  %v11015_v0 = vpack.c.bf16 %v1222_v3, %v1221_v54  ;;  %v12824_v3 = vmov 0  ;;  %v1227_v54 = vld [vmem:[#allocation2 + $0xb1] sm:$0xff] }
  0x56   : > { %8661 = vmatmul.mubr.bf16.gmra.mrb[16].mxu0 %v765_v57 }
  0x57   : > { %8664 = vmatprep.mubr.bf16.mxu0 %v766_v58  ;;  %v10652_v58 = vpack.c.bf16 %v507_v50, %v506_v49  ;;  %v12773_v49 = vmov 0  ;;  %v523_v50 = vld [vmem:[#allocation2 + $0xc7] sm:$0xff] }
  0x58   : > { %v12774_v49 = vsel %vm10782_vm15, 4294967295, %v12773_v49  ;;  %v10812_v55 = vpack.c.bf16 %v523_v50, %v522_v39  ;;  %v479_v39 = vand.u32 15, %v447_v9  ;;  %v1212_v50 = vld [vmem:[#allocation2 + $0x39] sm:$0xff]  ;;  %v1215_v9 = vld [vmem:[#allocation2 + $0x51] sm:$0xff] }
  0x5e   : > { %8665 = vmatmul.mubr.bf16.gmra.mrb[20].mxu0 %v767_v61  ;;  %v9936_v61 = vld [vmem:[%s12642_s1 + $0x98] sm:$0xff]  }
  0x5f   : > { %8668 = vmatprep.mubr.bf16.mxu0 %v768_v62  ;;  %v12750_v62 = vmov 0 }
  0x60   : > { %v12751_v62 = vsel %vm10662_vm13, 4294967295, %v12750_v62 }
  0x66   : > { %8669 = vmatmul.mubr.bf16.gmra.mrb[24].mxu0 %v769_v5  ;;  %v511_v5 = vld [vmem:[#allocation2 + $0x67] sm:$0xff] }
  0x67   : > { %8672 = vmatprep.mubr.bf16.mxu0 %v770_v7  ;;  %v513_v7 = vld [vmem:[#allocation2 + $0x77] sm:$0xff]  ;;  %v10691_v12 = vpack.c.bf16 %v511_v5, %v510_v4  ;;  %v526_v4 = vld [vmem:[#allocation2 + $0xdf] sm:$0xff]  ;;  %v527_v5 = vld [vmem:[#allocation2 + $0xe7] sm:$0xff] }
  0x68   : > { %v10696_v14 = vpack.c.bf16 %v513_v7, %v512_v6  ;;  %v528_v6 = vld [vmem:[#allocation2 + $0xef] sm:$0xff]  ;;  %v529_v7 = vld [vmem:[#allocation2 + $0xf7] sm:$0xff] }
  0x69   : > { %v10842_v17 = vpack.c.bf16 %v529_v7, %v528_v6  ;;  %v9942_v7 = vld [vmem:[%s12642_s1 + $0xc8] sm:$0xff]  }
  0x6e   : > { %8673 = vmatmul.mubr.bf16.gmra.mrb[28].mxu0 %v771_v23  ;;  %v10719_v23 = vadd.s32 24, %v10517_v60 }
  0x6f   : > { %8692 = vmatprep.mubr.bf16.mxu0 %v12669_v2 }
  0x70   : > { %12762 = vst [vmem:[#allocation9_spill] sm:$0xff] %v10719_v23  ;;  %v471_v36 = vand.u32 15, %v10719_v23 }
  0x76   : > { %8693 = vmatmul.mubr.msk.bf16.vlgmr.msra.gmra.mrb[0].mxu0 %vm10580_vm5, %v10612_v44 }
  0x77   : > { %8725 = vmatpush3.bf16.msra.mxu0 %v10509_v56  ;;  %8696 = vmatprep.mubr.msk.bf16.mxu0 %vm10598_vm7, %v10617_v46  ;;  %v10657_v56 = vpack.c.bf16 %v509_v52, %v508_v51  ;;  %v524_v51 = vld [vmem:[#allocation2 + $0xcf] sm:$0xff]  ;;  %v525_v52 = vld [vmem:[#allocation2 + $0xd7] sm:$0xff] }
  0x78   : > { %8726 = vmatprep.subr.bf16.mxu0 %v9934_v45  ;;  %v10814_v57 = vpack.c.bf16 %v525_v52, %v524_v51  ;;  %v12795_v51 = vmov 0  ;;  %v481_v52 = vand.u32 15, %v449_v33 }
  0x7b   : > { %8727 = vmatpush3.bf16.msra.mxu0 %v9934_v45  ;;  %v10777_v45 = vpack.c.bf16 %v521_v25, %v520_v35  ;;  %v1210_v35 = vld [vmem:[#allocation2 + $0x29] sm:$0xff]  ;;  %v12789_v25 = vmov 0 }
  0x7c   : > { %8728 = vmatprep.subr.bf16.mxu0 %v9935_v53  ;;  %v10894_v6 = vpack.c.bf16 %v1210_v35, %v1209_v34  ;;  %v455_v35 = vadd.s32 152, %v10517_v60 }
  0x7e   : > { %8697 = vmatmul.mubr.msk.bf16.gmra.mrb[4].mxu0 %vm10622_vm9, %v10652_v58 }
  0x7f   : > { %8700 = vmatprep.mubr.msk.bf16.mxu0 %vm10629_vm10, %v10657_v56  ;;  %8729 = vmatpush3.bf16.msra.mxu0 %v9935_v53  ;;  %v10804_v53 = vadd.s32 40, %v10517_v60 }
  0x80   : > { %8730 = vmatprep.subr.bf16.mxu0 %v9936_v61 }
  0x81   : > { %12779 = vst [vmem:[#allocation10_spill] sm:$0xff] %v10804_v53  ;;  %v473_v10 = vand.u32 15, %v10804_v53  ;;  %v463_v53 = vadd.s32 216, %v10517_v60 }
  0x83   : > { %8731 = vmatpush3.bf16.msra.mxu0 %v9936_v61  ;;  %v12781_v61 = vmov 0 }
  0x84   : > { %8732 = vmatprep.subr.bf16.mxu0 %v9937_v8  ;;  %v12782_v61 = vsel %vm10819_vm8, 4294967295, %v12781_v61 }
  0x86   : > { %8701 = vmatmul.mubr.msk.bf16.gmra.mrb[8].mxu0 %vm10662_vm13, %v10691_v12 }
  0x87   : > { %8704 = vmatprep.mubr.msk.bf16.mxu0 %vm10669_vm14, %v10696_v14  ;;  %8733 = vmatpush3.bf16.msra.mxu0 %v9937_v8  ;;  %v12783_v8 = vmov 0 }
  0x88   : > { %8734 = vmatprep.subr.bf16.mxu0 %v9938_v13 }
  0x8b   : > { %8735 = vmatpush3.bf16.msra.mxu0 %v9938_v13  ;;  %v10840_v13 = vpack.c.bf16 %v527_v5, %v526_v4  ;;  %v451_v4 = vadd.s32 120, %v10517_v60  ;;  %v453_v5 = vadd.s32 136, %v10517_v60 }
  0x8c   : > { %8736 = vmatprep.subr.bf16.mxu0 %v9939_v22 }
  0x8d   : > { %v483_v34 = vand.u32 15, %v451_v4  ;;  %v1217_v4 = vld [vmem:[#allocation2 + $0x61] sm:$0xff] }
  0x8e   : > { %8705 = vmatmul.mubr.msk.bf16.gmra.mrb[12].mxu0 %vm10701_vm1, %v10730_v26 }
  0x8f   : > { %8708 = vmatprep.mubr.msk.bf16.mxu0 %vm10708_vm2, %v10735_v28  ;;  %8737 = vmatpush3.bf16.msra.mxu0 %v9939_v22  ;;  %v531_v22 = vld [vmem:[#allocation2 + $0x107] sm:$0xff] }
  0x90   : > { %8738 = vmatprep.subr.bf16.mxu0 %v9940_v27 }
  0x93   : > { %8739 = vmatpush3.bf16.msra.mxu0 %v9940_v27  ;;  %v10860_v27 = vpack.c.bf16 %v531_v22, %v530_v43  ;;  %v1216_v22 = vld [vmem:[#allocation2 + $0x59] sm:$0xff]  ;;  %v12811_v43 = vmov 0 }
  0x94   : > { %8772 = vmatprep.subr.bf16.mxu0 %v10764_v37 }
  0x96   : > { %8709 = vmatmul.mubr.msk.bf16.gmra.mrb[16].mxu0 %vm10740_vm6, %v10775_v41 }
  0x97   : > { %8712 = vmatprep.mubr.msk.bf16.mxu0 %vm10753_vm11, %v10777_v45  ;;  %vm10829_vm11 = vmpackc.low %vm12714_vm4, %vm10788_vm0 }
  0x98   : > { %v12784_v8 = vsel %vm10829_vm11, 4294967295, %v12783_v8  ;;  %vm10863_vm0 = vmpackc.low %vm12714_vm4, %vm594_vm12  ;;  %vm10878_vm12 = vcmp.lt.s32.totalorder %v475_v11, 15  ;;  %v1213_v11 = vld [vmem:[#allocation2 + $0x41] sm:$0xff] }
  0x99   : > { %v12788_v20 = vsel %vm10863_vm0, 4294967295, %v12787_v20 }
  0x9e   : > { %8713 = vmatmul.mubr.msk.bf16.gmra.mrb[20].mxu0 %vm10782_vm15, %v10812_v55  ;;  %vm10844_vm15 = vcmp.lt.s32.totalorder %v471_v36, 15  ;;  %v1211_v36 = vld [vmem:[#allocation2 + $0x31] sm:$0xff] }
  0x9f   : > { %8716 = vmatprep.mubr.msk.bf16.mxu0 %vm10799_vm3, %v10814_v57  ;;  %vm1244_vm3 = vcmp.lt.s32.totalorder %v473_v10, 15  ;;  %v10899_v10 = vpack.c.bf16 %v1212_v50, %v1211_v36  ;;  %v485_v36 = vand.u32 15, %v453_v5  ;;  %v9944_v50 = vld [vmem:[%s12642_s1 + $0xd8] sm:$0xff]  }
  0xa0   : > { %v1219_v5 = vld [vmem:[#allocation2 + $0x71] sm:$0xff] }
  0xa1   : > { %vm10956_vm6 = vcmp.lt.s32.totalorder %v485_v36, 15  ;;  %v459_v36 = vadd.s32 184, %v10517_v60 }
  0xa6   : > { %8717 = vmatmul.mubr.msk.bf16.gmra.mrb[24].mxu0 %vm10819_vm8, %v10840_v13  ;;  %vm10882_vm8 = vcmp.lt.s32.totalorder %v477_v24, 15  ;;  %v9943_v24 = vld [vmem:[%s12642_s1 + $0xd0] sm:$0xff]  }
  0xa7   : > { %8720 = vmatprep.mubr.msk.bf16.mxu0 %vm10829_vm11, %v10842_v17  ;;  %vm10874_vm11 = vmpackc.low %vm10844_vm15, %vm12714_vm4 }
  0xa8   : > { %v12790_v25 = vsel %vm10874_vm11, 4294967295, %v12789_v25  ;;  %vm10907_vm15 = vmpackc.low %vm10878_vm12, %vm12714_vm4  ;;  %vm10922_vm12 = vcmp.lt.s32.totalorder %v481_v52, 15  ;;  %v10940_v52 = vpack.c.bf16 %v1216_v22, %v1215_v9  ;;  %v487_v9 = vand.u32 15, %v455_v35  ;;  %v9945_v22 = vld [vmem:[%s12642_s1 + $0xe0] sm:$0xff]  }
  0xa9   : > { %v12798_v19 = vsel %vm10907_vm15, 4294967295, %v12797_v19  ;;  %v461_v35 = vadd.s32 200, %v10517_v60 }
  0xae   : > { %8721 = vmatmul.mubr.msk.bf16.gmra.mrb[28].mxu0 %vm10863_vm0, %v10860_v27  ;;  %vm10888_vm0 = vmpackc.low %vm1244_vm3, %vm12714_vm4  ;;  %vm10911_vm3 = vcmp.lt.s32.totalorder %v479_v39, 15  ;;  %v10935_v39 = vpack.c.bf16 %v1214_v18, %v1213_v11  ;;  %v1220_v11 = vld [vmem:[#allocation2 + $0x79] sm:$0xff] }
  0xaf   : > { %8740 = vmatprep.mubr.bf16.mxu0 %v12669_v2  ;;  %v12796_v51 = vsel %vm10888_vm0, 4294967295, %v12795_v51  ;;  %v10975_v2 = vpack.c.bf16 %v1218_v59, %v1217_v4  ;;  %v10980_v33 = vpack.c.bf16 %v1220_v11, %v1219_v5  ;;  %v12813_v59 = vmov 0  ;;  %v1224_v4 = vld [vmem:[#allocation2 + $0x99] sm:$0xff] }
  0xb0   : > { %v491_v11 = vand.u32 15, %v459_v36  ;;  %v465_v36 = vadd.s32 232, %v10517_v60  ;;  %v9948_v18 = vld [vmem:[%s12642_s1 + $0xf8] sm:$0xff]  }
  0xb6   : > { %8741 = vmatmul.mubr.msk.bf16.vlgmr.msra.gmra.mrb[0].mxu0 %vm10874_vm11, %v10894_v6  ;;  %vm10930_vm11 = vmpackc.low %vm10882_vm8, %vm12714_vm4 }
  0xb7   : > { %8773 = vmatpush3.bf16.msra.mxu0 %v10764_v37  ;;  %8744 = vmatprep.mubr.msk.bf16.mxu0 %vm10888_vm0, %v10899_v10  ;;  %v12803_v37 = vmov 0  ;;  %vm10948_vm8 = vmpackc.low %vm10911_vm3, %vm12714_vm4  ;;  %vm10952_vm0 = vcmp.lt.s32.totalorder %v483_v34, 15  ;;  %v489_v34 = vand.u32 15, %v457_v38  ;;  %v1223_v38 = vld [vmem:[#allocation2 + $0x91] sm:$0xff] }
  0xb8   : > { %8774 = vmatprep.subr.bf16.mxu0 %v9942_v7  ;;  %v12804_v37 = vsel %vm10930_vm11, 4294967295, %v12803_v37  ;;  %v12806_v32 = vsel %vm10948_vm8, 4294967295, %v12805_v32  ;;  %vm10966_vm3 = vmpackc.low %vm10922_vm12, %vm12714_vm4  ;;  %v11020_v23 = vpack.c.bf16 %v1224_v4, %v1223_v38  ;;  %v12829_v4 = vmov 0 }
  0xb9   : > { %v12812_v43 = vsel %vm10966_vm3, 4294967295, %v12811_v43  ;;  %vm10988_vm12 = vmpackc.low %vm10952_vm0, %vm12714_vm4 }
  0xba   : > { %v12814_v59 = vsel %vm10988_vm12, 4294967295, %v12813_v59  ;;  %vm11006_vm0 = vmpackc.low %vm10956_vm6, %vm12714_vm4  ;;  %12823 = vst [vmem:[#allocation14_spill] sm:$0xff] %v11020_v23 }
  0xbb   : > { %8775 = vmatpush3.bf16.msra.mxu0 %v9942_v7  ;;  %12815 = vst [vmem:[#allocation12_spill] sm:$0xff] %v12814_v59  ;;  %v12820_v7 = vmov 0  ;;  %v467_v59 = vadd.s32 248, %v10517_v60 }
  0xbc   : > { %8776 = vmatprep.subr.bf16.mxu0 %v9943_v24  ;;  %v12821_v7 = vsel %vm11006_vm0, 4294967295, %v12820_v7 }
  0xbd   : > { %12822 = vst [vmem:[#allocation13_spill] sm:$0xff] %v12821_v7 }
  0xbe   : > { %8745 = vmatmul.mubr.msk.bf16.gmra.mrb[4].mxu0 %vm10907_vm15, %v10935_v39  ;;  %vm10996_vm15 = vcmp.lt.s32.totalorder %v489_v34, 15  ;;  %v9947_v34 = vld [vmem:[%s12642_s1 + $0xf0] sm:$0xff]  }
  0xbf   : > { %8748 = vmatprep.mubr.msk.bf16.mxu0 %vm10930_vm11, %v10940_v52  ;;  %8777 = vmatpush3.bf16.msra.mxu0 %v9943_v24  ;;  %v9946_v24 = vld [vmem:[%s12642_s1 + $0xe8] sm:$0xff]   ;;  %vm10992_vm11 = vcmp.lt.s32.totalorder %v487_v9, 15  ;;  %v493_v9 = vand.u32 15, %v461_v35 }
  0xc0   : > { %8778 = vmatprep.subr.bf16.mxu0 %v9944_v50  ;;  %v1226_v35 = vld [vmem:[#allocation2 + $0xa9] sm:$0xff]  ;;  %vm11028_vm6 = vmpackc.low %vm10992_vm11, %vm12714_vm4 }
  0xc1   : > { %v12825_v3 = vsel %vm11028_vm6, 4294967295, %v12824_v3  ;;  %vm11046_vm11 = vcmp.lt.s32.totalorder %v493_v9, 15  ;;  %v1230_v9 = vld [vmem:[#allocation2 + $0xc9] sm:$0xff] }
  0xc2   : > { %12826 = vst [vmem:[#allocation15_spill] sm:$0xff] %v12825_v3  ;;  %v1233_v3 = vld [vmem:[#allocation2 + $0xe1] sm:$0xff] }
  0xc3   : > { %8779 = vmatpush3.bf16.msra.mxu0 %v9944_v50  ;;  %v11056_v50 = vpack.c.bf16 %v1228_v63, %v1227_v54  ;;  %v12837_v63 = vmov 0 }
  0xc4   : > { %8780 = vmatprep.subr.bf16.mxu0 %v9945_v22 }
  0xc6   : > { %8749 = vmatmul.mubr.msk.bf16.gmra.mrb[8].mxu0 %vm10948_vm8, %v10975_v2 }
  0xc7   : > { %8752 = vmatprep.mubr.msk.bf16.mxu0 %vm10966_vm3, %v10980_v33  ;;  %8781 = vmatpush3.bf16.msra.mxu0 %v9945_v22  ;;  %v1225_v22 = vld [vmem:[#allocation2 + $0xa1] sm:$0xff]  ;;  %vm11032_vm3 = vcmp.lt.s32.totalorder %v491_v11, 15  ;;  %v497_v11 = vand.u32 15, %v465_v36  ;;  %v1231_v36 = vld [vmem:[#allocation2 + $0xd1] sm:$0xff] }
  0xc8   : > { %8782 = vmatprep.subr.bf16.mxu0 %v9946_v24  ;;  %v11054_v7 = vpack.c.bf16 %v1226_v35, %v1225_v22  ;;  %v1232_v22 = vld [vmem:[#allocation2 + $0xd9] sm:$0xff]  ;;  %v468_v35 = vand.u32 15, %v10517_v60 }
  0xc9   : > { %vm1268_vm8 = vcmp.lt.s32.totalorder %v497_v11, 15  ;;  %v11081_v38 = vpack.c.bf16 %v1232_v22, %v1231_v36  ;;  %v1237_v22 = vld [vmem:[#allocation2 + $0x101] sm:$0xff] }
  0xca   : > { %vm564_vm2 = vcmp.ge.s32.totalorder %v468_v35, 1  ;;  %v2597_v36 = vld [vmem:[#allocation2 + $0x5f] sm:$0xff] }
  0xcb   : > { %8783 = vmatpush3.bf16.msra.mxu0 %v9946_v24  ;;  %v495_v24 = vand.u32 15, %v463_v53  ;;  %v9949_v53 = vld [vmem:[%s12642_s1 + $0x100] sm:$0xff]  }
  0xcc   : > { %8784 = vmatprep.subr.bf16.mxu0 %v9947_v34 }
  0xce   : > { %8753 = vmatmul.mubr.msk.bf16.gmra.mrb[12].mxu0 %vm10988_vm12, %v11015_v0  ;;  %vm11042_vm12 = vmpackc.low %vm10996_vm15, %vm12714_vm4 }
  0xcf   : > { %8756 = vmatprep.mubr.msk.bf16.mxu0 %vm11006_vm0, %v11020_v23  ;;  %v12830_v4 = vsel %vm11042_vm12, 4294967295, %v12829_v4  ;;  %8785 = vmatpush3.bf16.msra.mxu0 %v9947_v34  ;;  %v1229_v23 = vld [vmem:[#allocation2 + $0xc1] sm:$0xff]  ;;  %vm11064_vm15 = vmpackc.low %vm11032_vm3, %vm12714_vm4  ;;  %v12834_v34 = vmov 0 }
  0xd0   : > { %12831 = vst [vmem:[#allocation16_spill] sm:$0xff] %v12830_v4  ;;  %8786 = vmatprep.subr.bf16.mxu0 %v9948_v18  ;;  %v12835_v34 = vsel %vm11064_vm15, 4294967295, %v12834_v34  ;;  %vm11074_vm0 = vmpackc.low %vm11046_vm11, %vm12714_vm4  ;;  %v11079_v54 = vpack.c.bf16 %v1230_v9, %v1229_v23  ;;  %v1234_v4 = vld [vmem:[#allocation2 + $0xe9] sm:$0xff]  ;;  %v1236_v23 = vld [vmem:[#allocation2 + $0xf9] sm:$0xff] }
  0xd1   : > { %12836 = vst [vmem:[#allocation17_spill] sm:$0xff] %v12835_v34  ;;  %v12838_v63 = vsel %vm11074_vm0, 4294967295, %v12837_v63  ;;  %vm11095_vm11 = vmpackc.low %vm1268_vm8, %vm12714_vm4  ;;  %v11099_v11 = vpack.c.bf16 %v1234_v4, %v1233_v3  ;;  %v9950_v4 = vld [vmem:[%s12642_s1 + $0x108] sm:$0xff]  }
  0xd2   : > { %12839 = vst [vmem:[#allocation18_spill] sm:$0xff] %v12838_v63  ;;  %v1238_v63 = vld [vmem:[#allocation2 + $0x109] sm:$0xff]  ;;  %vm11112_vm8 = vmpackc.low %vm12714_vm4, %vm564_vm2  ;;  %vm12848_vm2 = vnez %v12761_v16 }
  0xd3   : > { %8787 = vmatpush3.bf16.msra.mxu0 %v9948_v18  ;;  %v499_v18 = vand.u32 15, %v467_v59  ;;  %v11119_v3 = vpack.c.bf16 %v1238_v63, %v1237_v22  ;;  %v9951_v63 = vld [vmem:[%s12642_s1 + $0x110] sm:$0xff]   ;;  %v1955_v22 = vld [vmem:[#allocation2 + $0x60] sm:$0xff]  ;;  %v10213_v59 = vmov 1.0  }
  0xd4   : > { %8820 = vmatprep.subr.bf16.mxu0 %v9949_v53  ;;  %v2598_v34 = vld [vmem:[#allocation2 + $0x67] sm:$0xff] }
  0xd6   : > { %8757 = vmatmul.mubr.msk.bf16.gmra.mrb[16].mxu0 %vm11028_vm6, %v11054_v7  ;;  %vm1266_vm6 = vcmp.lt.s32.totalorder %v495_v24, 15  ;;  %v1235_v24 = vld [vmem:[#allocation2 + $0xf1] sm:$0xff] }
  0xd7   : > { %8760 = vmatprep.mubr.msk.bf16.mxu0 %vm11042_vm12, %v11056_v50  ;;  %vm11087_vm3 = vmpackc.low %vm1266_vm6, %vm12714_vm4  ;;  %vm1270_vm12 = vcmp.lt.s32.totalorder %v499_v18, 15  ;;  %v11101_v9 = vpack.c.bf16 %v1236_v23, %v1235_v24  ;;  %v1951_v18 = vld [vmem:[#allocation2 + $0x40] sm:$0xff]  ;;  %v1954_v23 = vld [vmem:[#allocation2 + $0x58] sm:$0xff] }
  0xd8   : > { %vm11104_vm6 = vmpackc.low %vm1270_vm12, %vm12714_vm4  ;;  %vm12849_vm12 = vnez %v12766_v29  ;;  %vm12850_vm4 = vnez %v12770_v31  ;;  %v12885_v29 = vmov 0.0|0.0   ;;  %v9982_v31 = vld [vmem:[%s12642_s1 + $0x208] sm:$0xff]  }
  0xde   : > { %8761 = vmatmul.mubr.msk.bf16.gmra.mrb[20].mxu0 %vm11064_vm15, %v11079_v54 }
  0xdf   : > { %8764 = vmatprep.mubr.msk.bf16.mxu0 %vm11074_vm0, %v11081_v38 }
  0xe6   : > { %8765 = vmatmul.mubr.msk.bf16.gmra.mrb[24].mxu0 %vm11087_vm3, %v11099_v11 }
  0xe7   : > { %8768 = vmatprep.mubr.msk.bf16.mxu0 %vm11095_vm11, %v11101_v9 }
  0xee   : > { %8769 = vmatmul.mubr.msk.bf16.gmra.mrb[28].mxu0 %vm11104_vm6, %v11119_v3 }
  0xef   : > { %8788 = vmatprep.mubr.msk.bf16.mxu0 %vm11112_vm8, %v10612_v44  ;;  %v9952_v44 = vld [vmem:[%s12642_s1 + $0x118] sm:$0xff]  }
  0xf6   : > { %8789 = vmatmul.mubr.msk.bf16.vlgmr.msra.gmra.mrb[0].mxu0 %vm10580_vm5, %v10617_v46  ;;  %v9953_v46 = vld [vmem:[%s12642_s1 + $0x120] sm:$0xff]  }
  0xf7   : > { %8821 = vmatpush3.bf16.msra.mxu0 %v9949_v53  ;;  %8792 = vmatprep.mubr.msk.bf16.mxu0 %vm10598_vm7, %v10652_v58  ;;  %v9954_v58 = vld [vmem:[%s12642_s1 + $0x128] sm:$0xff]  }
  0xf8   : > { %8822 = vmatprep.subr.bf16.mxu0 %v9950_v4 }
  0xfb   : > { %8823 = vmatpush3.bf16.msra.mxu0 %v9950_v4  ;;  %v1956_v4 = vld [vmem:[#allocation2 + $0x68] sm:$0xff] }
  0xfc   : > { %8824 = vmatprep.subr.bf16.mxu0 %v9951_v63 }
  0xfe   : > { %8793 = vmatmul.mubr.msk.bf16.gmra.mrb[4].mxu0 %vm10622_vm9, %v10657_v56  ;;  %v9955_v56 = vld [vmem:[%s12642_s1 + $0x130] sm:$0xff]  }
  0xff   : > { %8796 = vmatprep.mubr.msk.bf16.mxu0 %vm10629_vm10, %v10691_v12  ;;  %8825 = vmatpush3.bf16.msra.mxu0 %v9951_v63  ;;  %v9956_v12 = vld [vmem:[%s12642_s1 + $0x138] sm:$0xff]   ;;  %v9959_v63 = vld [vmem:[%s12642_s1 + $0x150] sm:$0xff]  }
 0x100   : > { %8826 = vmatprep.subr.bf16.mxu0 %v9952_v44 }
 0x103   : > { %8827 = vmatpush3.bf16.msra.mxu0 %v9952_v44 }
 0x104   : > { %8828 = vmatprep.subr.bf16.mxu0 %v9953_v46 }
 0x106   : > { %8797 = vmatmul.mubr.msk.bf16.gmra.mrb[8].mxu0 %vm10662_vm13, %v10696_v14  ;;  %v9957_v14 = vld [vmem:[%s12642_s1 + $0x140] sm:$0xff]   ;;  %vm12854_vm13 = vnez %v12784_v8 }
 0x107   : > { %8800 = vmatprep.mubr.msk.bf16.mxu0 %vm10669_vm14, %v10730_v26  ;;  %8829 = vmatpush3.bf16.msra.mxu0 %v9953_v46  ;;  %vm12853_vm14 = vnez %v12782_v61  ;;  %v1639_v26 = vld [vmem:[#allocation2 + $0x10f] sm:$0xff]  ;;  %v11212_v46 = vpack.c.bf16 %v1956_v4, %v1955_v22  ;;  %v9964_v22 = vld [vmem:[%s12642_s1 + $0x178] sm:$0xff]  }
 0x108   : > { %8830 = vmatprep.subr.bf16.mxu0 %v9954_v58  ;;  %v1965_v4 = vld [vmem:[#allocation2 + $0xb0] sm:$0xff] }
 0x10b   : > { %8831 = vmatpush3.bf16.msra.mxu0 %v9954_v58  ;;  %v9960_v58 = vld [vmem:[%s12642_s1 + $0x158] sm:$0xff]  }
 0x10c   : > { %8832 = vmatprep.subr.bf16.mxu0 %v9955_v56 }
 0x10e   : > { %8801 = vmatmul.mubr.msk.bf16.gmra.mrb[12].mxu0 %vm10701_vm1, %v10735_v28  ;;  %vm12851_vm1 = vnez %v12774_v49  ;;  %v1640_v28 = vld [vmem:[#allocation2 + $0x117] sm:$0xff] }
 0x10f   : > { %8804 = vmatprep.mubr.msk.bf16.mxu0 %vm12848_vm2, %v10775_v41  ;;  %8833 = vmatpush3.bf16.msra.mxu0 %v9955_v56  ;;  %vm12852_vm2 = vnez %v12778_v42  ;;  %v1947_v41 = vld [vmem:[#allocation2 + $0x20] sm:$0xff]  ;;  %v1957_v56 = vld [vmem:[#allocation2 + $0x70] sm:$0xff] }
 0x110   : > { %8834 = vmatprep.subr.bf16.mxu0 %v9956_v12 }
 0x113   : > { %8835 = vmatpush3.bf16.msra.mxu0 %v9956_v12  ;;  %v1958_v12 = vld [vmem:[#allocation2 + $0x78] sm:$0xff] }
 0x114   : > { %8868 = vmatprep.subr.bf16.mxu0 %v9957_v14 }
 0x116   : > { %8805 = vmatmul.mubr.msk.bf16.gmra.mrb[16].mxu0 %vm12849_vm12, %v10777_v45  ;;  %v1948_v45 = vld [vmem:[#allocation2 + $0x28] sm:$0xff] }
 0x117   : > { %8808 = vmatprep.mubr.msk.bf16.mxu0 %vm12850_vm4, %v10812_v55  ;;  %v11193_v55 = vpack.c.bf16 %v1640_v28, %v1639_v26  ;;  %v1979_v53 = vpack.c.bf16 %v1948_v45, %v1947_v41  ;;  %v1960_v26 = vld [vmem:[#allocation2 + $0x88] sm:$0xff]  ;;  %v9961_v28 = vld [vmem:[%s12642_s1 + $0x160] sm:$0xff]   ;;  %v11222_v41 = vpack.c.bf16 %v1958_v12, %v1957_v56 }
 0x118   : > { %v1968_v56 = vld [vmem:[#allocation2 + $0xc8] sm:$0xff]  ;;  %v9965_v12 = vld [vmem:[%s12642_s1 + $0x180] sm:$0xff]  }
 0x11e   : > { %8809 = vmatmul.mubr.msk.bf16.gmra.mrb[20].mxu0 %vm12851_vm1, %v10814_v57  ;;  %vm12855_vm1 = vnez %v12788_v20  ;;  %v1949_v57 = vld [vmem:[#allocation2 + $0x30] sm:$0xff] }
 0x11f   : > { %8812 = vmatprep.mubr.msk.bf16.mxu0 %vm12852_vm2, %v10840_v13  ;;  %v1950_v13 = vld [vmem:[#allocation2 + $0x38] sm:$0xff]  ;;  %v1953_v20 = vld [vmem:[#allocation2 + $0x50] sm:$0xff]  ;;  %vm12860_vm2 = vnez %v12790_v25 }
 0x120   : > { %v11198_v35 = vpack.c.bf16 %v1950_v13, %v1949_v57  ;;  %v11210_v44 = vpack.c.bf16 %v1954_v23, %v1953_v20  ;;  %v1961_v57 = vld [vmem:[#allocation2 + $0x90] sm:$0xff]  ;;  %v1962_v13 = vld [vmem:[#allocation2 + $0x98] sm:$0xff] }
 0x121   : > { %v11234_v20 = vpack.c.bf16 %v1962_v13, %v1961_v57  ;;  %v1971_v57 = vld [vmem:[#allocation2 + $0xe0] sm:$0xff]  ;;  %v1972_v13 = vld [vmem:[#allocation2 + $0xe8] sm:$0xff] }
 0x126   : > { %8813 = vmatmul.mubr.msk.bf16.gmra.mrb[24].mxu0 %vm12853_vm14, %v10842_v17  ;;  %v1952_v17 = vld [vmem:[#allocation2 + $0x48] sm:$0xff] }
 0x127   : > { %8816 = vmatprep.mubr.msk.bf16.mxu0 %vm12854_vm13, %v10860_v27  ;;  %v11200_v24 = vpack.c.bf16 %v1952_v17, %v1951_v18  ;;  %v9958_v27 = vld [vmem:[%s12642_s1 + $0x148] sm:$0xff]   ;;  %v1963_v18 = vld [vmem:[#allocation2 + $0xa0] sm:$0xff]  ;;  %vm12857_vm13 = vmmov 1  }
 0x128   : > { %v1964_v17 = vld [vmem:[#allocation2 + $0xa8] sm:$0xff] }
 0x129   : > { %v11236_v23 = vpack.c.bf16 %v1964_v17, %v1963_v18  ;;  %v11254_v17 = vpack.c.bf16 %v1972_v13, %v1971_v57  ;;  %v12858_v13 = vmov 0 }
 0x12e   : > { %8817 = vmatmul.mubr.msk.bf16.gmra.mrb[28].mxu0 %vm12855_vm1, %v11193_v55 }
 0x12f   : > { %8836 = vmatprep.mubr.bf16.mxu0 %v1979_v53  ;;  %v9962_v53 = vld [vmem:[%s12642_s1 + $0x168] sm:$0xff]  }
 0x136   : > { %8837 = vmatmul.mubr.bf16.vlgmr.msra.gmra.mrb[0].mxu0 %v11198_v35 }
 0x137   : > { %8869 = vmatpush3.bf16.msra.mxu0 %v9957_v14  ;;  %8840 = vmatprep.mubr.bf16.mxu0 %v11200_v24  ;;  %v1959_v14 = vld [vmem:[#allocation2 + $0x80] sm:$0xff] }
 0x138   : > { %8870 = vmatprep.subr.bf16.mxu0 %v9958_v27  ;;  %v11224_v45 = vpack.c.bf16 %v1960_v26, %v1959_v14 }
 0x13b   : > { %8871 = vmatpush3.bf16.msra.mxu0 %v9958_v27  ;;  %v9963_v27 = vld [vmem:[%s12642_s1 + $0x170] sm:$0xff]  }
 0x13c   : > { %8872 = vmatprep.subr.bf16.mxu0 %v9959_v63 }
 0x13e   : > { %8841 = vmatmul.mubr.bf16.gmra.mrb[4].mxu0 %v11210_v44 }
 0x13f   : > { %8844 = vmatprep.mubr.bf16.mxu0 %v11212_v46  ;;  %8873 = vmatpush3.bf16.msra.mxu0 %v9959_v63  ;;  %v1966_v63 = vld [vmem:[#allocation2 + $0xb8] sm:$0xff] }
 0x140   : > { %8874 = vmatprep.subr.bf16.mxu0 %v9960_v58  ;;  %v11246_v14 = vpack.c.bf16 %v1966_v63, %v1965_v4  ;;  %v1974_v4 = vld [vmem:[#allocation2 + $0xf8] sm:$0xff]  ;;  %v1976_v63 = vld [vmem:[#allocation2 + $0x108] sm:$0xff] }
 0x143   : > { %8875 = vmatpush3.bf16.msra.mxu0 %v9960_v58  ;;  %v1967_v58 = vld [vmem:[#allocation2 + $0xc0] sm:$0xff] }
 0x144   : > { %8876 = vmatprep.subr.bf16.mxu0 %v9961_v28  ;;  %v11248_v26 = vpack.c.bf16 %v1968_v56, %v1967_v58  ;;  %v11259_v58 = vadd.s32 8, %v10517_v60 }
 0x146   : > { %8845 = vmatmul.mubr.bf16.gmra.mrb[8].mxu0 %v11222_v41  ;;  %12856 = vst [vmem:[#allocation19_spill] sm:$0xff] %v11248_v26 }
 0x147   : > { %8848 = vmatprep.mubr.bf16.mxu0 %v11224_v45  ;;  %8877 = vmatpush3.bf16.msra.mxu0 %v9961_v28  ;;  %v1969_v28 = vld [vmem:[#allocation2 + $0xd0] sm:$0xff] }
 0x148   : > { %8878 = vmatprep.subr.bf16.mxu0 %v9962_v53 }
 0x14b   : > { %8879 = vmatpush3.bf16.msra.mxu0 %v9962_v53  ;;  %v1970_v53 = vld [vmem:[#allocation2 + $0xd8] sm:$0xff] }
 0x14c   : > { %8880 = vmatprep.subr.bf16.mxu0 %v9963_v27  ;;  %v11252_v18 = vpack.c.bf16 %v1970_v53, %v1969_v28  ;;  %v469_v28 = vand.u32 15, %v11259_v58  ;;  %v10141_v53 = vld [vmem:[#allocation2 + $0x110] sm:$0xff] }
 0x14d   : > { %v1994_v57 = vpack.c.bf16 %v10850_v21, %v10141_v53  ;;  %v9967_v21 = vld [vmem:[%s12642_s1 + $0x190] sm:$0xff]   ;;  %v2284_v53 = vld [vmem:[#allocation2 + $0x119] sm:$0xff] }
 0x14e   : > { %8849 = vmatmul.mubr.bf16.gmra.mrb[12].mxu0 %v11234_v20  ;;  %vm1240_vm1 = vcmp.lt.s32.totalorder %v469_v28, 15  ;;  %v12894_v28 = vlaneseq }
 0x14f   : > { %8852 = vmatprep.mubr.bf16.mxu0 %v11236_v23  ;;  %8881 = vmatpush3.bf16.msra.mxu0 %v9963_v27  ;;  %v1973_v27 = vld [vmem:[#allocation2 + $0xf0] sm:$0xff]  ;;  %vm11270_vm14 = vmpackc.low %vm1240_vm1, %vm12857_vm13  ;;  %vm12861_vm1 = vnez %v12796_v51  ;;  %vm12862_vm13 = vnez %v12798_v19 }
 0x150   : > { %8882 = vmatprep.subr.bf16.mxu0 %v9964_v22  ;;  %v11261_v56 = vpack.c.bf16 %v1974_v4, %v1973_v27  ;;  %v12859_v13 = vsel %vm11270_vm14, 4294967295, %v12858_v13  ;;  %v9966_v27 = vld [vmem:[%s12642_s1 + $0x188] sm:$0xff]   ;;  %v12867_v4 = vld [vmem:[#allocation12_spill] sm:$0xff] }
 0x153   : > { %8883 = vmatpush3.bf16.msra.mxu0 %v9964_v22  ;;  %v1975_v22 = vld [vmem:[#allocation2 + $0x100] sm:$0xff] }
 0x154   : > { %8916 = vmatprep.subr.bf16.mxu0 %v9965_v12 }
 0x156   : > { %8853 = vmatmul.mubr.bf16.gmra.mrb[16].mxu0 %v11246_v14 }
 0x157   : > { %8856 = vmatprep.mubr.bf16.mxu0 %v11248_v26  ;;  %v11263_v26 = vpack.c.bf16 %v1976_v63, %v1975_v22  ;;  %v12871_v22 = vld [vmem:[#allocation15_spill] sm:$0xff]  ;;  %v12873_v63 = vld [vmem:[#allocation16_spill] sm:$0xff] }
 0x15e   : > { %8857 = vmatmul.mubr.bf16.gmra.mrb[20].mxu0 %v11252_v18 }
 0x15f   : > { %8860 = vmatprep.mubr.bf16.mxu0 %v11254_v17 }
 0x166   : > { %8861 = vmatmul.mubr.bf16.gmra.mrb[24].mxu0 %v11261_v56 }
 0x167   : > { %8864 = vmatprep.mubr.bf16.mxu0 %v11263_v26 }
 0x16e   : > { %8865 = vmatmul.mubr.bf16.gmra.mrb[28].mxu0 %v1994_v57  ;;  %v2591_v57 = vld [vmem:[#allocation2 + $0x2f] sm:$0xff] }
 0x16f   : > { %8884 = vmatprep.mubr.msk.bf16.mxu0 %vm11270_vm14, %v10894_v6  ;;  %v9968_v6 = vld [vmem:[%s12642_s1 + $0x198] sm:$0xff]   ;;  %vm12874_vm14 = vnez %v12873_v63  ;;  %v11477_v63 = vand.u32 7, %v10517_v60 }
 0x176   : > { %8885 = vmatmul.mubr.msk.bf16.vlgmr.msra.gmra.mrb[0].mxu0 %vm12860_vm2, %v10899_v10  ;;  %vm12863_vm2 = vnez %v12804_v37  ;;  %v9969_v10 = vld [vmem:[%s12642_s1 + $0x1a0] sm:$0xff]  }
 0x177   : > { %8917 = vmatpush3.bf16.msra.mxu0 %v9965_v12  ;;  %8888 = vmatprep.mubr.msk.bf16.mxu0 %vm12861_vm1, %v10935_v39  ;;  %v9970_v39 = vld [vmem:[%s12642_s1 + $0x1a8] sm:$0xff]   ;;  %vm12864_vm1 = vnez %v12806_v32 }
 0x178   : > { %8918 = vmatprep.subr.bf16.mxu0 %v9966_v27  ;;  %v12866_v12 = vld [vmem:[#allocation14_spill] sm:$0xff] }
 0x17b   : > { %8919 = vmatpush3.bf16.msra.mxu0 %v9966_v27 }
 0x17c   : > { %8920 = vmatprep.subr.bf16.mxu0 %v9967_v21 }
 0x17e   : > { %8889 = vmatmul.mubr.msk.bf16.gmra.mrb[4].mxu0 %vm12862_vm13, %v10940_v52  ;;  %vm12865_vm13 = vnez %v12812_v43  ;;  %v9972_v52 = vld [vmem:[%s12642_s1 + $0x1b8] sm:$0xff]  }
 0x17f   : > { %8892 = vmatprep.mubr.msk.bf16.mxu0 %vm12863_vm2, %v10975_v2  ;;  %8921 = vmatpush3.bf16.msra.mxu0 %v9967_v21  ;;  %v9971_v2 = vld [vmem:[%s12642_s1 + $0x1b0] sm:$0xff]   ;;  %vm12868_vm2 = vnez %v12867_v4  ;;  %v3356_v4 = vld [vmem:[#allocation2 + $0xf9] sm:$0xff] }
 0x180   : > { %8922 = vmatprep.subr.bf16.mxu0 %v9968_v6 }
 0x183   : > { %8923 = vmatpush3.bf16.msra.mxu0 %v9968_v6  ;;  %v2596_v6 = vld [vmem:[#allocation2 + $0x57] sm:$0xff] }
 0x184   : > { %8924 = vmatprep.subr.bf16.mxu0 %v9969_v10 }
 0x186   : > { %8893 = vmatmul.mubr.msk.bf16.gmra.mrb[8].mxu0 %vm12864_vm1, %v10980_v33  ;;  %v12869_v33 = vld [vmem:[#allocation13_spill] sm:$0xff] }
 0x187   : > { %8896 = vmatprep.mubr.msk.bf16.mxu0 %vm12865_vm13, %v11015_v0  ;;  %8925 = vmatpush3.bf16.msra.mxu0 %v9969_v10  ;;  %vm12870_vm1 = vnez %v12869_v33  ;;  %v9973_v0 = vld [vmem:[%s12642_s1 + $0x1c0] sm:$0xff]   ;;  %vm12872_vm13 = vnez %v12871_v22  ;;  %v3967_v22 = vshra.s32 %v10517_v60, 3 }
 0x188   : > { %8926 = vmatprep.subr.bf16.mxu0 %v9970_v39  ;;  %v3357_v33 = vld [vmem:[#allocation2 + $0x101] sm:$0xff] }
 0x18b   : > { %8927 = vmatpush3.bf16.msra.mxu0 %v9970_v39  ;;  %v9974_v39 = vld [vmem:[%s12642_s1 + $0x1c8] sm:$0xff]  }
 0x18c   : > { %8928 = vmatprep.subr.bf16.mxu0 %v9971_v2 }
 0x18e   : > { %8897 = vmatmul.mubr.msk.bf16.gmra.mrb[12].mxu0 %vm12868_vm2, %v12866_v12  ;;  %v9975_v12 = vld [vmem:[%s12642_s1 + $0x1d0] sm:$0xff]  }
 0x18f   : > { %8900 = vmatprep.mubr.msk.bf16.mxu0 %vm12870_vm1, %v11054_v7  ;;  %8929 = vmatpush3.bf16.msra.mxu0 %v9971_v2  ;;  %v2599_v2 = vld [vmem:[#allocation2 + $0x6f] sm:$0xff]  ;;  %v11480_v7 = vand.u32 127, %v12894_v28 }
 0x190   : > { %8930 = vmatprep.subr.bf16.mxu0 %v9972_v52 }
 0x191   : > { %v11484_v5 = vadd.s32 128, %v11480_v7 }
 0x193   : > { %8931 = vmatpush3.bf16.msra.mxu0 %v9972_v52  ;;  %v2600_v52 = vld [vmem:[#allocation2 + $0x77] sm:$0xff] }
 0x194   : > { %8964 = vmatprep.subr.bf16.mxu0 %v9973_v0 }
 0x196   : > { %8901 = vmatmul.mubr.msk.bf16.gmra.mrb[16].mxu0 %vm12872_vm13, %v11056_v50  ;;  %v2283_v50 = vld [vmem:[#allocation2 + $0x111] sm:$0xff] }
 0x197   : > { %8904 = vmatprep.mubr.msk.bf16.mxu0 %vm12874_vm14, %v11079_v54  ;;  %v2592_v54 = vld [vmem:[#allocation2 + $0x37] sm:$0xff]  ;;  %v11343_v27 = vpack.c.bf16 %v2284_v53, %v2283_v50  ;;  %v7468_v50 = vpack.c.bf16 %v2598_v34, %v2597_v36  ;;  %v7471_v53 = vpack.c.bf16 %v2600_v52, %v2599_v2  ;;  %v2610_v34 = vld [vmem:[#allocation2 + $0xc7] sm:$0xff]  ;;  %v2611_v2 = vld [vmem:[#allocation2 + $0xcf] sm:$0xff] }
 0x198   : > { %v7459_v21 = vpack.c.bf16 %v2592_v54, %v2591_v57  ;;  %v2603_v57 = vld [vmem:[#allocation2 + $0x8f] sm:$0xff]  ;;  %v2604_v54 = vld [vmem:[#allocation2 + $0x97] sm:$0xff] }
 0x199   : > { %v2612_v52 = vld [vmem:[#allocation2 + $0xd7] sm:$0xff] }
 0x19e   : > { %8905 = vmatmul.mubr.msk.bf16.gmra.mrb[20].mxu0 %vm11064_vm15, %v11081_v38  ;;  %v2593_v38 = vld [vmem:[#allocation2 + $0x3f] sm:$0xff] }
 0x19f   : > { %8908 = vmatprep.mubr.msk.bf16.mxu0 %vm11074_vm0, %v11099_v11  ;;  %v2594_v11 = vld [vmem:[#allocation2 + $0x47] sm:$0xff] }
 0x1a0   : > { %v7462_v10 = vpack.c.bf16 %v2594_v11, %v2593_v38  ;;  %v7477_v11 = vpack.c.bf16 %v2604_v54, %v2603_v57  ;;  %v2617_v54 = vld [vmem:[#allocation2 + $0xff] sm:$0xff] }
 0x1a6   : > { %8909 = vmatmul.mubr.msk.bf16.gmra.mrb[24].mxu0 %vm11087_vm3, %v11101_v9  ;;  %v2595_v9 = vld [vmem:[#allocation2 + $0x4f] sm:$0xff] }
 0x1a7   : > { %8912 = vmatprep.mubr.msk.bf16.mxu0 %vm11095_vm11, %v11119_v3  ;;  %v7465_v3 = vpack.c.bf16 %v2596_v6, %v2595_v9  ;;  %v2606_v9 = vld [vmem:[#allocation2 + $0xa7] sm:$0xff]  ;;  %v2607_v6 = vld [vmem:[#allocation2 + $0xaf] sm:$0xff] }
 0x1ae   : > { %8913 = vmatmul.mubr.msk.bf16.gmra.mrb[28].mxu0 %vm11104_vm6, %v11343_v27  ;;  %vm12881_vm6 = vnez %v12774_v49  ;;  %v9983_v49 = vld [vmem:[%s12642_s1 + $0x210] sm:$0xff]  }
 0x1af   : > { %8932 = vmatprep.mubr.msk.bf16.mxu0 %vm11112_vm8, %v7459_v21  ;;  %v9977_v21 = vld [vmem:[%s12642_s1 + $0x1e0] sm:$0xff]   ;;  %vm12882_vm8 = vnez %v12778_v42  ;;  %v9984_v42 = vld [vmem:[%s12642_s1 + $0x218] sm:$0xff]  }
 0x1b6   : > { %8933 = vmatmul.mubr.msk.bf16.vlgmr.msra.gmra.mrb[0].mxu0 %vm10580_vm5, %v7462_v10  ;;  %vm12877_vm5 = vnez %v12751_v62  ;;  %v2608_v10 = vld [vmem:[#allocation2 + $0xb7] sm:$0xff] }
 0x1b7   : > { %8965 = vmatpush3.bf16.msra.mxu0 %v9973_v0  ;;  %8936 = vmatprep.mubr.msk.bf16.mxu0 %vm10598_vm7, %v7465_v3  ;;  %v2602_v0 = vld [vmem:[#allocation2 + $0x87] sm:$0xff]  ;;  %vm12878_vm7 = vnez %v12753_v1  ;;  %v9979_v3 = vld [vmem:[%s12642_s1 + $0x1f0] sm:$0xff]   ;;  %v7483_v36 = vpack.c.bf16 %v2608_v10, %v2607_v6  ;;  %v9980_v62 = vld [vmem:[%s12642_s1 + $0x1f8] sm:$0xff]  }
 0x1b8   : > { %8966 = vmatprep.subr.bf16.mxu0 %v9974_v39  ;;  %v7474_v38 = vpack.c.bf16 %v2602_v0, %v2601_v40  ;;  %v2609_v1 = vld [vmem:[#allocation2 + $0xbf] sm:$0xff]  ;;  %v2616_v40 = vld [vmem:[#allocation2 + $0xf7] sm:$0xff] }
 0x1b9   : > { %v3339_v6 = vld [vmem:[#allocation2 + $0x71] sm:$0xff]  ;;  %v3340_v10 = vld [vmem:[#allocation2 + $0x79] sm:$0xff] }
 0x1bb   : > { %8967 = vmatpush3.bf16.msra.mxu0 %v9974_v39  ;;  %v7480_v39 = vpack.c.bf16 %v2606_v9, %v2605_v48  ;;  %v3338_v9 = vld [vmem:[#allocation2 + $0x69] sm:$0xff] }
 0x1bc   : > { %8968 = vmatprep.subr.bf16.mxu0 %v9975_v12 }
 0x1be   : > { %8937 = vmatmul.mubr.msk.bf16.gmra.mrb[4].mxu0 %vm10622_vm9, %v7468_v50  ;;  %vm12879_vm9 = vnez %v12759_v15  ;;  %v7486_v50 = vpack.c.bf16 %v2610_v34, %v2609_v1  ;;  %v2613_v15 = vld [vmem:[#allocation2 + $0xdf] sm:$0xff] }
 0x1bf   : > { %8940 = vmatprep.mubr.msk.bf16.mxu0 %vm10629_vm10, %v7471_v53  ;;  %8969 = vmatpush3.bf16.msra.mxu0 %v9975_v12  ;;  %vm12880_vm10 = vnez %v12761_v16  ;;  %v9981_v12 = vld [vmem:[%s12642_s1 + $0x200] sm:$0xff]   ;;  %v7489_v53 = vpack.c.bf16 %v2612_v52, %v2611_v2  ;;  %v3346_v2 = vld [vmem:[#allocation2 + $0xa9] sm:$0xff]  ;;  %v3347_v52 = vld [vmem:[#allocation2 + $0xb1] sm:$0xff] }
 0x1c0   : > { %8970 = vmatprep.subr.bf16.mxu0 %v9976_v30  ;;  %v2614_v16 = vld [vmem:[#allocation2 + $0xe7] sm:$0xff] }
 0x1c1   : > { %v7492_v0 = vpack.c.bf16 %v2614_v16, %v2613_v15  ;;  %v3351_v15 = vld [vmem:[#allocation2 + $0xd1] sm:$0xff] }
 0x1c3   : > { %8971 = vmatpush3.bf16.msra.mxu0 %v9976_v30  ;;  %v2615_v30 = vld [vmem:[#allocation2 + $0xef] sm:$0xff] }
 0x1c4   : > { %8972 = vmatprep.subr.bf16.mxu0 %v9977_v21  ;;  %v7495_v57 = vpack.c.bf16 %v2616_v40, %v2615_v30  ;;  %v3354_v40 = vld [vmem:[#allocation2 + $0xe9] sm:$0xff] }
 0x1c6   : > { %8941 = vmatmul.mubr.msk.bf16.gmra.mrb[8].mxu0 %vm12877_vm5, %v7474_v38  ;;  %vm12887_vm5 = vnez %v12859_v13  ;;  %v3341_v13 = vld [vmem:[#allocation2 + $0x81] sm:$0xff] }
 0x1c7   : > { %8944 = vmatprep.mubr.msk.bf16.mxu0 %vm12878_vm7, %v7477_v11  ;;  %8973 = vmatpush3.bf16.msra.mxu0 %v9977_v21  ;;  %v2618_v21 = vld [vmem:[#allocation2 + $0x107] sm:$0xff]  ;;  %vm12888_vm7 = vnez %v12790_v25  ;;  %v3344_v25 = vld [vmem:[#allocation2 + $0x99] sm:$0xff] }
 0x1c8   : > { %8974 = vmatprep.subr.bf16.mxu0 %v9978_v47  ;;  %v7498_v38 = vpack.c.bf16 %v2618_v21, %v2617_v54  ;;  %v3333_v11 = vld [vmem:[#allocation2 + $0x41] sm:$0xff]  ;;  %v3358_v21 = vld [vmem:[#allocation2 + $0x109] sm:$0xff] }
 0x1cb   : > { %8975 = vmatpush3.bf16.msra.mxu0 %v9978_v47  ;;  %v3335_v47 = vld [vmem:[#allocation2 + $0x51] sm:$0xff] }
 0x1cc   : > { %8976 = vmatprep.subr.bf16.mxu0 %v9979_v3 }
 0x1ce   : > { %8945 = vmatmul.mubr.msk.bf16.gmra.mrb[12].mxu0 %vm12879_vm9, %v7480_v39  ;;  %vm12889_vm9 = vnez %v12796_v51  ;;  %v7564_v39 = vpack.c.bf16 %v3340_v10, %v3339_v6  ;;  %v3345_v51 = vld [vmem:[#allocation2 + $0xa1] sm:$0xff] }
 0x1cf   : > { %8948 = vmatprep.mubr.msk.bf16.mxu0 %vm12880_vm10, %v7483_v36  ;;  %8977 = vmatpush3.bf16.msra.mxu0 %v9979_v3  ;;  %vm12890_vm10 = vnez %v12798_v19  ;;  %v3342_v36 = vld [vmem:[#allocation2 + $0x89] sm:$0xff]  ;;  %v3348_v19 = vld [vmem:[#allocation2 + $0xb9] sm:$0xff] }
 0x1d0   : > { %8978 = vmatprep.subr.bf16.mxu0 %v9980_v62  ;;  %v7567_v1 = vpack.c.bf16 %v3342_v36, %v3341_v13 }
 0x1d3   : > { %8979 = vmatpush3.bf16.msra.mxu0 %v9980_v62  ;;  %v3343_v62 = vld [vmem:[#allocation2 + $0x91] sm:$0xff] }
 0x1d4   : > { %9012 = vmatprep.subr.bf16.mxu0 %v9981_v12  ;;  %v7570_v34 = vpack.c.bf16 %v3344_v25, %v3343_v62 }
 0x1d6   : > { %8949 = vmatmul.mubr.msk.bf16.gmra.mrb[16].mxu0 %vm12849_vm12, %v7486_v50  ;;  %vm12883_vm12 = vnez %v12782_v61  ;;  %v9985_v61 = vld [vmem:[%s12642_s1 + $0x220] sm:$0xff]   ;;  %v7576_v50 = vpack.c.bf16 %v3348_v19, %v3347_v52 }
 0x1d7   : > { %8952 = vmatprep.mubr.msk.bf16.mxu0 %vm12850_vm4, %v7489_v53  ;;  %vm12884_vm4 = vnez %v12784_v8  ;;  %v9986_v8 = vld [vmem:[%s12642_s1 + $0x228] sm:$0xff]  }
 0x1d8   : > { %v3350_v53 = vld [vmem:[#allocation2 + $0xc9] sm:$0xff] }
 0x1de   : > { %8953 = vmatmul.mubr.msk.bf16.gmra.mrb[20].mxu0 %vm12881_vm6, %v7492_v0  ;;  %vm12891_vm6 = vnez %v12804_v37  ;;  %v3349_v37 = vld [vmem:[#allocation2 + $0xc1] sm:$0xff]  ;;  %v3355_v0 = vld [vmem:[#allocation2 + $0xf1] sm:$0xff] }
 0x1df   : > { %8956 = vmatprep.mubr.msk.bf16.mxu0 %vm12882_vm8, %v7495_v57  ;;  %vm12892_vm8 = vnez %v12806_v32  ;;  %v3352_v32 = vld [vmem:[#allocation2 + $0xd9] sm:$0xff]  ;;  %v7579_v16 = vpack.c.bf16 %v3350_v53, %v3349_v37  ;;  %v7588_v54 = vpack.c.bf16 %v3356_v4, %v3355_v0 }
 0x1e0   : > { %v7582_v30 = vpack.c.bf16 %v3352_v32, %v3351_v15 }
 0x1e6   : > { %8957 = vmatmul.mubr.msk.bf16.gmra.mrb[24].mxu0 %vm12883_vm12, %v7498_v38  ;;  %vm12893_vm12 = vnez %v12812_v43  ;;  %v3353_v43 = vld [vmem:[#allocation2 + $0xe1] sm:$0xff]  ;;  %v7591_v38 = vpack.c.bf16 %v3358_v21, %v3357_v33 }
 0x1e7   : > { %8960 = vmatprep.mubr.msk.bf16.mxu0 %vm12884_vm4, %v11193_v55  ;;  %v9987_v55 = vld [vmem:[%s12642_s1 + $0x230] sm:$0xff]   ;;  %v7585_v57 = vpack.c.bf16 %v3354_v40, %v3353_v43 }
 0x1ee   : > { %8961 = vmatmul.mubr.bf16.gmra.mrb[28].mxu0 %v12885_v29 }
 0x1ef   : > { %8980 = vmatprep.mubr.bf16.mxu0 %v11198_v35  ;;  %v9988_v35 = vld [vmem:[%s12642_s1 + $0x238] sm:$0xff]  }
 0x1f6   : > { %8981 = vmatmul.mubr.bf16.vlgmr.msra.gmra.mrb[0].mxu0 %v11200_v24  ;;  %v11434_v24 = vld [vmem:[#allocation2] sm:$0xff] }
 0x1f7   : > { %9013 = vmatpush3.bf16.msra.mxu0 %v9981_v12  ;;  %8984 = vmatprep.mubr.bf16.mxu0 %v11210_v44  ;;  %v12886_v44 = vld [vmem:[#allocation19_spill] sm:$0xff]  ;;  %v7573_v12 = vpack.c.bf16 %v3346_v2, %v3345_v51 }
 0x1f8   : > { %9014 = vmatprep.subr.bf16.mxu0 %v9982_v31 }
 0x1fb   : > { %9015 = vmatpush3.bf16.msra.mxu0 %v9982_v31  ;;  %v3983_v31 = vshll.u32 %v3967_v22, 5 }
 0x1fc   : > { %9016 = vmatprep.subr.bf16.mxu0 %v9983_v49 }
 0x1fe   : > { %8985 = vmatmul.mubr.bf16.gmra.mrb[4].mxu0 %v11212_v46  ;;  %v3021_v46 = vld [vmem:[#allocation2 + $0x110] sm:$0xff] }
 0x1ff   : > { %8988 = vmatprep.mubr.bf16.mxu0 %v11222_v41  ;;  %9017 = vmatpush3.bf16.msra.mxu0 %v9983_v49  ;;  %v10143_v41 = vld [vmem:[#allocation2 + $0x118] sm:$0xff]  ;;  %v3991_v49 = vshll.u32 %v11477_v63, 1 }
 0x200   : > { %9018 = vmatprep.subr.bf16.mxu0 %v9984_v42 }
 0x203   : > { %9019 = vmatpush3.bf16.msra.mxu0 %v9984_v42  ;;  %v11486_v42 = vadd.s32 %v3991_v49, %v3983_v31 }
 0x204   : > { %9020 = vmatprep.subr.bf16.mxu0 %v9985_v61 }
 0x206   : > { %8989 = vmatmul.mubr.bf16.gmra.mrb[8].mxu0 %v11224_v45  ;;  %v3071_v45 = vpack.c.bf16 %v10143_v41, %v3021_v46 }
 0x207   : > { %8992 = vmatprep.mubr.bf16.mxu0 %v11234_v20  ;;  %9021 = vmatpush3.bf16.msra.mxu0 %v9985_v61  ;;  %v3331_v20 = vld [vmem:[#allocation2 + $0x31] sm:$0xff] }
 0x208   : > { %9022 = vmatprep.subr.bf16.mxu0 %v9986_v8 }
 0x20b   : > { %9023 = vmatpush3.bf16.msra.mxu0 %v9986_v8 }
 0x20c   : > { %9024 = vmatprep.subr.bf16.mxu0 %v9987_v55 }
 0x20e   : > { %8993 = vmatmul.mubr.bf16.gmra.mrb[12].mxu0 %v11236_v23  ;;  %v3332_v23 = vld [vmem:[#allocation2 + $0x39] sm:$0xff] }
 0x20f   : > { %8996 = vmatprep.mubr.bf16.mxu0 %v11246_v14  ;;  %9025 = vmatpush3.bf16.msra.mxu0 %v9987_v55  ;;  %v7552_v14 = vpack.c.bf16 %v3332_v23, %v3331_v20 }
 0x210   : > { %9026 = vmatprep.subr.bf16.mxu0 %v9988_v35 }
 0x213   : > { %9027 = vmatpush3.bf16.msra.mxu0 %v9988_v35 }
 0x214   : > { %9455 = vmatprep.subr.bf16.mxu0 %v11434_v24 }
 0x216   : > { %8997 = vmatmul.mubr.bf16.gmra.mrb[16].mxu0 %v12886_v44 }
 0x217   : > { %9000 = vmatprep.mubr.bf16.mxu0 %v11252_v18  ;;  %v3334_v18 = vld [vmem:[#allocation2 + $0x49] sm:$0xff] }
 0x218   : > { %v7555_v48 = vpack.c.bf16 %v3334_v18, %v3333_v11 }
 0x21e   : > { %9001 = vmatmul.mubr.bf16.gmra.mrb[20].mxu0 %v11254_v17  ;;  %v3336_v17 = vld [vmem:[#allocation2 + $0x59] sm:$0xff] }
 0x21f   : > { %9004 = vmatprep.mubr.bf16.mxu0 %v11261_v56  ;;  %v7558_v56 = vpack.c.bf16 %v3336_v17, %v3335_v47 }
 0x226   : > { %9005 = vmatmul.mubr.bf16.gmra.mrb[24].mxu0 %v11263_v26  ;;  %v3337_v26 = vld [vmem:[#allocation2 + $0x61] sm:$0xff] }
 0x227   : > { %9008 = vmatprep.mubr.bf16.mxu0 %v3071_v45  ;;  %v7561_v3 = vpack.c.bf16 %v3338_v9, %v3337_v26 }
 0x22e   : > { %9009 = vmatmul.mubr.bf16.gmra.mrb[28].mxu0 %v12885_v29 }
 0x22f   : > { %9028 = vmatprep.mubr.msk.bf16.mxu0 %vm12887_vm5, %v7552_v14 }
 0x236   : > { %9029 = vmatmul.mubr.msk.bf16.vlgmr.msra.gmra.mrb[0].mxu0 %vm12888_vm7, %v7555_v48 }
 0x237   : > { %9032 = vmatprep.mubr.msk.bf16.mxu0 %vm12889_vm9, %v7558_v56 }
 0x23e   : > { %9033 = vmatmul.mubr.msk.bf16.gmra.mrb[4].mxu0 %vm12890_vm10, %v7561_v3 }
 0x23f   : > { %9036 = vmatprep.mubr.msk.bf16.mxu0 %vm12891_vm6, %v7564_v39 }
 0x246   : > { %9037 = vmatmul.mubr.msk.bf16.gmra.mrb[8].mxu0 %vm12892_vm8, %v7567_v1 }
 0x247   : > { %9040 = vmatprep.mubr.msk.bf16.mxu0 %vm12893_vm12, %v7570_v34 }
 0x24e   : > { %9041 = vmatmul.mubr.msk.bf16.gmra.mrb[12].mxu0 %vm12868_vm2, %v7573_v12 }
 0x24f   : > { %9044 = vmatprep.mubr.msk.bf16.mxu0 %vm12870_vm1, %v7576_v50 }
 0x256   : > { %9045 = vmatmul.mubr.msk.bf16.gmra.mrb[16].mxu0 %vm12872_vm13, %v7579_v16  ;;  %vm4008_vm13 = vcmp.eq.s32.totalorder %v11484_v5, %v11486_v42 }
 0x257   : > { %9048 = vmatprep.mubr.msk.bf16.mxu0 %vm12874_vm14, %v7582_v30  ;;  %7613 = vmatprep.mubr.msk.f32.mxu1 %vm4008_vm13, %v10213_v59  ;;  %vm4007_vm14 = vcmp.eq.s32.totalorder %v11480_v7, %v11486_v42 }
 0x25e   : > { %9049 = vmatmul.mubr.msk.bf16.gmra.mrb[20].mxu0 %vm11064_vm15, %v7585_v57 }
 0x25f   : > { %9052 = vmatprep.mubr.msk.bf16.mxu0 %vm11074_vm0, %v7588_v54 }
 0x266   : > { %9053 = vmatmul.mubr.msk.bf16.gmra.mrb[24].mxu0 %vm11087_vm3, %v7591_v38 }
 0x267   : > { %9056 = vmatprep.mubr.msk.bf16.mxu0 %vm11095_vm11, %v11343_v27  ;;  %v11494_v27 = vld [vmem:[%s12643_s2] ss:$0 sm:$0xff] }
 0x26e   : > { %9057 = vmatmul.mubr.bf16.gmra.mrb[28].mxu0 %v12885_v29 }
 0x309   : > { %v9030_v61 = vpop.f32.mrb[0].mxu0 }
 0x30a   : > { %v3710_v8 = vadd.f32 %v9030_v61, %v11494_v27  ;;  %v3542_v55 = vpop.f32.mrb[1].mxu0 }
 0x30b   : > { %v3708_v35 = vadd.f32 %v11494_v27, %v3542_v55  ;;  %v9031_v44 = vpop.f32.mrb[2].mxu0 }
 0x30c   : > { %v3742_v46 = vmax.f32 %v3710_v8, 0.0  ;;  %v3711_v41 = vadd.f32 %v9031_v44, %v11494_v27  ;;  %v3545_v45 = vpop.f32.mrb[3].mxu0 }
 0x30d   : > { %v3740_v20 = vmax.f32 %v3708_v35, 0.0  ;;  %v3709_v23 = vadd.f32 %v11494_v27, %v3545_v45 }
 0x30e   : > { %3774 = vst [vmem:[#allocation2 + $0x30] sm:$0xff] %v3742_v46  ;;  %v3743_v14 = vmax.f32 %v3711_v41, 0.0 }
 0x30f   : > { %3772 = vst [vmem:[#allocation2 + $0x20] sm:$0xff] %v3740_v20  ;;  %v3741_v11 = vmax.f32 %v3709_v23, 0.0 }
 0x310   : > { %3775 = vst [vmem:[#allocation2 + $0x38] sm:$0xff] %v3743_v14 }
 0x311   : > { %3773 = vst [vmem:[#allocation2 + $0x28] sm:$0xff] %v3741_v11  ;;  %v9034_v18 = vpop.f32.mrb[4].mxu0 }
 0x312   : > { %v3714_v47 = vadd.f32 %v9034_v18, %v11494_v27  ;;  %v3558_v17 = vpop.f32.mrb[5].mxu0 }
 0x313   : > { %v3712_v48 = vadd.f32 %v11494_v27, %v3558_v17  ;;  %v9035_v56 = vpop.f32.mrb[6].mxu0 }
 0x314   : > { %v3746_v26 = vmax.f32 %v3714_v47, 0.0  ;;  %v11503_v9 = vadd.f32 %v9035_v56, %v11494_v27  ;;  %v3561_v6 = vpop.f32.mrb[7].mxu0 }
 0x315   : > { %v3744_v10 = vmax.f32 %v3712_v48, 0.0  ;;  %v3713_v3 = vadd.f32 %v11494_v27, %v3561_v6 }
 0x316   : > { %3778 = vst [vmem:[#allocation2 + $0x50] sm:$0xff] %v3746_v26  ;;  %v3747_v39 = vmax.f32 %v11503_v9, 0.0 }
 0x317   : > { %3776 = vst [vmem:[#allocation2 + $0x40] sm:$0xff] %v3744_v10  ;;  %v3745_v13 = vmax.f32 %v3713_v3, 0.0  ;;  %v3806_v36 = vld [vmem:[#allocation2 + $0x31] sm:$0xff] }
 0x318   : > { %3779 = vst [vmem:[#allocation2 + $0x58] sm:$0xff] %v3747_v39  ;;  %v3804_v62 = vld [vmem:[#allocation2 + $0x21] sm:$0xff]  ;;  %v3838_v25 = vmax.f32 %v3742_v46, %v3806_v36  ;;  %v3805_v50 = vld [vmem:[#allocation2 + $0x29] sm:$0xff] }
 0x319   : > { %3777 = vst [vmem:[#allocation2 + $0x48] sm:$0xff] %v3745_v13  ;;  %v9038_v1 = vpop.f32.mrb[8].mxu0  ;;  %v3836_v34 = vmax.f32 %v3740_v20, %v3804_v62  ;;  %v3837_v40 = vmax.f32 %v3741_v11, %v3805_v50 }
 0x31a   : > { %v3718_v51 = vadd.f32 %v9038_v1, %v11494_v27  ;;  %v3574_v2 = vpop.f32.mrb[9].mxu0 }
 0x31b   : > { %v3716_v52 = vadd.f32 %v11494_v27, %v3574_v2  ;;  %v9039_v19 = vpop.f32.mrb[10].mxu0  ;;  %v3932_v12 = vmax.f32 %v3836_v34, %v3838_v25 }
 0x31c   : > { %v3750_v37 = vmax.f32 %v3718_v51, 0.0  ;;  %v11510_v53 = vadd.f32 %v9039_v19, %v11494_v27  ;;  %v3577_v15 = vpop.f32.mrb[11].mxu0 }
 0x31d   : > { %v3748_v32 = vmax.f32 %v3716_v52, 0.0  ;;  %v3717_v16 = vadd.f32 %v11494_v27, %v3577_v15 }
 0x31e   : > { %3782 = vst [vmem:[#allocation2 + $0x70] sm:$0xff] %v3750_v37  ;;  %v3751_v30 = vmax.f32 %v11510_v53, 0.0  ;;  %v3807_v43 = vld [vmem:[#allocation2 + $0x39] sm:$0xff] }
 0x31f   : > { %3780 = vst [vmem:[#allocation2 + $0x60] sm:$0xff] %v3748_v32  ;;  %v3749_v0 = vmax.f32 %v3717_v16, 0.0  ;;  %v3839_v4 = vmax.f32 %v3743_v14, %v3807_v43  ;;  %v3810_v57 = vld [vmem:[#allocation2 + $0x51] sm:$0xff] }
 0x320   : > { %v3809_v54 = vld [vmem:[#allocation2 + $0x49] sm:$0xff]  ;;  %3783 = vst [vmem:[#allocation2 + $0x78] sm:$0xff] %v3751_v30  ;;  %v3808_v33 = vld [vmem:[#allocation2 + $0x41] sm:$0xff]  ;;  %v3842_v21 = vmax.f32 %v3746_v26, %v3810_v57 }
 0x321   : > { %v3841_v38 = vmax.f32 %v3745_v13, %v3809_v54  ;;  %3781 = vst [vmem:[#allocation2 + $0x68] sm:$0xff] %v3749_v0  ;;  %v9042_v22 = vpop.f32.mrb[12].mxu0  ;;  %v3933_v28 = vmax.f32 %v3837_v40, %v3839_v4  ;;  %v3840_v31 = vmax.f32 %v3744_v10, %v3808_v33 }
 0x322   : > { %v3722_v49 = vadd.f32 %v9042_v22, %v11494_v27  ;;  %v3590_v61 = vpop.f32.mrb[13].mxu0 }
 0x323   : > { %v3720_v8 = vadd.f32 %v11494_v27, %v3590_v61  ;;  %v9043_v55 = vpop.f32.mrb[14].mxu0  ;;  %v11518_v35 = vpack.c.bf16 %v3933_v28, %v3932_v12  ;;  %v3934_v44 = vmax.f32 %v3838_v25, %v3840_v31  ;;  %v3935_v46 = vmax.f32 %v3839_v4, %v3841_v38 }
 0x324   : > { %v3754_v41 = vmax.f32 %v3722_v49, 0.0  ;;  %v11521_v45 = vadd.f32 %v9043_v55, %v11494_v27  ;;  %v3593_v20 = vpop.f32.mrb[15].mxu0  ;;  %v3936_v23 = vmax.f32 %v3840_v31, %v3842_v21 }
 0x325   : > { %v3752_v14 = vmax.f32 %v3720_v8, 0.0  ;;  %v3721_v11 = vadd.f32 %v11494_v27, %v3593_v20  ;;  %v11524_v18 = vpack.c.bf16 %v3935_v46, %v3934_v44 }
 0x326   : > { %3786 = vst [vmem:[#allocation2 + $0x90] sm:$0xff] %v3754_v41  ;;  %v3755_v47 = vmax.f32 %v11521_v45, 0.0  ;;  %v3811_v17 = vld [vmem:[#allocation2 + $0x59] sm:$0xff] }
 0x327   : > { %v3814_v48 = vld [vmem:[#allocation2 + $0x71] sm:$0xff]  ;;  %3784 = vst [vmem:[#allocation2 + $0x80] sm:$0xff] %v3752_v14  ;;  %v3753_v56 = vmax.f32 %v3721_v11, 0.0  ;;  %v3843_v26 = vmax.f32 %v3747_v39, %v3811_v17 }
 0x328   : > { %v3812_v9 = vld [vmem:[#allocation2 + $0x61] sm:$0xff]  ;;  %v3813_v6 = vld [vmem:[#allocation2 + $0x69] sm:$0xff]  ;;  %v3846_v10 = vmax.f32 %v3750_v37, %v3814_v48  ;;  %3787 = vst [vmem:[#allocation2 + $0x98] sm:$0xff] %v3755_v47 }
 0x329   : > { %v3844_v3 = vmax.f32 %v3748_v32, %v3812_v9  ;;  %v3845_v13 = vmax.f32 %v3749_v0, %v3813_v6  ;;  %3785 = vst [vmem:[#allocation2 + $0x88] sm:$0xff] %v3753_v56  ;;  %v9046_v36 = vpop.f32.mrb[16].mxu0  ;;  %v3937_v62 = vmax.f32 %v3841_v38, %v3843_v26 }
 0x32a   : > { %3878 = vst [vmem:[#allocation2 + $0x70] sm:$0xff] %v3846_v10  ;;  %v3726_v25 = vadd.f32 %v9046_v36, %v11494_v27  ;;  %v3606_v1 = vpop.f32.mrb[17].mxu0 }
 0x32b   : > { %3877 = vst [vmem:[#allocation2 + $0x68] sm:$0xff] %v3845_v13  ;;  %v3724_v34 = vadd.f32 %v11494_v27, %v3606_v1  ;;  %v9047_v51 = vpop.f32.mrb[18].mxu0  ;;  %v11531_v39 = vpack.c.bf16 %v3937_v62, %v3936_v23  ;;  %3876 = vst [vmem:[#allocation2 + $0x60] sm:$0xff] %v3844_v3  ;;  %v3938_v2 = vmax.f32 %v3842_v21, %v3844_v3 }
 0x32c   : > { %v3939_v52 = vmax.f32 %v3843_v26, %v3845_v13  ;;  %v3758_v19 = vmax.f32 %v3726_v25, 0.0  ;;  %v11534_v12 = vadd.f32 %v9047_v51, %v11494_v27  ;;  %v3609_v50 = vpop.f32.mrb[19].mxu0  ;;  %v3940_v37 = vmax.f32 %v3844_v3, %v3846_v10 }
 0x32d   : > { %v3756_v15 = vmax.f32 %v3724_v34, 0.0  ;;  %v3725_v32 = vadd.f32 %v11494_v27, %v3609_v50 }
 0x32e   : > { %v11537_v16 = vpack.c.bf16 %v3939_v52, %v3938_v2  ;;  %3790 = vst [vmem:[#allocation2 + $0xb0] sm:$0xff] %v3758_v19  ;;  %v3759_v43 = vmax.f32 %v11534_v12, 0.0  ;;  %v3815_v40 = vld [vmem:[#allocation2 + $0x79] sm:$0xff] }
 0x32f   : > { %v3818_v0 = vld [vmem:[#allocation2 + $0x91] sm:$0xff]  ;;  %3788 = vst [vmem:[#allocation2 + $0xa0] sm:$0xff] %v3756_v15  ;;  %v3757_v4 = vmax.f32 %v3725_v32, 0.0  ;;  %v3847_v57 = vmax.f32 %v3751_v30, %v3815_v40 }
 0x330   : > { %v3816_v54 = vld [vmem:[#allocation2 + $0x81] sm:$0xff]  ;;  %v3817_v33 = vld [vmem:[#allocation2 + $0x89] sm:$0xff]  ;;  %v3850_v21 = vmax.f32 %v3754_v41, %v3818_v0  ;;  %3791 = vst [vmem:[#allocation2 + $0xb8] sm:$0xff] %v3759_v43 }
 0x331   : > { %v3848_v38 = vmax.f32 %v3752_v14, %v3816_v54  ;;  %v3849_v22 = vmax.f32 %v3753_v56, %v3817_v33  ;;  %3789 = vst [vmem:[#allocation2 + $0xa8] sm:$0xff] %v3757_v4  ;;  %v9050_v28 = vpop.f32.mrb[20].mxu0  ;;  %3879 = vst [vmem:[#allocation2 + $0x78] sm:$0xff] %v3847_v57  ;;  %v3941_v31 = vmax.f32 %v3845_v13, %v3847_v57 }
 0x332   : > { %3882 = vst [vmem:[#allocation2 + $0x90] sm:$0xff] %v3850_v21  ;;  %v3730_v49 = vadd.f32 %v9050_v28, %v11494_v27  ;;  %v3622_v61 = vpop.f32.mrb[21].mxu0 }
 0x333   : > { %3881 = vst [vmem:[#allocation2 + $0x88] sm:$0xff] %v3849_v22  ;;  %v3728_v53 = vadd.f32 %v11494_v27, %v3622_v61  ;;  %v9051_v30 = vpop.f32.mrb[22].mxu0  ;;  %v11546_v8 = vpack.c.bf16 %v3941_v31, %v3940_v37  ;;  %3880 = vst [vmem:[#allocation2 + $0x80] sm:$0xff] %v3848_v38  ;;  %v3942_v55 = vmax.f32 %v3846_v10, %v3848_v38 }
 0x334   : > { %v3943_v44 = vmax.f32 %v3847_v57, %v3849_v22  ;;  %v3762_v46 = vmax.f32 %v3730_v49, 0.0  ;;  %v11549_v41 = vadd.f32 %v9051_v30, %v11494_v27  ;;  %v3625_v20 = vpop.f32.mrb[23].mxu0  ;;  %v3944_v23 = vmax.f32 %v3848_v38, %v3850_v21 }
 0x335   : > { %v3760_v14 = vmax.f32 %v3728_v53, 0.0  ;;  %v3729_v11 = vadd.f32 %v11494_v27, %v3625_v20 }
 0x336   : > { %v11552_v17 = vpack.c.bf16 %v3943_v44, %v3942_v55  ;;  %3794 = vst [vmem:[#allocation2 + $0xd0] sm:$0xff] %v3762_v46  ;;  %v3763_v48 = vmax.f32 %v11549_v41, 0.0  ;;  %v3819_v56 = vld [vmem:[#allocation2 + $0x99] sm:$0xff] }
 0x337   : > { %v3822_v26 = vld [vmem:[#allocation2 + $0xb1] sm:$0xff]  ;;  %3792 = vst [vmem:[#allocation2 + $0xc0] sm:$0xff] %v3760_v14  ;;  %v3761_v9 = vmax.f32 %v3729_v11, 0.0  ;;  %v3851_v6 = vmax.f32 %v3755_v47, %v3819_v56 }
 0x338   : > { %v3821_v10 = vld [vmem:[#allocation2 + $0xa9] sm:$0xff]  ;;  %v3854_v3 = vmax.f32 %v3758_v19, %v3822_v26  ;;  %3795 = vst [vmem:[#allocation2 + $0xd8] sm:$0xff] %v3763_v48  ;;  %v3820_v13 = vld [vmem:[#allocation2 + $0xa1] sm:$0xff] }
 0x339   : > { %v3853_v36 = vmax.f32 %v3757_v4, %v3821_v10  ;;  %3793 = vst [vmem:[#allocation2 + $0xc8] sm:$0xff] %v3761_v9  ;;  %v9054_v62 = vpop.f32.mrb[24].mxu0  ;;  %v3852_v25 = vmax.f32 %v3756_v15, %v3820_v13  ;;  %3883 = vst [vmem:[#allocation2 + $0x98] sm:$0xff] %v3851_v6  ;;  %v3945_v1 = vmax.f32 %v3849_v22, %v3851_v6 }
 0x33a   : > { %3886 = vst [vmem:[#allocation2 + $0xb0] sm:$0xff] %v3854_v3  ;;  %v11560_v34 = vadd.f32 %v9054_v62, %v11494_v27  ;;  %v3638_v51 = vpop.f32.mrb[25].mxu0 }
 0x33b   : > { %v11563_v45 = vadd.f32 %v11494_v27, %v3638_v51  ;;  %v9055_v47 = vpop.f32.mrb[26].mxu0  ;;  %v3948_v2 = vmax.f32 %v3852_v25, %v3854_v3  ;;  %3884 = vst [vmem:[#allocation2 + $0xa0] sm:$0xff] %v3852_v25  ;;  %3885 = vst [vmem:[#allocation2 + $0xa8] sm:$0xff] %v3853_v36  ;;  %v11565_v52 = vpack.c.bf16 %v3945_v1, %v3944_v23 }
 0x33c   : > { %v3946_v19 = vmax.f32 %v3850_v21, %v3852_v25  ;;  %v3766_v50 = vmax.f32 %v11560_v34, 0.0  ;;  %v11569_v37 = vadd.f32 %v9055_v47, %v11494_v27  ;;  %v3641_v15 = vpop.f32.mrb[27].mxu0  ;;  %v3947_v32 = vmax.f32 %v3851_v6, %v3853_v36 }
 0x33d   : > { %v3764_v40 = vmax.f32 %v11563_v45, 0.0  ;;  %v3733_v0 = vadd.f32 %v11494_v27, %v3641_v15 }
 0x33e   : > { %3798 = vst [vmem:[#allocation2 + $0xf0] sm:$0xff] %v3766_v50  ;;  %v3767_v4 = vmax.f32 %v11569_v37, 0.0  ;;  %v3823_v57 = vld [vmem:[#allocation2 + $0xb9] sm:$0xff]  ;;  %v11574_v54 = vpack.c.bf16 %v3947_v32, %v3946_v19 }
 0x33f   : > { %v3826_v33 = vld [vmem:[#allocation2 + $0xd1] sm:$0xff]  ;;  %3796 = vst [vmem:[#allocation2 + $0xe0] sm:$0xff] %v3764_v40  ;;  %v3765_v21 = vmax.f32 %v3733_v0, 0.0  ;;  %v3855_v38 = vmax.f32 %v3759_v43, %v3823_v57 }
 0x340   : > { %v3824_v22 = vld [vmem:[#allocation2 + $0xc1] sm:$0xff]  ;;  %v3825_v28 = vld [vmem:[#allocation2 + $0xc9] sm:$0xff]  ;;  %v3858_v31 = vmax.f32 %v3762_v46, %v3826_v33  ;;  %3799 = vst [vmem:[#allocation2 + $0xf8] sm:$0xff] %v3767_v4 }
 0x341   : > { %v3856_v49 = vmax.f32 %v3760_v14, %v3824_v22  ;;  %v3857_v61 = vmax.f32 %v3761_v9, %v3825_v28  ;;  %3797 = vst [vmem:[#allocation2 + $0xe8] sm:$0xff] %v3765_v21  ;;  %v9058_v53 = vpop.f32.mrb[28].mxu0  ;;  %3887 = vst [vmem:[#allocation2 + $0xb8] sm:$0xff] %v3855_v38  ;;  %v3949_v30 = vmax.f32 %v3853_v36, %v3855_v38 }
 0x342   : > { %3890 = vst [vmem:[#allocation2 + $0xd0] sm:$0xff] %v3858_v31  ;;  %v3738_v55 = vadd.f32 %v9058_v53, %v11494_v27  ;;  %v3654_v44 = vpop.f32.mrb[29].mxu0 }
 0x343   : > { %3889 = vst [vmem:[#allocation2 + $0xc8] sm:$0xff] %v3857_v61  ;;  %v3736_v12 = vadd.f32 %v11494_v27, %v3654_v44  ;;  %v9059_v43 = vpop.f32.mrb[30].mxu0  ;;  %v9502_v20 = vpack.c.bf16 %v3949_v30, %v3948_v2  ;;  %3888 = vst [vmem:[#allocation2 + $0xc0] sm:$0xff] %v3856_v49  ;;  %v3950_v46 = vmax.f32 %v3854_v3, %v3856_v49  ;;  %v3968_v44 = vshra.s32 %v11259_v58, 3 }
 0x344   : > { %v3951_v23 = vmax.f32 %v3855_v38, %v3857_v61  ;;  %v3770_v11 = vmax.f32 %v3738_v55, 0.0  ;;  %v3739_v14 = vadd.f32 %v9059_v43, %v11494_v27  ;;  %v3657_v56 = vpop.f32.mrb[31].mxu0  ;;  %v3952_v26 = vmax.f32 %v3856_v49, %v3858_v31 }
 0x345   : > { %v3768_v9 = vmax.f32 %v3736_v12, 0.0  ;;  %v3737_v6 = vadd.f32 %v11494_v27, %v3657_v56  ;;  %9503 = vmatprep.subr.bf16.mxu1 %v9502_v20  ;;  %v11597_v12 = vand.u32 7, %v11259_v58  ;;  %v12895_v20 = vld [vmem:[#allocation6_spill] sm:$0xff]  ;;  %v12896_v56 = vld [vmem:[#allocation9_spill] sm:$0xff] }
 0x346   : > { %v9506_v10 = vpack.c.bf16 %v3951_v23, %v3950_v46  ;;  %3802 = vst [vmem:[#allocation2 + $0x110] sm:$0xff] %v3770_v11  ;;  %v3771_v13 = vmax.f32 %v3739_v14, 0.0  ;;  %9505 = vmatpush3.bf16.msra.mxu1 %v11518_v35  ;;  %v3827_v36 = vld [vmem:[#allocation2 + $0xd9] sm:$0xff]  ;;  %v3969_v46 = vshra.s32 %v12895_v20, 3  ;;  %v11603_v23 = vand.u32 7, %v12895_v20 }
 0x347   : > { %v3830_v62 = vld [vmem:[#allocation2 + $0xf1] sm:$0xff]  ;;  %3800 = vst [vmem:[#allocation2 + $0x100] sm:$0xff] %v3768_v9  ;;  %v3769_v25 = vmax.f32 %v3737_v6, 0.0  ;;  %v3859_v3 = vmax.f32 %v3763_v48, %v3827_v36  ;;  %v3992_v43 = vshll.u32 %v11597_v12, 1  ;;  %vm4185_vm13 = vcmp.ge.s32.totalorder %v11597_v12, 1 }
 0x348   : > { %9507 = vmatprep.subr.bf16.mxu1 %v9506_v10  ;;  %v3828_v1 = vld [vmem:[#allocation2 + $0xe1] sm:$0xff]  ;;  %v3829_v34 = vld [vmem:[#allocation2 + $0xe9] sm:$0xff]  ;;  %v3862_v51 = vmax.f32 %v3766_v50, %v3830_v62  ;;  %3803 = vst [vmem:[#allocation2 + $0x118] sm:$0xff] %v3771_v13  ;;  %v3993_v14 = vshll.u32 %v11603_v23, 1 }
 0x349   : > { %v3860_v45 = vmax.f32 %v3764_v40, %v3828_v1  ;;  %v3861_v27 = vmax.f32 %v3765_v21, %v3829_v34  ;;  %3801 = vst [vmem:[#allocation2 + $0x108] sm:$0xff] %v3769_v25  ;;  %3891 = vst [vmem:[#allocation2 + $0xd8] sm:$0xff] %v3859_v3  ;;  %v3953_v47 = vmax.f32 %v3857_v61, %v3859_v3 }
 0x34a   : > { %3894 = vst [vmem:[#allocation2 + $0xf0] sm:$0xff] %v3862_v51  ;;  %9509 = vmatpush3.bf16.msra.mxu1 %v11524_v18 }
 0x34b   : > { %3893 = vst [vmem:[#allocation2 + $0xe8] sm:$0xff] %v3861_v27  ;;  %v9510_v35 = vpack.c.bf16 %v3953_v47, %v3952_v26  ;;  %3892 = vst [vmem:[#allocation2 + $0xe0] sm:$0xff] %v3860_v45  ;;  %v3954_v2 = vmax.f32 %v3858_v31, %v3860_v45  ;;  %v3955_v19 = vmax.f32 %v3859_v3, %v3861_v27  ;;  %v3970_v26 = vshra.s32 %v12896_v56, 3  ;;  %v12898_v3 = vld [vmem:[#allocation10_spill] sm:$0xff] }
 0x34c   : > { %v3956_v15 = vmax.f32 %v3860_v45, %v3862_v51  ;;  %v3972_v1 = vshra.s32 %v12898_v3, 3  ;;  %v11632_v34 = vand.u32 7, %v12898_v3  ;;  %v9991_v45 = vld [vmem:[%s12644_s3 + $0x50] sm:$0xff]   ;;  %v10001_v3 = vld [vmem:[%s12644_s3 + $0x20] sm:$0xff]  }
 0x34d   : > { %9511 = vmatprep.subr.bf16.mxu1 %v9510_v35  ;;  %v9514_v41 = vpack.c.bf16 %v3955_v19, %v3954_v2  ;;  %v3986_v36 = vshll.u32 %v3970_v26, 5  ;;  %v12899_v2 = vld [vmem:[#allocation8_spill] sm:$0xff] }
 0x34e   : > { %9513 = vmatpush3.bf16.msra.mxu1 %v11531_v39  ;;  %v3831_v48 = vld [vmem:[#allocation2 + $0xf9] sm:$0xff]  ;;  %v3988_v47 = vshll.u32 %v3972_v1, 5  ;;  %v3996_v35 = vshll.u32 %v11632_v34, 1  ;;  %v3973_v19 = vshra.s32 %v12899_v2, 3  ;;  %v9999_v26 = vld [vmem:[%s12644_s3 + $0x10] sm:$0xff]  }
 0x34f   : > { %v3834_v50 = vld [vmem:[#allocation2 + $0x111] sm:$0xff]  ;;  %v3835_v32 = vld [vmem:[#allocation2 + $0x119] sm:$0xff]  ;;  %9515 = vmatprep.subr.bf16.mxu1 %v9514_v41  ;;  %v3863_v40 = vmax.f32 %v3767_v4, %v3831_v48 }
 0x350   : > { %v3866_v0 = vmax.f32 %v3770_v11, %v3834_v50  ;;  %v3867_v57 = vmax.f32 %v3771_v13, %v3835_v32  ;;  %v3832_v18 = vld [vmem:[#allocation2 + $0x101] sm:$0xff]  ;;  %v3833_v33 = vld [vmem:[#allocation2 + $0x109] sm:$0xff]  ;;  %v3985_v11 = vshll.u32 %v3969_v46, 5  ;;  %v4004_v41 = vadd.s32 %v3996_v35, %v3988_v47 }
 0x351   : > { %v3864_v21 = vmax.f32 %v3768_v9, %v3832_v18  ;;  %v3865_v38 = vmax.f32 %v3769_v25, %v3833_v33  ;;  %3895 = vst [vmem:[#allocation2 + $0xf8] sm:$0xff] %v3863_v40  ;;  %v3957_v22 = vmax.f32 %v3861_v27, %v3863_v40  ;;  %v9989_v9 = vld [vmem:[%s12644_s3 + $0x40] sm:$0xff]   ;;  %v9990_v25 = vld [vmem:[%s12644_s3 + $0x48] sm:$0xff]   ;;  %v3989_v48 = vshll.u32 %v3973_v19, 5 }
 0x352   : > { %3899 = vst [vmem:[#allocation2 + $0x118] sm:$0xff] %v3867_v57  ;;  %v3963_v28 = vmax.f32 %v3867_v57, %v11434_v24  ;;  %3898 = vst [vmem:[#allocation2 + $0x110] sm:$0xff] %v3866_v0  ;;  %9517 = vmatpush3.bf16.msra.mxu1 %v11537_v16  ;;  %v3962_v39 = vmax.f32 %v3866_v0, %v11434_v24  ;;  %v3984_v16 = vshll.u32 %v3968_v44, 5  ;;  %v12900_v32 = vld [vmem:[#allocation11_spill] sm:$0xff] }
 0x353   : > { %v3961_v31 = vmax.f32 %v3865_v38, %v3867_v57  ;;  %3897 = vst [vmem:[#allocation2 + $0x108] sm:$0xff] %v3865_v38  ;;  %v9518_v37 = vpack.c.bf16 %v3957_v22, %v3956_v15  ;;  %3896 = vst [vmem:[#allocation2 + $0x100] sm:$0xff] %v3864_v21  ;;  %v3958_v4 = vmax.f32 %v3862_v51, %v3864_v21  ;;  %v11645_v15 = vand.u32 7, %v12899_v2  ;;  %v9993_v22 = vld [vmem:[%s12644_s3 + $0x60] sm:$0xff]   ;;  %v10002_v2 = vld [vmem:[%s12644_s3 + $0x28] sm:$0xff]  }
 0x354   : > { %v3959_v49 = vmax.f32 %v3863_v40, %v3865_v38  ;;  %v3960_v61 = vmax.f32 %v3864_v21, %v3866_v0  ;;  %v9530_v53 = vpack.c.bf16 %v3963_v28, %v3962_v39  ;;  %v4001_v13 = vadd.s32 %v3993_v14, %v3985_v11  ;;  %v9992_v38 = vld [vmem:[%s12644_s3 + $0x58] sm:$0xff]   ;;  %v9997_v39 = vld [vmem:[%s12644_s3] sm:$0xff]  }
 0x355   : > { %9519 = vmatprep.subr.bf16.mxu1 %v9518_v37  ;;  %v3997_v50 = vshll.u32 %v11645_v15, 1  ;;  %v3974_v40 = vshra.s32 %v12900_v32, 3  ;;  %v11654_v0 = vand.u32 7, %v12900_v32  ;;  %vm4018_vm7 = vcmp.eq.s32.totalorder %v11484_v5, %v4004_v41  ;;  %v9996_v28 = vld [vmem:[%s12644_s3 + $0x78] sm:$0xff]  }
 0x356   : > { %v9522_v30 = vpack.c.bf16 %v3959_v49, %v3958_v4  ;;  %9521 = vmatpush3.bf16.msra.mxu1 %v11546_v8  ;;  %v9526_v55 = vpack.c.bf16 %v3961_v31, %v3960_v61  ;;  %v4000_v8 = vadd.s32 %v3992_v43, %v3984_v16  ;;  %vm4012_vm3 = vcmp.eq.s32.totalorder %v11484_v5, %v4001_v13 }
 0x357   : > { %vm4011_vm11 = vcmp.eq.s32.totalorder %v11480_v7, %v4001_v13  ;;  %v4005_v57 = vadd.s32 %v3997_v50, %v3989_v48  ;;  %v3990_v18 = vshll.u32 %v3974_v40, 5  ;;  %v3998_v33 = vshll.u32 %v11654_v0, 1  ;;  %v10003_v50 = vld [vmem:[%s12644_s3 + $0x30] sm:$0xff]   ;;  %v10005_v40 = vld [vmem:[%s12644_s3 + $0x80] sm:$0xff]  }
 0x358   : > { %9523 = vmatprep.subr.bf16.mxu1 %v9522_v30  ;;  %vm4010_vm0 = vcmp.eq.s32.totalorder %v11484_v5, %v4000_v8  ;;  %vm4009_vm15 = vcmp.eq.s32.totalorder %v11480_v7, %v4000_v8  ;;  %vm4017_vm9 = vcmp.eq.s32.totalorder %v11480_v7, %v4004_v41  ;;  %v9998_v8 = vld [vmem:[%s12644_s3 + $0x8] sm:$0xff]  }
 0x359   : > { %vm4020_vm10 = vcmp.eq.s32.totalorder %v11484_v5, %v4005_v57  ;;  %v4006_v21 = vadd.s32 %v3998_v33, %v3990_v18  ;;  %vm4019_vm6 = vcmp.eq.s32.totalorder %v11480_v7, %v4005_v57 }
 0x35a   : > { %9525 = vmatpush3.bf16.msra.mxu1 %v11552_v17  ;;  %v11609_v17 = vand.u32 7, %v12896_v56 }
 0x35b   : > { %9527 = vmatprep.subr.bf16.mxu1 %v9526_v55  ;;  %vm4022_vm8 = vcmp.eq.s32.totalorder %v11484_v5, %v4006_v21  ;;  %vm4021_vm12 = vcmp.eq.s32.totalorder %v11480_v7, %v4006_v21  ;;  %v10048_v21 = vld [vmem:[%s12644_s3 + $0x1d8] sm:$0xff]  }
 0x35c   : > { %v3994_v62 = vshll.u32 %v11609_v17, 1 }
 0x35e   : > { %9529 = vmatpush3.bf16.msra.mxu1 %v11565_v52  ;;  %v12897_v52 = vld [vmem:[#allocation7_spill] sm:$0xff]  ;;  %v4002_v51 = vadd.s32 %v3994_v62, %v3986_v36  ;;  %v10000_v62 = vld [vmem:[%s12644_s3 + $0x18] sm:$0xff]  }
 0x35f   : > { %9531 = vmatprep.subr.bf16.mxu1 %v9530_v53  ;;  %v3971_v6 = vshra.s32 %v12897_v52, 3  ;;  %v11619_v10 = vand.u32 7, %v12897_v52 }
 0x360   : > { %vm4014_vm2 = vcmp.eq.s32.totalorder %v11484_v5, %v4002_v51  ;;  %vm4013_vm1 = vcmp.eq.s32.totalorder %v11480_v7, %v4002_v51 }
 0x361   : > { %v3987_v42 = vshll.u32 %v3971_v6, 5 }
 0x362   : > { %9533 = vmatpush3.bf16.msra.mxu1 %v11574_v54  ;;  %v3995_v54 = vshll.u32 %v11619_v10, 1 }
 0x363   : > { %9060 = vmatprep.subr.bf16.mxu1 %v9989_v9 }
 0x364   : > { %v4003_v27 = vadd.s32 %v3995_v54, %v3987_v42 }
 0x365   : > { %7614 = vmatmul.mubr.msk.f32.vlgmr.msra.gmra.mrb[0].mxu1 %vm4007_vm14, %v10213_v59  ;;  %vm12901_vm14 = vmmov 1  }
 0x366   : > { %7615 = vmatprep.mubr.msk.f32.mxu1 %vm4010_vm0, %v10213_v59  ;;  %9061 = vmatpush3.bf16.msra.mxu1 %v9989_v9  ;;  %vm4016_vm4 = vcmp.eq.s32.totalorder %v11484_v5, %v4003_v27  ;;  %vm4015_vm5 = vcmp.eq.s32.totalorder %v11480_v7, %v4003_v27  ;;  %v9994_v5 = vld [vmem:[%s12644_s3 + $0x68] sm:$0xff]   ;;  %vm7661_vm0 = vmpackc.low %vm4185_vm13, %vm12901_vm14 }
 0x367   : > { %9062 = vmatprep.subr.bf16.mxu1 %v9990_v25 }
 0x369   : > { %7616 = vmatmul.mubr.msk.f32.gmra.mrb[2].mxu1 %vm4009_vm15, %v10213_v59  ;;  %vm4186_vm15 = vcmp.ge.s32.totalorder %v11603_v23, 1 }
 0x36a   : > { %7617 = vmatprep.mubr.msk.f32.mxu1 %vm4012_vm3, %v10213_v59  ;;  %9063 = vmatpush3.bf16.msra.mxu1 %v9990_v25  ;;  %vm4187_vm3 = vcmp.ge.s32.totalorder %v11609_v17, 1 }
 0x36b   : > { %9064 = vmatprep.subr.bf16.mxu1 %v9991_v45 }
 0x36d   : > { %7618 = vmatmul.mubr.msk.f32.gmra.mrb[4].mxu1 %vm4011_vm11, %v10213_v59  ;;  %vm4188_vm11 = vcmp.ge.s32.totalorder %v11619_v10, 1 }
 0x36e   : > { %7619 = vmatprep.mubr.msk.f32.mxu1 %vm4014_vm2, %v10213_v59  ;;  %9065 = vmatpush3.bf16.msra.mxu1 %v9991_v45  ;;  %vm4189_vm2 = vcmp.ge.s32.totalorder %v11632_v34, 1 }
 0x36f   : > { %9066 = vmatprep.subr.bf16.mxu1 %v9992_v38 }
 0x371   : > { %7620 = vmatmul.mubr.msk.f32.gmra.mrb[6].mxu1 %vm4013_vm1, %v10213_v59  ;;  %vm11782_vm1 = vmpackc.low %vm4187_vm3, %vm4186_vm15  ;;  %vm4504_vm15 = vcmp.lt.s32.totalorder %v11632_v34, 7  ;;  %v10014_v34 = vld [vmem:[%s12644_s3 + $0xc8] sm:$0xff]  }
 0x372   : > { %7621 = vmatprep.mubr.msk.f32.mxu1 %vm4016_vm4, %v10213_v59  ;;  %9067 = vmatpush3.bf16.msra.mxu1 %v9992_v38  ;;  %vm11792_vm4 = vmpackc.low %vm4189_vm2, %vm4188_vm11  ;;  %vm4505_vm2 = vcmp.lt.s32.totalorder %v11645_v15, 7 }
 0x373   : > { %9068 = vmatprep.subr.bf16.mxu1 %v9993_v22 }
 0x375   : > { %7622 = vmatmul.mubr.msk.f32.gmra.mrb[8].mxu1 %vm4015_vm5, %v10213_v59  ;;  %vm4190_vm5 = vcmp.ge.s32.totalorder %v11645_v15, 1 }
 0x376   : > { %7623 = vmatprep.mubr.msk.f32.mxu1 %vm4018_vm7, %v10213_v59  ;;  %9069 = vmatpush3.bf16.msra.mxu1 %v9993_v22  ;;  %vm4191_vm7 = vcmp.ge.s32.totalorder %v11654_v0, 1 }
 0x377   : > { %9070 = vmatprep.subr.bf16.mxu1 %v9994_v5 }
 0x379   : > { %7624 = vmatmul.mubr.msk.f32.gmra.mrb[10].mxu1 %vm4017_vm9, %v10213_v59  ;;  %vm4500_vm9 = vcmp.lt.s32.totalorder %v11597_v12, 7  ;;  %v10034_v12 = vld [vmem:[%s12644_s3 + $0x168] sm:$0xff]  }
 0x37a   : > { %7625 = vmatprep.mubr.msk.f32.mxu1 %vm4020_vm10, %v10213_v59  ;;  %9071 = vmatpush3.bf16.msra.mxu1 %v9994_v5  ;;  %vm11823_vm10 = vmpackc.low %vm4191_vm7, %vm4190_vm5  ;;  %vm4506_vm7 = vcmp.lt.s32.totalorder %v11654_v0, 7  ;;  %v10049_v5 = vld [vmem:[%s12644_s3 + $0x1e0] sm:$0xff]  }
 0x37d   : > { %7626 = vmatmul.mubr.msk.f32.gmra.mrb[12].mxu1 %vm4019_vm6, %v10213_v59  ;;  %vm7697_vm6 = vmpackc.low %vm4500_vm9, %vm12901_vm14 }
 0x37e   : > { %7627 = vmatprep.mubr.msk.f32.mxu1 %vm4022_vm8, %v10213_v59  ;;  %vm4501_vm8 = vcmp.lt.s32.totalorder %v11603_v23, 7 }
 0x381   : > { %7628 = vmatmul.mubr.msk.f32.gmra.mrb[14].mxu1 %vm4021_vm12, %v10213_v59  ;;  %v9995_v59 = vld [vmem:[%s12644_s3 + $0x70] sm:$0xff]   ;;  %vm4502_vm12 = vcmp.lt.s32.totalorder %v11609_v17, 7 }
 0x382   : > { %9072 = vmatprep.subr.bf16.mxu1 %v9995_v59  ;;  %vm11869_vm3 = vmpackc.low %vm4502_vm12, %vm4501_vm8 }
 0x383   : > { %9073 = vmatpush3.bf16.msra.mxu1 %v9995_v59  ;;  %v10006_v59 = vld [vmem:[%s12644_s3 + $0x88] sm:$0xff]   ;;  %vm11908_vm8 = vmpackc.low %vm4506_vm7, %vm4505_vm2 }
 0x384   : > { %9074 = vmatprep.subr.bf16.mxu1 %v9996_v28 }
 0x387   : > { %9075 = vmatpush3.bf16.msra.mxu1 %v9996_v28 }
 0x388   : > { %9084 = vmatprep.subr.bf16.mxu1 %v9997_v39 }
 0x438   : > { %v8393_v31 = vpop.f32.mrb[0].mxu1 }
 0x439   : > { %v8394_v37 = vpop.f32.mrb[1].mxu1 }
 0x43a   : > { %v11691_v4 = vadd.f32 %v8394_v37, %v8393_v31 }
 0x43c   : > { %4160 = vst [vmem:[#allocation2 + $0x20] sm:$0xff] %v11691_v4  ;;  %v8396_v49 = vpop.f32.mrb[2].mxu1  ;;  %v4244_v61 = vpack.c.bf16 %v11691_v4, %v11434_v24 }
 0x43d   : > { %v8397_v53 = vpop.f32.mrb[3].mxu1 }
 0x43e   : > { %v11696_v30 = vadd.f32 %v8397_v53, %v8396_v49  ;;  %9076 = vmatprep.mubr.bf16.mxu1 %v4244_v61  ;;  %v10027_v61 = vld [vmem:[%s12644_s3 + $0x130] sm:$0xff]  }
 0x440   : > { %4161 = vst [vmem:[#allocation2 + $0x28] sm:$0xff] %v11696_v30  ;;  %v8399_v55 = vpop.f32.mrb[4].mxu1  ;;  %v4831_v44 = vpack.c.bf16 %v11696_v30, %v11691_v4  ;;  %v10028_v4 = vld [vmem:[%s12644_s3 + $0x138] sm:$0xff]  }
 0x441   : > { %v8400_v16 = vpop.f32.mrb[5].mxu1 }
 0x442   : > { %v11701_v43 = vadd.f32 %v8400_v16, %v8399_v55  ;;  %v10008_v55 = vld [vmem:[%s12644_s3 + $0x98] sm:$0xff]   ;;  %v11837_v16 = vld [vmem:[#allocation2] sm:$0xff] }
 0x443   : > { %v11742_v27 = vld [vmem:[#allocation2 + $0x1f] sm:$0xff] }
 0x444   : > { %4162 = vst [vmem:[#allocation2 + $0x30] sm:$0xff] %v11701_v43  ;;  %v8402_v20 = vpop.f32.mrb[6].mxu1  ;;  %v11706_v46 = vpack.c.bf16 %v11701_v43, %v11696_v30  ;;  %v7662_v41 = vpack.c.bf16 %v11742_v27, %v11434_v24  ;;  %v10004_v24 = vld [vmem:[%s12644_s3 + $0x38] sm:$0xff]   ;;  %v10029_v30 = vld [vmem:[%s12644_s3 + $0x140] sm:$0xff]  }
 0x445   : > { %v8403_v11 = vpop.f32.mrb[7].mxu1 }
 0x446   : > { %v11711_v14 = vadd.f32 %v8403_v11, %v8402_v20  ;;  %9077 = vmatmul.mubr.bf16.vlgmr.msra.gmra.mrb[16].mxu1 %v11706_v46  ;;  %v10010_v11 = vld [vmem:[%s12644_s3 + $0xa8] sm:$0xff]  }
 0x447   : > { %9085 = vmatpush3.bf16.msra.mxu1 %v9997_v39  ;;  %v11780_v33 = vld [vmem:[#allocation2 + $0x27] sm:$0xff]  ;;  %v10007_v39 = vld [vmem:[%s12644_s3 + $0x90] sm:$0xff]  }
 0x448   : > { %4163 = vst [vmem:[#allocation2 + $0x38] sm:$0xff] %v11711_v14  ;;  %v8405_v56 = vpop.f32.mrb[8].mxu1  ;;  %9086 = vmatprep.subr.bf16.mxu1 %v9998_v8  ;;  %v4832_v9 = vpack.c.bf16 %v11711_v14, %v11701_v43  ;;  %v11817_v37 = vld [vmem:[#allocation2 + $0x21] sm:$0xff]  ;;  %v10032_v43 = vld [vmem:[%s12644_s3 + $0x158] sm:$0xff]  }
 0x449   : > { %v8406_v52 = vpop.f32.mrb[9].mxu1  ;;  %v7698_v20 = vpack.c.bf16 %v11817_v37, %v11837_v16 }
 0x44a   : > { %v11720_v6 = vadd.f32 %v8406_v52, %v8405_v56  ;;  %v10011_v56 = vld [vmem:[%s12644_s3 + $0xb0] sm:$0xff]   ;;  %v10013_v52 = vld [vmem:[%s12644_s3 + $0xc0] sm:$0xff]  }
 0x44b   : > { %9087 = vmatpush3.bf16.msra.mxu1 %v9998_v8  ;;  %v11774_v57 = vld [vmem:[#allocation2 + $0x2f] sm:$0xff]  ;;  %v10009_v8 = vld [vmem:[%s12644_s3 + $0xa0] sm:$0xff]  }
 0x44c   : > { %4164 = vst [vmem:[#allocation2 + $0x40] sm:$0xff] %v11720_v6  ;;  %v8408_v13 = vpop.f32.mrb[10].mxu1  ;;  %9088 = vmatprep.subr.bf16.mxu1 %v9999_v26  ;;  %v11725_v36 = vpack.c.bf16 %v11720_v6, %v11711_v14  ;;  %v11788_v38 = vpack.c.bf16 %v11774_v57, %v11780_v33 }
 0x44d   : > { %v8409_v25 = vpop.f32.mrb[11].mxu1 }
 0x44e   : > { %v11730_v42 = vadd.f32 %v8409_v25, %v8408_v13  ;;  %9080 = vmatprep.mubr.bf16.mxu1 %v11725_v36  ;;  %v11867_v25 = vld [vmem:[#allocation2 + $0x29] sm:$0xff] }
 0x44f   : > { %9089 = vmatpush3.bf16.msra.mxu1 %v9999_v26  ;;  %v11790_v22 = vld [vmem:[#allocation2 + $0x37] sm:$0xff]  ;;  %v7794_v14 = vpack.c.bf16 %v11867_v25, %v11817_v37 }
 0x450   : > { %4165 = vst [vmem:[#allocation2 + $0x48] sm:$0xff] %v11730_v42  ;;  %v8411_v54 = vpop.f32.mrb[12].mxu1  ;;  %9090 = vmatprep.subr.bf16.mxu1 %v10000_v62  ;;  %v4833_v1 = vpack.c.bf16 %v11730_v42, %v11720_v6  ;;  %v10012_v26 = vld [vmem:[%s12644_s3 + $0xb8] sm:$0xff]   ;;  %v10039_v37 = vld [vmem:[%s12644_s3 + $0x190] sm:$0xff]  }
 0x451   : > { %v8412_v51 = vpop.f32.mrb[13].mxu1  ;;  %v11861_v13 = vld [vmem:[#allocation2 + $0x31] sm:$0xff] }
 0x452   : > { %v11740_v45 = vadd.f32 %v8412_v51, %v8411_v54  ;;  %v11875_v23 = vpack.c.bf16 %v11861_v13, %v11867_v25  ;;  %v10015_v51 = vld [vmem:[%s12644_s3 + $0xd0] sm:$0xff]   ;;  %v10036_v6 = vld [vmem:[%s12644_s3 + $0x178] sm:$0xff]   ;;  %v10041_v25 = vld [vmem:[%s12644_s3 + $0x1a0] sm:$0xff]  }
 0x453   : > { %9091 = vmatpush3.bf16.msra.mxu1 %v10000_v62  ;;  %v11778_v18 = vld [vmem:[#allocation2 + $0x3f] sm:$0xff] }
 0x454   : > { %4166 = vst [vmem:[#allocation2 + $0x50] sm:$0xff] %v11740_v45  ;;  %v8414_v47 = vpop.f32.mrb[14].mxu1  ;;  %9092 = vmatprep.subr.bf16.mxu1 %v10001_v3  ;;  %v11747_v35 = vpack.c.bf16 %v11740_v45, %v11730_v42  ;;  %v11801_v28 = vpack.c.bf16 %v11778_v18, %v11790_v22  ;;  %v11877_v17 = vld [vmem:[#allocation2 + $0x39] sm:$0xff] }
 0x455   : > { %v8415_v19 = vpop.f32.mrb[15].mxu1  ;;  %v10037_v42 = vld [vmem:[%s12644_s3 + $0x180] sm:$0xff]  }
 0x456   : > { %v11757_v48 = vadd.f32 %v8415_v19, %v8414_v47  ;;  %9081 = vmatmul.mubr.bf16.gmra.mrb[20].mxu1 %v11747_v35 }
 0x457   : > { %9093 = vmatpush3.bf16.msra.mxu1 %v10001_v3  ;;  %9100 = vmatprep.mubr.msk.bf16.mxu1 %vm7661_vm0, %v7662_v41  ;;  %v11819_v49 = vld [vmem:[#allocation2 + $0x47] sm:$0xff]  ;;  %vm4503_vm0 = vcmp.lt.s32.totalorder %v11619_v10, 7 }
 0x458   : > { %4167 = vst [vmem:[#allocation2 + $0x58] sm:$0xff] %v11757_v48  ;;  %9094 = vmatprep.subr.bf16.mxu1 %v10002_v2  ;;  %v4834_v32 = vpack.c.bf16 %v11757_v48, %v11740_v45  ;;  %v11865_v62 = vld [vmem:[#allocation2 + $0x41] sm:$0xff]  ;;  %vm11879_vm11 = vmpackc.low %vm4504_vm15, %vm4503_vm0  ;;  %vm10214_vm15 = vmmov 0  }
 0x459   : > { %v11888_v3 = vpack.c.bf16 %v11865_v62, %v11877_v17  ;;  %v10038_v45 = vld [vmem:[%s12644_s3 + $0x188] sm:$0xff]   ;;  %v10053_v41 = vld [vmem:[%s12644_s3 + $0x200] sm:$0xff]   ;;  %9471 = vmatprep.mubr.msk.bf16.mxu0 %vm10214_vm15, %v11837_v16 }
 0x45a   : > { %v10062_v10 = vld [vmem:[%s12646_s5 + $0x200] sm:$0xff]  }
 0x45b   : > { %9095 = vmatpush3.bf16.msra.mxu1 %v10002_v2  ;;  %v11814_v31 = vld [vmem:[#allocation2 + $0x4f] sm:$0xff]  ;;  %9456 = vmatpush3.bf16.msra.mxu0 %v10062_v10 }
 0x45c   : > { %9096 = vmatprep.subr.bf16.mxu1 %v10003_v50  ;;  %v11829_v53 = vpack.c.bf16 %v11814_v31, %v11819_v49  ;;  %v11904_v2 = vld [vmem:[#allocation2 + $0x49] sm:$0xff]  ;;  %9457 = vmatprep.subr.bf16.mxu0 %v11837_v16 }
 0x45f   : > { %9097 = vmatpush3.bf16.msra.mxu1 %v10003_v50  ;;  %v11901_v47 = vld [vmem:[#allocation2 + $0x51] sm:$0xff] }
 0x460   : > { %9098 = vmatprep.subr.bf16.mxu1 %v10004_v24  ;;  %v11914_v0 = vpack.c.bf16 %v11901_v47, %v11904_v2  ;;  %v10016_v50 = vld [vmem:[%s12644_s3 + $0xd8] sm:$0xff]  }
 0x463   : > { %9099 = vmatpush3.bf16.msra.mxu1 %v10004_v24  ;;  %v7734_v24 = vpack.c.bf16 %v11780_v33, %v11742_v27  ;;  %v10019_v27 = vld [vmem:[%s12644_s3 + $0xf0] sm:$0xff]   ;;  %v10020_v33 = vld [vmem:[%s12644_s3 + $0xf8] sm:$0xff]  }
 0x464   : > { %9108 = vmatprep.subr.bf16.mxu1 %v10005_v40 }
 0x466   : > { %9101 = vmatmul.mubr.msk.bf16.vlgmr.msra.gmra.mrb[16].mxu1 %vm11782_vm1, %v11788_v38 }
 0x467   : > { %9104 = vmatprep.mubr.msk.bf16.mxu1 %vm11792_vm4, %v11801_v28  ;;  %9109 = vmatpush3.bf16.msra.mxu1 %v10005_v40  ;;  %v10017_v40 = vld [vmem:[%s12644_s3 + $0xe0] sm:$0xff]  }
 0x468   : > { %9110 = vmatprep.subr.bf16.mxu1 %v10006_v59 }
 0x46b   : > { %9111 = vmatpush3.bf16.msra.mxu1 %v10006_v59  ;;  %v10018_v59 = vld [vmem:[%s12644_s3 + $0xe8] sm:$0xff]  }
 0x46c   : > { %9112 = vmatprep.subr.bf16.mxu1 %v10007_v39 }
 0x46e   : > { %9105 = vmatmul.mubr.msk.bf16.gmra.mrb[20].mxu1 %vm11823_vm10, %v11829_v53 }
 0x46f   : > { %9113 = vmatpush3.bf16.msra.mxu1 %v10007_v39  ;;  %9124 = vmatprep.mubr.msk.bf16.mxu1 %vm7697_vm6, %v7698_v20  ;;  %vm4184_vm6 = vcmp.ge.s32.totalorder %v11477_v63, 1  ;;  %v10021_v39 = vld [vmem:[%s12644_s3 + $0x100] sm:$0xff]   ;;  %v10022_v20 = vld [vmem:[%s12644_s3 + $0x108] sm:$0xff]  }
 0x470   : > { %9114 = vmatprep.subr.bf16.mxu1 %v10008_v55  ;;  %vm11918_vm12 = vmpackc.low %vm4185_vm13, %vm4184_vm6  ;;  %vm4499_vm13 = vcmp.lt.s32.totalorder %v11477_v63, 7  ;;  %v10033_v63 = vld [vmem:[%s12644_s3 + $0x160] sm:$0xff]  }
 0x473   : > { %9115 = vmatpush3.bf16.msra.mxu1 %v10008_v55  ;;  %v7737_v55 = vpack.c.bf16 %v11790_v22, %v11774_v57  ;;  %v10023_v57 = vld [vmem:[%s12644_s3 + $0x110] sm:$0xff]  }
 0x474   : > { %9116 = vmatprep.subr.bf16.mxu1 %v10009_v8  ;;  %v11961_v22 = vld [vmem:[#allocation2 + $0x57] sm:$0xff] }
 0x475   : > { %v7839_v19 = vpack.c.bf16 %v11837_v16, %v11961_v22 }
 0x477   : > { %9117 = vmatpush3.bf16.msra.mxu1 %v10009_v8  ;;  %v7740_v8 = vpack.c.bf16 %v11819_v49, %v11778_v18  ;;  %v10024_v18 = vld [vmem:[%s12644_s3 + $0x118] sm:$0xff]   ;;  %v10025_v49 = vld [vmem:[%s12644_s3 + $0x120] sm:$0xff]  }
 0x478   : > { %9118 = vmatprep.subr.bf16.mxu1 %v10010_v11 }
 0x47b   : > { %9119 = vmatpush3.bf16.msra.mxu1 %v10010_v11  ;;  %v7743_v11 = vpack.c.bf16 %v11961_v22, %v11814_v31  ;;  %v10026_v31 = vld [vmem:[%s12644_s3 + $0x128] sm:$0xff]   ;;  %v7901_v22 = vld [vmem:[%s12645_s4] ss:$0 sm:$0xff] }
 0x47c   : > { %9120 = vmatprep.subr.bf16.mxu1 %v10011_v56 }
 0x47f   : > { %9121 = vmatpush3.bf16.msra.mxu1 %v10011_v56  ;;  %v10031_v56 = vld [vmem:[%s12644_s3 + $0x150] sm:$0xff]  }
 0x480   : > { %9122 = vmatprep.subr.bf16.mxu1 %v10012_v26 }
 0x483   : > { %9123 = vmatpush3.bf16.msra.mxu1 %v10012_v26 }
 0x484   : > { %9132 = vmatprep.subr.bf16.mxu1 %v10013_v52 }
 0x486   : > { %9125 = vmatmul.mubr.msk.bf16.vlgmr.msra.gmra.mrb[16].mxu1 %vm11869_vm3, %v11875_v23 }
 0x487   : > { %9128 = vmatprep.mubr.msk.bf16.mxu1 %vm11879_vm11, %v11888_v3  ;;  %9133 = vmatpush3.bf16.msra.mxu1 %v10013_v52  ;;  %v12046_v52 = vld [vmem:[#allocation2 + $0x59] sm:$0xff] }
 0x488   : > { %9134 = vmatprep.subr.bf16.mxu1 %v10014_v34 }
 0x48b   : > { %9135 = vmatpush3.bf16.msra.mxu1 %v10014_v34  ;;  %v10043_v34 = vld [vmem:[%s12644_s3 + $0x1b0] sm:$0xff]  }
 0x48c   : > { %9136 = vmatprep.subr.bf16.mxu1 %v10015_v51 }
 0x48e   : > { %9129 = vmatmul.mubr.msk.bf16.gmra.mrb[20].mxu1 %vm11908_vm8, %v11914_v0 }
 0x48f   : > { %9137 = vmatpush3.bf16.msra.mxu1 %v10015_v51  ;;  %9148 = vmatprep.mubr.msk.bf16.mxu1 %vm11918_vm12, %v7734_v24  ;;  %v10045_v51 = vld [vmem:[%s12644_s3 + $0x1c0] sm:$0xff]   ;;  %v10055_v24 = vld [vmem:[%s12644_s3 + $0x210] sm:$0xff]  }
 0x490   : > { %9138 = vmatprep.subr.bf16.mxu1 %v10016_v50 }
 0x493   : > { %9139 = vmatpush3.bf16.msra.mxu1 %v10016_v50  ;;  %v10054_v50 = vld [vmem:[%s12644_s3 + $0x208] sm:$0xff]  }
 0x494   : > { %9140 = vmatprep.subr.bf16.mxu1 %v10017_v40 }
 0x497   : > { %9141 = vmatpush3.bf16.msra.mxu1 %v10017_v40  ;;  %v5324_v40 = vpack.c.bf16 %v11837_v16, %v11757_v48  ;;  %v10059_v48 = vld [vmem:[%s12644_s3 + $0x230] sm:$0xff]  }
 0x498   : > { %9142 = vmatprep.subr.bf16.mxu1 %v10018_v59 }
 0x49b   : > { %9143 = vmatpush3.bf16.msra.mxu1 %v10018_v59  ;;  %v10056_v59 = vld [vmem:[%s12644_s3 + $0x218] sm:$0xff]  }
 0x49c   : > { %9144 = vmatprep.subr.bf16.mxu1 %v10019_v27 }
 0x49f   : > { %9145 = vmatpush3.bf16.msra.mxu1 %v10019_v27  ;;  %v7899_v27 = vpack.c.bf16 %v11837_v16, %v12046_v52 }
 0x4a0   : > { %9146 = vmatprep.subr.bf16.mxu1 %v10020_v33 }
 0x4a3   : > { %9147 = vmatpush3.bf16.msra.mxu1 %v10020_v33  ;;  %v5700_v33 = vshra.s32 %v10517_v60, 2 }
 0x4a4   : > { %9156 = vmatprep.subr.bf16.mxu1 %v10021_v39 }
 0x4a6   : > { %9149 = vmatmul.mubr.msk.bf16.vlgmr.msra.gmra.mrb[16].mxu1 %vm11782_vm1, %v7737_v55  ;;  %v5704_v55 = vshll.u32 %v5700_v33, 4 }
 0x4a7   : > { %9152 = vmatprep.mubr.msk.bf16.mxu1 %vm11792_vm4, %v7740_v8  ;;  %9157 = vmatpush3.bf16.msra.mxu1 %v10021_v39  ;;  %v12150_v39 = vand.u32 3, %v10517_v60  ;;  %v10068_v8 = vld [vmem:[%s12646_s5 + $0x218] sm:$0xff]  }
 0x4a8   : > { %9158 = vmatprep.subr.bf16.mxu1 %v10022_v20 }
 0x4a9   : > { %v5706_v54 = vshll.u32 %v12150_v39, 1  ;;  %vm6029_vm7 = vcmp.lt.s32.totalorder %v12150_v39, 3 }
 0x4ab   : > { %9159 = vmatpush3.bf16.msra.mxu1 %v10022_v20  ;;  %v10066_v20 = vld [vmem:[%s12646_s5 + $0x210] sm:$0xff]  }
 0x4ac   : > { %9160 = vmatprep.subr.bf16.mxu1 %v10023_v57 }
 0x4ae   : > { %9153 = vmatmul.mubr.msk.bf16.gmra.mrb[20].mxu1 %vm11823_vm10, %v7743_v11  ;;  %vm12003_vm10 = vmpackc.low %vm4500_vm9, %vm4499_vm13  ;;  %vm5804_vm13 = vcmp.ge.s32.totalorder %v12150_v39, 1  ;;  %v10127_v39 = vld [vmem:[%s12646_s5 + $0x1d0] sm:$0xff]  }
 0x4af   : > { %9161 = vmatpush3.bf16.msra.mxu1 %v10023_v57  ;;  %9172 = vmatprep.mubr.bf16.mxu1 %v4831_v44  ;;  %v10030_v44 = vld [vmem:[%s12644_s3 + $0x148] sm:$0xff]   ;;  %vm7838_vm9 = vmpackc.low %vm12901_vm14, %vm4190_vm5  ;;  %vm5716_vm5 = vcmask 523264   ;;  %v10070_v57 = vld [vmem:[%s12646_s5 + $0x220] sm:$0xff]  }
 0x4b0   : > { %9162 = vmatprep.subr.bf16.mxu1 %v10024_v18 }
 0x4b3   : > { %9163 = vmatpush3.bf16.msra.mxu1 %v10024_v18 }
 0x4b4   : > { %9164 = vmatprep.subr.bf16.mxu1 %v10025_v49 }
 0x4b7   : > { %9165 = vmatpush3.bf16.msra.mxu1 %v10025_v49 }
 0x4b8   : > { %9166 = vmatprep.subr.bf16.mxu1 %v10026_v31 }
 0x4bb   : > { %9167 = vmatpush3.bf16.msra.mxu1 %v10026_v31 }
 0x4bc   : > { %9168 = vmatprep.subr.bf16.mxu1 %v10027_v61 }
 0x4bf   : > { %9169 = vmatpush3.bf16.msra.mxu1 %v10027_v61 }
 0x4c0   : > { %9170 = vmatprep.subr.bf16.mxu1 %v10028_v4 }
 0x4c3   : > { %9171 = vmatpush3.bf16.msra.mxu1 %v10028_v4 }
 0x4c4   : > { %9180 = vmatprep.subr.bf16.mxu1 %v10029_v30 }
 0x4c6   : > { %9173 = vmatmul.mubr.bf16.vlgmr.msra.gmra.mrb[16].mxu1 %v4832_v9  ;;  %v10035_v9 = vld [vmem:[%s12644_s3 + $0x170] sm:$0xff]  }
 0x4c7   : > { %9176 = vmatprep.mubr.bf16.mxu1 %v4833_v1  ;;  %9181 = vmatpush3.bf16.msra.mxu1 %v10029_v30  ;;  %v7797_v1 = vpack.c.bf16 %v11877_v17, %v11861_v13  ;;  %v7803_v13 = vpack.c.bf16 %v12046_v52, %v11901_v47  ;;  %v10042_v17 = vld [vmem:[%s12644_s3 + $0x1a8] sm:$0xff]  }
 0x4c8   : > { %9182 = vmatprep.subr.bf16.mxu1 %v10030_v44  ;;  %v10046_v47 = vld [vmem:[%s12644_s3 + $0x1c8] sm:$0xff]  }
 0x4cb   : > { %9183 = vmatpush3.bf16.msra.mxu1 %v10030_v44 }
 0x4cc   : > { %9184 = vmatprep.subr.bf16.mxu1 %v10031_v56 }
 0x4ce   : > { %9177 = vmatmul.mubr.bf16.gmra.mrb[20].mxu1 %v4834_v32  ;;  %v7800_v32 = vpack.c.bf16 %v11904_v2, %v11865_v62  ;;  %v10040_v62 = vld [vmem:[%s12644_s3 + $0x198] sm:$0xff]   ;;  %v10047_v2 = vld [vmem:[%s12644_s3 + $0x1d0] sm:$0xff]  }
 0x4cf   : > { %9185 = vmatpush3.bf16.msra.mxu1 %v10031_v56  ;;  %9196 = vmatprep.mubr.msk.bf16.mxu1 %vm12003_vm10, %v7794_v14 }
 0x4d0   : > { %9186 = vmatprep.subr.bf16.mxu1 %v10032_v43 }
 0x4d3   : > { %9187 = vmatpush3.bf16.msra.mxu1 %v10032_v43 }
 0x4d4   : > { %9188 = vmatprep.subr.bf16.mxu1 %v10033_v63 }
 0x4d7   : > { %9189 = vmatpush3.bf16.msra.mxu1 %v10033_v63 }
 0x4d8   : > { %9190 = vmatprep.subr.bf16.mxu1 %v10034_v12 }
 0x4db   : > { %9191 = vmatpush3.bf16.msra.mxu1 %v10034_v12 }
 0x4dc   : > { %9192 = vmatprep.subr.bf16.mxu1 %v10035_v9 }
 0x4df   : > { %9193 = vmatpush3.bf16.msra.mxu1 %v10035_v9 }
 0x4e0   : > { %9194 = vmatprep.subr.bf16.mxu1 %v10036_v6 }
 0x4e3   : > { %9195 = vmatpush3.bf16.msra.mxu1 %v10036_v6 }
 0x4e4   : > { %9204 = vmatprep.subr.bf16.mxu1 %v10037_v42 }
 0x4e6   : > { %9197 = vmatmul.mubr.msk.bf16.vlgmr.msra.gmra.mrb[16].mxu1 %vm11869_vm3, %v7797_v1 }
 0x4e7   : > { %9200 = vmatprep.mubr.msk.bf16.mxu1 %vm11879_vm11, %v7800_v32  ;;  %9205 = vmatpush3.bf16.msra.mxu1 %v10037_v42 }
 0x4e8   : > { %9206 = vmatprep.subr.bf16.mxu1 %v10038_v45 }
 0x4eb   : > { %9207 = vmatpush3.bf16.msra.mxu1 %v10038_v45 }
 0x4ec   : > { %9208 = vmatprep.subr.bf16.mxu1 %v10039_v37 }
 0x4ee   : > { %9201 = vmatmul.mubr.msk.bf16.gmra.mrb[20].mxu1 %vm11908_vm8, %v7803_v13 }
 0x4ef   : > { %9209 = vmatpush3.bf16.msra.mxu1 %v10039_v37  ;;  %9220 = vmatprep.mubr.msk.bf16.mxu1 %vm11918_vm12, %v11788_v38  ;;  %v10044_v38 = vld [vmem:[%s12644_s3 + $0x1b8] sm:$0xff]  }
 0x4f0   : > { %9210 = vmatprep.subr.bf16.mxu1 %v10040_v62 }
 0x4f3   : > { %9211 = vmatpush3.bf16.msra.mxu1 %v10040_v62 }
 0x4f4   : > { %9212 = vmatprep.subr.bf16.mxu1 %v10041_v25 }
 0x4f7   : > { %9213 = vmatpush3.bf16.msra.mxu1 %v10041_v25 }
 0x4f8   : > { %9214 = vmatprep.subr.bf16.mxu1 %v10042_v17 }
 0x4fb   : > { %9215 = vmatpush3.bf16.msra.mxu1 %v10042_v17 }
 0x4fc   : > { %9216 = vmatprep.subr.bf16.mxu1 %v10043_v34 }
 0x4ff   : > { %9217 = vmatpush3.bf16.msra.mxu1 %v10043_v34 }
 0x500   : > { %9218 = vmatprep.subr.bf16.mxu1 %v10044_v38 }
 0x503   : > { %9219 = vmatpush3.bf16.msra.mxu1 %v10044_v38 }
 0x504   : > { %9228 = vmatprep.subr.bf16.mxu1 %v10045_v51 }
 0x506   : > { %9221 = vmatmul.mubr.msk.bf16.vlgmr.msra.gmra.mrb[16].mxu1 %vm11782_vm1, %v11801_v28  ;;  %v10050_v28 = vld [vmem:[%s12644_s3 + $0x1e8] sm:$0xff]   ;;  %vm7898_vm1 = vmpackc.low %vm12901_vm14, %vm4505_vm2  ;;  %vm5802_vm2 = vcmp.ge.s32.totalorder %v10517_v60, 4 }
 0x507   : > { %9224 = vmatprep.mubr.msk.bf16.mxu1 %vm11792_vm4, %v11829_v53  ;;  %9229 = vmatpush3.bf16.msra.mxu1 %v10045_v51  ;;  %v10051_v53 = vld [vmem:[%s12644_s3 + $0x1f0] sm:$0xff]   ;;  %vm7930_vm8 = vmpackc.low %vm12901_vm14, %vm5802_vm2 }
 0x508   : > { %9230 = vmatprep.subr.bf16.mxu1 %v10046_v47 }
 0x50b   : > { %9231 = vmatpush3.bf16.msra.mxu1 %v10046_v47 }
 0x50c   : > { %9232 = vmatprep.subr.bf16.mxu1 %v10047_v2 }
 0x50e   : > { %9225 = vmatmul.mubr.msk.bf16.gmra.mrb[20].mxu1 %vm7838_vm9, %v7839_v19  ;;  %vm5806_vm9 = vmand %vm5802_vm2, %vm5804_vm13 }
 0x50f   : > { %9233 = vmatpush3.bf16.msra.mxu1 %v10047_v2  ;;  %9244 = vmatprep.mubr.bf16.mxu1 %v11706_v46  ;;  %v10052_v46 = vld [vmem:[%s12644_s3 + $0x1f8] sm:$0xff]  }
 0x510   : > { %9234 = vmatprep.subr.bf16.mxu1 %v10048_v21 }
 0x513   : > { %9235 = vmatpush3.bf16.msra.mxu1 %v10048_v21 }
 0x514   : > { %9236 = vmatprep.subr.bf16.mxu1 %v10049_v5 }
 0x517   : > { %9237 = vmatpush3.bf16.msra.mxu1 %v10049_v5 }
 0x518   : > { %9238 = vmatprep.subr.bf16.mxu1 %v10050_v28 }
 0x51b   : > { %9239 = vmatpush3.bf16.msra.mxu1 %v10050_v28 }
 0x51c   : > { %9240 = vmatprep.subr.bf16.mxu1 %v10051_v53 }
 0x51f   : > { %9241 = vmatpush3.bf16.msra.mxu1 %v10051_v53 }
 0x520   : > { %9242 = vmatprep.subr.bf16.mxu1 %v10052_v46 }
 0x523   : > { %9243 = vmatpush3.bf16.msra.mxu1 %v10052_v46 }
 0x524   : > { %9252 = vmatprep.subr.bf16.mxu1 %v10053_v41 }
 0x526   : > { %9245 = vmatmul.mubr.bf16.vlgmr.msra.gmra.mrb[16].mxu1 %v11725_v36  ;;  %v10057_v36 = vld [vmem:[%s12644_s3 + $0x220] sm:$0xff]  }
 0x527   : > { %9248 = vmatprep.mubr.bf16.mxu1 %v11747_v35  ;;  %9253 = vmatpush3.bf16.msra.mxu1 %v10053_v41  ;;  %v10058_v35 = vld [vmem:[%s12644_s3 + $0x228] sm:$0xff]  }
 0x528   : > { %9254 = vmatprep.subr.bf16.mxu1 %v10054_v50 }
 0x52b   : > { %9255 = vmatpush3.bf16.msra.mxu1 %v10054_v50 }
 0x52c   : > { %9256 = vmatprep.subr.bf16.mxu1 %v10055_v24 }
 0x52e   : > { %9249 = vmatmul.mubr.bf16.gmra.mrb[20].mxu1 %v5324_v40 }
 0x52f   : > { %9257 = vmatpush3.bf16.msra.mxu1 %v10055_v24  ;;  %9268 = vmatprep.mubr.msk.bf16.mxu1 %vm12003_vm10, %v11875_v23  ;;  %v10060_v23 = vld [vmem:[%s12644_s3 + $0x238] sm:$0xff]  }
 0x530   : > { %9258 = vmatprep.subr.bf16.mxu1 %v10056_v59 }
 0x533   : > { %9259 = vmatpush3.bf16.msra.mxu1 %v10056_v59  ;;  %v5701_v59 = vshra.s32 %v11259_v58, 2 }
 0x534   : > { %9260 = vmatprep.subr.bf16.mxu1 %v10057_v36 }
 0x537   : > { %9261 = vmatpush3.bf16.msra.mxu1 %v10057_v36  ;;  %v5691_v36 = vld [vmem:[#allocation2 + $0x60] sm:$0xff] }
 0x538   : > { %9262 = vmatprep.subr.bf16.mxu1 %v10058_v35 }
 0x53b   : > { %9263 = vmatpush3.bf16.msra.mxu1 %v10058_v35 }
 0x53c   : > { %9264 = vmatprep.subr.bf16.mxu1 %v10059_v48 }
 0x53f   : > { %9265 = vmatpush3.bf16.msra.mxu1 %v10059_v48 }
 0x540   : > { %9266 = vmatprep.subr.bf16.mxu1 %v10060_v23 }
 0x543   : > { %9267 = vmatpush3.bf16.msra.mxu1 %v10060_v23 }
 0x546   : > { %9269 = vmatmul.mubr.msk.bf16.vlgmr.msra.gmra.mrb[16].mxu1 %vm11869_vm3, %v11888_v3  ;;  %v5708_v3 = vadd.s32 %v5706_v54, %v5704_v55 }
 0x547   : > { %9272 = vmatprep.mubr.msk.bf16.mxu1 %vm11879_vm11, %v11914_v0  ;;  %v10064_v0 = vld [vmem:[%s12646_s5 + $0x208] sm:$0xff]   ;;  %vm6484_vm11 = vcmp.lt.s32.totalorder %v11259_v58, 12 }
 0x548   : > { %vm5710_vm4 = vcmp.eq.s32.totalorder %v11480_v7, %v5708_v3  ;;  %9458 = vmatpush3.bf16.msra.mxu0 %v10064_v0 }
 0x549   : > { %v7902_v15 = vsel %vm5710_vm4, 1.0, %v11837_v16  ;;  %9459 = vmatprep.subr.bf16.mxu0 %v11837_v16  ;;  %vm6031_vm4 = vmand %vm5802_vm2, %vm6029_vm7 }
 0x54c   : > { %9460 = vmatpush3.bf16.msra.mxu0 %v10066_v20 }
 0x54d   : > { %9461 = vmatprep.subr.bf16.mxu0 %v11837_v16 }
 0x54e   : > { %9273 = vmatmul.mubr.msk.bf16.gmra.mrb[20].mxu1 %vm7898_vm1, %v7899_v27  ;;  %v12181_v27 = vand.u32 3, %v11259_v58 }
 0x54f   : > { %9292 = vmatprep.mubr.msk.f32.mxu1 %vm5716_vm5, %v7902_v15 }
 0x550   : > { %9462 = vmatpush3.bf16.msra.mxu0 %v10068_v8  ;;  %v5705_v8 = vshll.u32 %v5701_v59, 4  ;;  %vm6030_vm3 = vcmp.lt.s32.totalorder %v12181_v27, 3  ;;  %vm5805_vm10 = vcmp.ge.s32.totalorder %v12181_v27, 1 }
 0x551   : > { %9463 = vmatprep.subr.bf16.mxu0 %v11837_v16  ;;  %vm6714_vm6 = vmand %vm6484_vm11, %vm6030_vm3 }
 0x552   : > { %vm8127_vm12 = vmpackc.low %vm6714_vm6, %vm6029_vm7 }
 0x553   : > { %vm7941_vm1 = vmpackc.low %vm5805_vm10, %vm5806_vm9 }
 0x554   : > { %9464 = vmatpush3.bf16.msra.mxu0 %v10070_v57  ;;  %v5707_v57 = vshll.u32 %v12181_v27, 1  ;;  %vm8046_vm2 = vmpackc.low %vm6030_vm3, %vm6029_vm7  ;;  %v10126_v27 = vld [vmem:[%s12646_s5 + $0x1c8] sm:$0xff]  }
 0x555   : > { %9465 = vmatprep.subr.bf16.mxu0 %v11837_v16  ;;  %vm8100_vm6 = vmpackc.low %vm6484_vm11, %vm12901_vm14 }
 0x619   : > { %v9270_v11 = vpop.f32.mrb[16].mxu1 }
 0x61a   : > { %v5638_v18 = vadd.f32 %v9270_v11, %v7901_v22  ;;  %v5590_v49 = vpop.f32.mrb[17].mxu1 }
 0x61b   : > { %v5636_v31 = vadd.f32 %v7901_v22, %v5590_v49  ;;  %v9271_v61 = vpop.f32.mrb[18].mxu1  ;;  %v10063_v49 = vld [vmem:[%s12646_s5 + $0x48] sm:$0xff]  }
 0x61c   : > { %v5646_v4 = vmax.f32 %v5638_v18, 0.0  ;;  %v5639_v30 = vadd.f32 %v9271_v61, %v7901_v22  ;;  %v5593_v44 = vpop.f32.mrb[19].mxu1  ;;  %v10061_v18 = vld [vmem:[%s12646_s5 + $0x40] sm:$0xff]   ;;  %v10067_v61 = vld [vmem:[%s12646_s5 + $0x58] sm:$0xff]  }
 0x61d   : > { %v5644_v56 = vmax.f32 %v5636_v31, 0.0  ;;  %v5637_v26 = vadd.f32 %v7901_v22, %v5593_v44  ;;  %v10065_v31 = vld [vmem:[%s12646_s5 + $0x50] sm:$0xff]   ;;  %v10072_v44 = vld [vmem:[%s12646_s5 + $0x228] sm:$0xff]  }
 0x61e   : > { %5654 = vst [vmem:[#allocation2 + $0x30] sm:$0xff] %v5646_v4  ;;  %v5647_v43 = vmax.f32 %v5639_v30, 0.0  ;;  %v10071_v30 = vld [vmem:[%s12646_s5 + $0x68] sm:$0xff]   ;;  %9466 = vmatpush3.bf16.msra.mxu0 %v10072_v44  ;;  %v10113_v44 = vld [vmem:[%s12646_s5 + $0x160] sm:$0xff]  }
 0x61f   : > { %5652 = vst [vmem:[#allocation2 + $0x20] sm:$0xff] %v5644_v56  ;;  %v5645_v14 = vmax.f32 %v5637_v26, 0.0  ;;  %9467 = vmatprep.subr.bf16.mxu0 %v11837_v16  ;;  %v10074_v26 = vld [vmem:[%s12646_s5 + $0x230] sm:$0xff]  }
 0x620   : > { %5655 = vst [vmem:[#allocation2 + $0x38] sm:$0xff] %v5647_v43 }
 0x621   : > { %5653 = vst [vmem:[#allocation2 + $0x28] sm:$0xff] %v5645_v14  ;;  %v9274_v63 = vpop.f32.mrb[20].mxu1 }
 0x622   : > { %v5642_v12 = vadd.f32 %v9274_v63, %v7901_v22  ;;  %v5606_v9 = vpop.f32.mrb[21].mxu1  ;;  %9468 = vmatpush3.bf16.msra.mxu0 %v10074_v26  ;;  %v10115_v26 = vld [vmem:[%s12646_s5 + $0x170] sm:$0xff]  }
 0x623   : > { %v5640_v6 = vadd.f32 %v7901_v22, %v5606_v9  ;;  %v9275_v42 = vpop.f32.mrb[22].mxu1  ;;  %9469 = vmatprep.subr.bf16.mxu0 %v11837_v16 }
 0x624   : > { %v5650_v1 = vmax.f32 %v5642_v12, 0.0  ;;  %v5643_v45 = vadd.f32 %v9275_v42, %v7901_v22  ;;  %v5609_v32 = vpop.f32.mrb[23].mxu1 }
 0x625   : > { %v5648_v37 = vmax.f32 %v5640_v6, 0.0  ;;  %v5641_v52 = vadd.f32 %v7901_v22, %v5609_v32  ;;  %v5709_v22 = vadd.s32 %v5707_v57, %v5705_v8  ;;  %v10103_v8 = vld [vmem:[%s12646_s5 + $0x110] sm:$0xff]   ;;  %v10104_v57 = vld [vmem:[%s12646_s5 + $0x118] sm:$0xff]  }
 0x626   : > { %5658 = vst [vmem:[#allocation2 + $0x50] sm:$0xff] %v5650_v1  ;;  %v5651_v13 = vmax.f32 %v5643_v45, 0.0 }
 0x627   : > { %v5662_v62 = vld [vmem:[#allocation2 + $0x31] sm:$0xff]  ;;  %5656 = vst [vmem:[#allocation2 + $0x40] sm:$0xff] %v5648_v37  ;;  %v5649_v25 = vmax.f32 %v5641_v52, 0.0  ;;  %vm5711_vm0 = vcmp.eq.s32.totalorder %v11480_v7, %v5709_v22  ;;  %v10078_v52 = vld [vmem:[%s12646_s5 + $0x8] sm:$0xff]   ;;  %v10105_v22 = vld [vmem:[%s12646_s5 + $0x120] sm:$0xff]  }
 0x628   : > { %v5661_v17 = vld [vmem:[#allocation2 + $0x29] sm:$0xff]  ;;  %v5670_v34 = vmax.f32 %v5646_v4, %v5662_v62  ;;  %5659 = vst [vmem:[#allocation2 + $0x58] sm:$0xff] %v5651_v13  ;;  %v5660_v38 = vld [vmem:[#allocation2 + $0x21] sm:$0xff]  ;;  %v7903_v11 = vsel %vm5711_vm0, 1.0, %v11837_v16  ;;  %v10080_v62 = vld [vmem:[%s12646_s5 + $0x18] sm:$0xff]  }
 0x629   : > { %v5669_v51 = vmax.f32 %v5645_v14, %v5661_v17  ;;  %5657 = vst [vmem:[#allocation2 + $0x48] sm:$0xff] %v5649_v25  ;;  %v5668_v47 = vmax.f32 %v5644_v56, %v5660_v38  ;;  %v10069_v4 = vld [vmem:[%s12646_s5 + $0x60] sm:$0xff]   ;;  %v10073_v56 = vld [vmem:[%s12646_s5 + $0x70] sm:$0xff]   ;;  %v10076_v14 = vld [vmem:[%s12646_s5 + $0x238] sm:$0xff]  }
 0x62a   : > { %5678 = vst [vmem:[#allocation2 + $0x30] sm:$0xff] %v5670_v34  ;;  %9470 = vmatpush3.bf16.msra.mxu0 %v10076_v14  ;;  %v10082_v17 = vld [vmem:[%s12646_s5 + $0x28] sm:$0xff]   ;;  %v10084_v38 = vld [vmem:[%s12646_s5 + $0x38] sm:$0xff]   ;;  %vm7995_vm0 = vmpackc.low %vm5805_vm10, %vm5804_vm13 }
 0x62b   : > { %v5693_v2 = vmax.f32 %v5669_v51, %v5670_v34  ;;  %v5692_v19 = vmax.f32 %v5668_v47, %v5669_v51  ;;  %9550 = vmatprep.subr.bf16.mxu0 %v12885_v29  ;;  %v10077_v29 = vld [vmem:[%s12646_s5] sm:$0xff]  }
 0x62d   : > { %v9534_v21 = vpack.c.bf16 %v5693_v2, %v5692_v19  ;;  %v10085_v2 = vld [vmem:[%s12646_s5 + $0x80] sm:$0xff]  }
 0x62e   : > { %v5663_v5 = vld [vmem:[#allocation2 + $0x39] sm:$0xff] }
 0x62f   : > { %v5667_v28 = vld [vmem:[#allocation2 + $0x59] sm:$0xff]  ;;  %v5666_v53 = vld [vmem:[#allocation2 + $0x51] sm:$0xff]  ;;  %9535 = vmatprep.subr.bf16.mxu1 %v9534_v21  ;;  %v5671_v46 = vmax.f32 %v5647_v43, %v5663_v5 }
 0x630   : > { %v5675_v41 = vmax.f32 %v5651_v13, %v5667_v28  ;;  %v5665_v50 = vld [vmem:[#allocation2 + $0x49] sm:$0xff]  ;;  %v5674_v24 = vmax.f32 %v5650_v1, %v5666_v53  ;;  %9537 = vmatpush3.bf16.msra.mxu1 %v9534_v21  ;;  %v5664_v40 = vld [vmem:[#allocation2 + $0x41] sm:$0xff]  ;;  %v10075_v43 = vld [vmem:[%s12646_s5 + $0x78] sm:$0xff]  }
 0x631   : > { %v5673_v35 = vmax.f32 %v5649_v25, %v5665_v50  ;;  %v5672_v48 = vmax.f32 %v5648_v37, %v5664_v40  ;;  %5679 = vst [vmem:[#allocation2 + $0x38] sm:$0xff] %v5671_v46  ;;  %v5694_v23 = vmax.f32 %v5670_v34, %v5671_v46  ;;  %v10079_v13 = vld [vmem:[%s12646_s5 + $0x10] sm:$0xff]   ;;  %v10081_v25 = vld [vmem:[%s12646_s5 + $0x20] sm:$0xff]   ;;  %v10086_v21 = vld [vmem:[%s12646_s5 + $0x88] sm:$0xff]  }
 0x632   : > { %v5699_v33 = vmax.f32 %v5675_v41, %v5691_v36  ;;  %5682 = vst [vmem:[#allocation2 + $0x50] sm:$0xff] %v5674_v24  ;;  %5683 = vst [vmem:[#allocation2 + $0x58] sm:$0xff] %v5675_v41  ;;  %v5698_v55 = vmax.f32 %v5674_v24, %v5675_v41  ;;  %v10083_v34 = vld [vmem:[%s12646_s5 + $0x30] sm:$0xff]   ;;  %v10088_v28 = vld [vmem:[%s12646_s5 + $0x98] sm:$0xff]  }
 0x633   : > { %v5697_v54 = vmax.f32 %v5673_v35, %v5674_v24  ;;  %5680 = vst [vmem:[#allocation2 + $0x40] sm:$0xff] %v5672_v48  ;;  %v5695_v3 = vmax.f32 %v5671_v46, %v5672_v48  ;;  %5681 = vst [vmem:[#allocation2 + $0x48] sm:$0xff] %v5673_v35  ;;  %v5696_v15 = vmax.f32 %v5672_v48, %v5673_v35  ;;  %v10087_v5 = vld [vmem:[%s12646_s5 + $0x90] sm:$0xff]   ;;  %v10089_v53 = vld [vmem:[%s12646_s5 + $0xa0] sm:$0xff]  }
 0x634   : > { %v9546_v10 = vpack.c.bf16 %v5699_v33, %v5698_v55  ;;  %v10090_v46 = vld [vmem:[%s12646_s5 + $0xa8] sm:$0xff]   ;;  %v10091_v41 = vld [vmem:[%s12646_s5 + $0xb0] sm:$0xff]   ;;  %v10092_v50 = vld [vmem:[%s12646_s5 + $0xb8] sm:$0xff]  }
 0x635   : > { %v9538_v0 = vpack.c.bf16 %v5695_v3, %v5694_v23  ;;  %v9542_v20 = vpack.c.bf16 %v5697_v54, %v5696_v15  ;;  %v10093_v40 = vld [vmem:[%s12646_s5 + $0xc0] sm:$0xff]   ;;  %v10094_v36 = vld [vmem:[%s12646_s5 + $0xc8] sm:$0xff]   ;;  %v10095_v35 = vld [vmem:[%s12646_s5 + $0xd0] sm:$0xff]  }
 0x636   : > { %v10096_v48 = vld [vmem:[%s12646_s5 + $0xd8] sm:$0xff]   ;;  %v10097_v23 = vld [vmem:[%s12646_s5 + $0xe0] sm:$0xff]   ;;  %v10098_v33 = vld [vmem:[%s12646_s5 + $0xe8] sm:$0xff]  }
 0x637   : > { %9539 = vmatprep.subr.bf16.mxu1 %v9538_v0  ;;  %v10099_v55 = vld [vmem:[%s12646_s5 + $0xf0] sm:$0xff]   ;;  %v10100_v54 = vld [vmem:[%s12646_s5 + $0xf8] sm:$0xff]  }
 0x638   : > { %9541 = vmatpush3.bf16.msra.mxu1 %v9538_v0 }
 0x639   : > { %9543 = vmatprep.subr.bf16.mxu1 %v9542_v20 }
 0x63c   : > { %9545 = vmatpush3.bf16.msra.mxu1 %v9542_v20  ;;  %v10102_v20 = vld [vmem:[%s12646_s5 + $0x108] sm:$0xff]  }
 0x63d   : > { %9547 = vmatprep.subr.bf16.mxu1 %v9546_v10 }
 0x640   : > { %9549 = vmatpush3.bf16.msra.mxu1 %v9546_v10  ;;  %v10101_v10 = vld [vmem:[%s12646_s5 + $0x100] sm:$0xff]  }
 0x641   : > { %9295 = vmatprep.subr.bf16.mxu1 %v11837_v16 }
 0x643   : > { %9293 = vmatmul.mubr.msk.f32.vlgmr.msra.gmra.mrb[24].mxu1 %vm5716_vm5, %v7903_v11  ;;  %vm7968_vm5 = vmpackc.low %vm6030_vm3, %vm6031_vm4  ;;  %v10106_v11 = vld [vmem:[%s12646_s5 + $0x128] sm:$0xff]  }
 0x644   : > { %9296 = vmatpush3.bf16.msra.mxu1 %v10061_v18  ;;  %9311 = vmatprep.mubr.msk.bf16.mxu1 %vm10214_vm15, %v11837_v16  ;;  %v10107_v18 = vld [vmem:[%s12646_s5 + $0x130] sm:$0xff]   ;;  %vm6486_vm3 = vmand %vm6484_vm11, %vm5805_vm10  ;;  %vm6931_vm11 = vcmask 1043456  }
 0x645   : > { %9297 = vmatprep.subr.bf16.mxu1 %v11837_v16  ;;  %vm8073_vm7 = vmpackc.low %vm6486_vm3, %vm5804_vm13 }
 0x648   : > { %9298 = vmatpush3.bf16.msra.mxu1 %v10063_v49  ;;  %v10108_v49 = vld [vmem:[%s12646_s5 + $0x138] sm:$0xff]  }
 0x649   : > { %9299 = vmatprep.subr.bf16.mxu1 %v11837_v16 }
 0x64c   : > { %9300 = vmatpush3.bf16.msra.mxu1 %v10065_v31  ;;  %v10109_v31 = vld [vmem:[%s12646_s5 + $0x140] sm:$0xff]  }
 0x64d   : > { %9301 = vmatprep.subr.bf16.mxu1 %v11837_v16 }
 0x650   : > { %9302 = vmatpush3.bf16.msra.mxu1 %v10067_v61  ;;  %v10110_v61 = vld [vmem:[%s12646_s5 + $0x148] sm:$0xff]  }
 0x651   : > { %9303 = vmatprep.subr.bf16.mxu1 %v11837_v16 }
 0x654   : > { %9304 = vmatpush3.bf16.msra.mxu1 %v10069_v4  ;;  %v12432_v4 = vld [vmem:[#allocation2] sm:$0xff] }
 0x655   : > { %9305 = vmatprep.subr.bf16.mxu1 %v11837_v16 }
 0x658   : > { %9306 = vmatpush3.bf16.msra.mxu1 %v10071_v30  ;;  %v10112_v30 = vld [vmem:[%s12646_s5 + $0x158] sm:$0xff]  }
 0x659   : > { %9307 = vmatprep.subr.bf16.mxu1 %v11837_v16 }
 0x65c   : > { %9308 = vmatpush3.bf16.msra.mxu1 %v10073_v56  ;;  %v10114_v56 = vld [vmem:[%s12646_s5 + $0x168] sm:$0xff]  }
 0x65d   : > { %9309 = vmatprep.subr.bf16.mxu1 %v11837_v16 }
 0x660   : > { %9310 = vmatpush3.bf16.msra.mxu1 %v10075_v43  ;;  %v10116_v43 = vld [vmem:[%s12646_s5 + $0x178] sm:$0xff]  }
 0x661   : > { %9315 = vmatprep.subr.bf16.mxu1 %v11837_v16 }
 0x716   : > { %v12236_v63 = vpop.f32.mrb[24].mxu1 }
 0x717   : > { %5799 = vst [vmem:[#allocation2 + $0x28] sm:$0xff] %v12236_v63  ;;  %v12239_v12 = vpop.f32.mrb[25].mxu1 }
 0x718   : > { %5798 = vst [vmem:[#allocation2 + $0x20] sm:$0xff] %v12239_v12  ;;  %v6259_v9 = vpack.c.bf16 %v12236_v63, %v12239_v12  ;;  %v10117_v12 = vld [vmem:[%s12646_s5 + $0x180] sm:$0xff]  }
 0x71e   : > { %v6712_v6 = vld [vmem:[#allocation2 + $0x2d] sm:$0xff] }
 0x71f   : > { %v5827_v42 = vld [vmem:[#allocation2 + $0x1c] sm:$0xff]  ;;  %v12260_v1 = vld [vmem:[#allocation2 + $0x24] sm:$0xff] }
 0x720   : > { %v12262_v45 = vld [vmem:[#allocation2 + $0x25] sm:$0xff]  ;;  %v7931_v32 = vpack.c.bf16 %v12260_v1, %v5827_v42  ;;  %v5800_v51 = vld [vmem:[#allocation2 + $0x1b] sm:$0xff] }
 0x721   : > { %v8128_v37 = vpack.c.bf16 %v6712_v6, %v12262_v45  ;;  %v12304_v47 = vld [vmem:[#allocation2 + $0x23] sm:$0xff]  ;;  %v10119_v6 = vld [vmem:[%s12646_s5 + $0x190] sm:$0xff]   ;;  %v10120_v42 = vld [vmem:[%s12646_s5 + $0x198] sm:$0xff]  }
 0x722   : > { %9312 = vmatmul.mubr.msk.bf16.vlgmr.msra.gmra.mrb[28].mxu1 %vm7930_vm8, %v7931_v32  ;;  %v7942_v19 = vpack.c.bf16 %v12304_v47, %v5800_v51  ;;  %v6027_v24 = vld [vmem:[#allocation2 + $0x1d] sm:$0xff]  ;;  %v6145_v15 = vld [vmem:[#allocation2 + $0x27] sm:$0xff] }
 0x723   : > { %9472 = vmatmul.mubr.msk.bf16.vlgmr.msra.gmra.mrb[32].mxu0 %vm8127_vm12, %v8128_v37  ;;  %9316 = vmatpush3.bf16.msra.mxu1 %v10077_v29  ;;  %v7969_v59 = vpack.c.bf16 %v12262_v45, %v6027_v24  ;;  %v6144_v3 = vld [vmem:[#allocation2 + $0x1f] sm:$0xff]  ;;  %v6369_v63 = vld [vmem:[#allocation2 + $0x29] sm:$0xff] }
 0x724   : > { %9331 = vmatprep.mubr.msk.bf16.mxu1 %vm10214_vm15, %v11837_v16  ;;  %9317 = vmatprep.subr.bf16.mxu1 %v11837_v16  ;;  %v7996_v0 = vpack.c.bf16 %v6145_v15, %v6144_v3  ;;  %v6368_v14 = vld [vmem:[#allocation2 + $0x21] sm:$0xff]  ;;  %v10123_v37 = vld [vmem:[%s12646_s5 + $0x1b0] sm:$0xff]  }
 0x725   : > { %9479 = vmatprep.mubr.msk.f32.mxu0 %vm10214_vm15, %v11837_v16  ;;  %v10118_v29 = vld [vmem:[%s12646_s5 + $0x188] sm:$0xff]   ;;  %v10121_v45 = vld [vmem:[%s12646_s5 + $0x1a0] sm:$0xff]  }
 0x726   : > { %v10122_v32 = vld [vmem:[%s12646_s5 + $0x1a8] sm:$0xff]  }
 0x727   : > { %9318 = vmatpush3.bf16.msra.mxu1 %v10078_v52  ;;  %v10124_v52 = vld [vmem:[%s12646_s5 + $0x1b8] sm:$0xff]  }
 0x728   : > { %9319 = vmatprep.subr.bf16.mxu1 %v11837_v16 }
 0x72b   : > { %9320 = vmatpush3.bf16.msra.mxu1 %v10079_v13  ;;  %v6482_v13 = vld [vmem:[#allocation2 + $0x2b] sm:$0xff] }
 0x72c   : > { %9321 = vmatprep.subr.bf16.mxu1 %v11837_v16 }
 0x72f   : > { %9322 = vmatpush3.bf16.msra.mxu1 %v10080_v62  ;;  %v10125_v62 = vld [vmem:[%s12646_s5 + $0x1c0] sm:$0xff]  }
 0x730   : > { %9323 = vmatprep.subr.bf16.mxu1 %v11837_v16 }
 0x733   : > { %9324 = vmatpush3.bf16.msra.mxu1 %v10081_v25  ;;  %v8074_v25 = vpack.c.bf16 %v6482_v13, %v12304_v47 }
 0x734   : > { %9325 = vmatprep.subr.bf16.mxu1 %v11837_v16 }
 0x737   : > { %9326 = vmatpush3.bf16.msra.mxu1 %v10082_v17  ;;  %v10128_v17 = vld [vmem:[%s12646_s5 + $0x1d8] sm:$0xff]  }
 0x738   : > { %9327 = vmatprep.subr.bf16.mxu1 %v11837_v16 }
 0x73b   : > { %9328 = vmatpush3.bf16.msra.mxu1 %v10083_v34  ;;  %v10129_v34 = vld [vmem:[%s12646_s5 + $0x1e0] sm:$0xff]  }
 0x73c   : > { %9329 = vmatprep.subr.bf16.mxu1 %v11837_v16 }
 0x73f   : > { %9330 = vmatpush3.bf16.msra.mxu1 %v10084_v38  ;;  %v10130_v38 = vld [vmem:[%s12646_s5 + $0x1e8] sm:$0xff]  }
 0x740   : > { %9335 = vmatprep.subr.bf16.mxu1 %v11837_v16 }
 0x742   : > { %9332 = vmatmul.mubr.msk.bf16.vlgmr.msra.gmra.mrb[32].mxu1 %vm7941_vm1, %v7942_v19 }
 0x743   : > { %9336 = vmatpush3.bf16.msra.mxu1 %v10085_v2  ;;  %9351 = vmatprep.mubr.msk.bf16.mxu1 %vm10214_vm15, %v11837_v16 }
 0x744   : > { %9337 = vmatprep.subr.bf16.mxu1 %v11837_v16 }
 0x747   : > { %9338 = vmatpush3.bf16.msra.mxu1 %v10086_v21 }
 0x748   : > { %9339 = vmatprep.subr.bf16.mxu1 %v11837_v16 }
 0x74b   : > { %9340 = vmatpush3.bf16.msra.mxu1 %v10087_v5 }
 0x74c   : > { %9341 = vmatprep.subr.bf16.mxu1 %v11837_v16 }
 0x74f   : > { %9342 = vmatpush3.bf16.msra.mxu1 %v10088_v28  ;;  %v10131_v28 = vld [vmem:[%s12646_s5 + $0x1f0] sm:$0xff]  }
 0x750   : > { %9343 = vmatprep.subr.bf16.mxu1 %v11837_v16 }
 0x753   : > { %9344 = vmatpush3.bf16.msra.mxu1 %v10089_v53 }
 0x754   : > { %9345 = vmatprep.subr.bf16.mxu1 %v11837_v16 }
 0x757   : > { %9346 = vmatpush3.bf16.msra.mxu1 %v10090_v46 }
 0x758   : > { %9347 = vmatprep.subr.bf16.mxu1 %v11837_v16 }
 0x75b   : > { %9348 = vmatpush3.bf16.msra.mxu1 %v10091_v41  ;;  %v10132_v41 = vld [vmem:[%s12646_s5 + $0x1f8] sm:$0xff]  }
 0x75c   : > { %9349 = vmatprep.subr.bf16.mxu1 %v11837_v16 }
 0x75f   : > { %9350 = vmatpush3.bf16.msra.mxu1 %v10092_v50  ;;  %v6599_v50 = vld [vmem:[#allocation2 + $0x2c] sm:$0xff] }
 0x760   : > { %9355 = vmatprep.subr.bf16.mxu1 %v11837_v16  ;;  %v8101_v24 = vpack.c.bf16 %v6599_v50, %v12260_v1 }
 0x762   : > { %9352 = vmatmul.mubr.msk.bf16.vlgmr.msra.gmra.mrb[36].mxu1 %vm7968_vm5, %v7969_v59 }
 0x763   : > { %9356 = vmatpush3.bf16.msra.mxu1 %v10093_v40  ;;  %9371 = vmatprep.mubr.msk.bf16.mxu1 %vm10214_vm15, %v11837_v16 }
 0x764   : > { %9357 = vmatprep.subr.bf16.mxu1 %v11837_v16 }
 0x767   : > { %9358 = vmatpush3.bf16.msra.mxu1 %v10094_v36 }
 0x768   : > { %9359 = vmatprep.subr.bf16.mxu1 %v11837_v16 }
 0x76b   : > { %9360 = vmatpush3.bf16.msra.mxu1 %v10095_v35 }
 0x76c   : > { %9361 = vmatprep.subr.bf16.mxu1 %v11837_v16 }
 0x76f   : > { %9362 = vmatpush3.bf16.msra.mxu1 %v10096_v48 }
 0x770   : > { %9363 = vmatprep.subr.bf16.mxu1 %v11837_v16 }
 0x773   : > { %9364 = vmatpush3.bf16.msra.mxu1 %v10097_v23 }
 0x774   : > { %9365 = vmatprep.subr.bf16.mxu1 %v11837_v16 }
 0x777   : > { %9366 = vmatpush3.bf16.msra.mxu1 %v10098_v33 }
 0x778   : > { %9367 = vmatprep.subr.bf16.mxu1 %v11837_v16 }
 0x77b   : > { %9368 = vmatpush3.bf16.msra.mxu1 %v10099_v55 }
 0x77c   : > { %9369 = vmatprep.subr.bf16.mxu1 %v11837_v16 }
 0x77f   : > { %9370 = vmatpush3.bf16.msra.mxu1 %v10100_v54 }
 0x780   : > { %9375 = vmatprep.subr.bf16.mxu1 %v11837_v16 }
 0x782   : > { %9372 = vmatmul.mubr.msk.bf16.vlgmr.msra.gmra.mrb[40].mxu1 %vm7995_vm0, %v7996_v0 }
 0x783   : > { %9376 = vmatpush3.bf16.msra.mxu1 %v10101_v10  ;;  %9391 = vmatprep.mubr.msk.bf16.mxu1 %vm10214_vm15, %v11837_v16 }
 0x784   : > { %9377 = vmatprep.subr.bf16.mxu1 %v11837_v16 }
 0x787   : > { %9378 = vmatpush3.bf16.msra.mxu1 %v10102_v20 }
 0x788   : > { %9379 = vmatprep.subr.bf16.mxu1 %v11837_v16 }
 0x78b   : > { %9380 = vmatpush3.bf16.msra.mxu1 %v10103_v8 }
 0x78c   : > { %9381 = vmatprep.subr.bf16.mxu1 %v11837_v16 }
 0x78f   : > { %9382 = vmatpush3.bf16.msra.mxu1 %v10104_v57 }
 0x790   : > { %9383 = vmatprep.subr.bf16.mxu1 %v11837_v16 }
 0x793   : > { %9384 = vmatpush3.bf16.msra.mxu1 %v10105_v22 }
 0x794   : > { %9385 = vmatprep.subr.bf16.mxu1 %v11837_v16 }
 0x797   : > { %9386 = vmatpush3.bf16.msra.mxu1 %v10106_v11 }
 0x798   : > { %9387 = vmatprep.subr.bf16.mxu1 %v11837_v16 }
 0x79b   : > { %9388 = vmatpush3.bf16.msra.mxu1 %v10107_v18 }
 0x79c   : > { %9389 = vmatprep.subr.bf16.mxu1 %v11837_v16 }
 0x79f   : > { %9390 = vmatpush3.bf16.msra.mxu1 %v10108_v49 }
 0x7a0   : > { %9395 = vmatprep.subr.bf16.mxu1 %v11837_v16  ;;  %v10111_v16 = vld [vmem:[%s12646_s5 + $0x150] sm:$0xff]  }
 0x7a2   : > { %9392 = vmatmul.mubr.bf16.vlgmr.msra.gmra.mrb[44].mxu1 %v6259_v9  ;;  %v8047_v9 = vpack.c.bf16 %v6369_v63, %v6368_v14 }
 0x7a3   : > { %9396 = vmatpush3.bf16.msra.mxu1 %v10109_v31  ;;  %9411 = vmatprep.mubr.msk.bf16.mxu1 %vm10214_vm15, %v12432_v4 }
 0x7a4   : > { %9397 = vmatprep.subr.bf16.mxu1 %v12432_v4 }
 0x7a7   : > { %9398 = vmatpush3.bf16.msra.mxu1 %v10110_v61 }
 0x7a8   : > { %9399 = vmatprep.subr.bf16.mxu1 %v12432_v4 }
 0x7ab   : > { %9400 = vmatpush3.bf16.msra.mxu1 %v10111_v16  ;;  %v10133_v16 = vld [vmem:[%s12648_s7] sm:$0xff]  }
 0x7ac   : > { %9401 = vmatprep.subr.bf16.mxu1 %v12432_v4 }
 0x7af   : > { %9402 = vmatpush3.bf16.msra.mxu1 %v10112_v30  ;;  %v10134_v30 = vld [vmem:[%s12648_s7 + $0x8] sm:$0xff]  }
 0x7b0   : > { %9403 = vmatprep.subr.bf16.mxu1 %v12432_v4 }
 0x7b3   : > { %9404 = vmatpush3.bf16.msra.mxu1 %v10113_v44  ;;  %v10135_v44 = vld [vmem:[%s12648_s7 + $0x10] sm:$0xff]  }
 0x7b4   : > { %9405 = vmatprep.subr.bf16.mxu1 %v12432_v4 }
 0x7b7   : > { %9406 = vmatpush3.bf16.msra.mxu1 %v10114_v56  ;;  %v10136_v56 = vld [vmem:[%s12648_s7 + $0x18] sm:$0xff]  }
 0x7b8   : > { %9407 = vmatprep.subr.bf16.mxu1 %v12432_v4 }
 0x7bb   : > { %9408 = vmatpush3.bf16.msra.mxu1 %v10115_v26 }
 0x7bc   : > { %9409 = vmatprep.subr.bf16.mxu1 %v12432_v4 }
 0x7bf   : > { %9410 = vmatpush3.bf16.msra.mxu1 %v10116_v43 }
 0x7c0   : > { %9415 = vmatprep.subr.bf16.mxu1 %v12432_v4 }
 0x7c2   : > { %9412 = vmatmul.mubr.msk.bf16.vlgmr.msra.gmra.mrb[48].mxu1 %vm8046_vm2, %v8047_v9 }
 0x7c3   : > { %9416 = vmatpush3.bf16.msra.mxu1 %v10117_v12  ;;  %9431 = vmatprep.mubr.msk.bf16.mxu1 %vm10214_vm15, %v12432_v4 }
 0x7c4   : > { %9417 = vmatprep.subr.bf16.mxu1 %v12432_v4 }
 0x7c7   : > { %9418 = vmatpush3.bf16.msra.mxu1 %v10118_v29 }
 0x7c8   : > { %9419 = vmatprep.subr.bf16.mxu1 %v12432_v4 }
 0x7cb   : > { %9420 = vmatpush3.bf16.msra.mxu1 %v10119_v6 }
 0x7cc   : > { %9421 = vmatprep.subr.bf16.mxu1 %v12432_v4 }
 0x7cf   : > { %9422 = vmatpush3.bf16.msra.mxu1 %v10120_v42 }
 0x7d0   : > { %9423 = vmatprep.subr.bf16.mxu1 %v12432_v4 }
 0x7d3   : > { %9424 = vmatpush3.bf16.msra.mxu1 %v10121_v45 }
 0x7d4   : > { %9425 = vmatprep.subr.bf16.mxu1 %v12432_v4 }
 0x7d7   : > { %9426 = vmatpush3.bf16.msra.mxu1 %v10122_v32 }
 0x7d8   : > { %9427 = vmatprep.subr.bf16.mxu1 %v12432_v4 }
 0x7db   : > { %9428 = vmatpush3.bf16.msra.mxu1 %v10123_v37 }
 0x7dc   : > { %9429 = vmatprep.subr.bf16.mxu1 %v12432_v4 }
 0x7df   : > { %9430 = vmatpush3.bf16.msra.mxu1 %v10124_v52 }
 0x7e0   : > { %9435 = vmatprep.subr.bf16.mxu1 %v12432_v4 }
 0x7e2   : > { %9432 = vmatmul.mubr.msk.bf16.vlgmr.msra.gmra.mrb[52].mxu1 %vm8073_vm7, %v8074_v25  ;;  %v8130_v25 = vld [vmem:[%s12647_s6] ss:$0 sm:$0xff] }
 0x7e3   : > { %9436 = vmatpush3.bf16.msra.mxu1 %v10125_v62  ;;  %9451 = vmatprep.mubr.msk.bf16.mxu1 %vm10214_vm15, %v12432_v4 }
 0x7e4   : > { %9437 = vmatprep.subr.bf16.mxu1 %v12432_v4 }
 0x7e7   : > { %9438 = vmatpush3.bf16.msra.mxu1 %v10126_v27 }
 0x7e8   : > { %9439 = vmatprep.subr.bf16.mxu1 %v12432_v4 }
 0x7eb   : > { %9440 = vmatpush3.bf16.msra.mxu1 %v10127_v39 }
 0x7ec   : > { %9441 = vmatprep.subr.bf16.mxu1 %v12432_v4 }
 0x7ef   : > { %9442 = vmatpush3.bf16.msra.mxu1 %v10128_v17 }
 0x7f0   : > { %9443 = vmatprep.subr.bf16.mxu1 %v12432_v4 }
 0x7f3   : > { %9444 = vmatpush3.bf16.msra.mxu1 %v10129_v34 }
 0x7f4   : > { %9445 = vmatprep.subr.bf16.mxu1 %v12432_v4 }
 0x7f5   : > { %v5931_v51 = vpop.f32.mrb[28].mxu1 }
 0x7f6   : > { %v12532_v47 = vpop.f32.mrb[32].mxu0  ;;  %v9313_v2 = vpop.f32.mrb[29].mxu1 }
 0x7f7   : > { %v9473_v19 = vpop.f32.mrb[33].mxu0  ;;  %9446 = vmatpush3.bf16.msra.mxu1 %v10130_v38  ;;  %v5934_v21 = vpop.f32.mrb[30].mxu1 }
 0x7f8   : > { %v12534_v5 = vpop.f32.mrb[34].mxu0  ;;  %v9314_v53 = vpop.f32.mrb[31].mxu1  ;;  %9447 = vmatprep.subr.bf16.mxu1 %v12432_v4 }
 0x7f9   : > { %v9474_v46 = vpop.f32.mrb[35].mxu0 }
 0x7fa   : > { %v6849_v46 = vshra.s32 %v10517_v60, 1 }
 0x7fb   : > { %9448 = vmatpush3.bf16.msra.mxu1 %v10131_v28 }
 0x7fc   : > { %9449 = vmatprep.subr.bf16.mxu1 %v12432_v4 }
 0x7ff   : > { %9450 = vmatpush3.bf16.msra.mxu1 %v10132_v41  ;;  %v6850_v41 = vand.u32 1, %v10517_v60  ;;  %v10137_v60 = vld [vmem:[%s12648_s7 + $0x20] sm:$0xff]  }
 0x800   : > { %9482 = vmatprep.subr.bf16.mxu1 %v12432_v4 }
 0x802   : > { %9452 = vmatmul.mubr.msk.bf16.vlgmr.msra.gmra.mrb[56].mxu1 %vm8100_vm6, %v8101_v24 }
 0x803   : > { %9498 = vmatprep.mubr.msk.bf16.mxu1 %vm10214_vm15, %v12432_v4  ;;  %9483 = vmatpush3.bf16.msra.mxu1 %v10133_v16  ;;  %vm6857_vm15 = vcmask 130048  }
 0x804   : > { %9484 = vmatprep.subr.bf16.mxu1 %v12432_v4 }
 0x807   : > { %9485 = vmatpush3.bf16.msra.mxu1 %v10134_v30 }
 0x808   : > { %9486 = vmatprep.subr.bf16.mxu1 %v12432_v4 }
 0x80b   : > { %9487 = vmatpush3.bf16.msra.mxu1 %v10135_v44 }
 0x80c   : > { %9488 = vmatprep.subr.bf16.mxu1 %v12432_v4 }
 0x80f   : > { %9489 = vmatpush3.bf16.msra.mxu1 %v10136_v56 }
 0x810   : > { %9490 = vmatprep.subr.bf16.mxu1 %v12432_v4 }
 0x813   : > { %9491 = vmatpush3.bf16.msra.mxu1 %v10137_v60 }
 0x814   : > { %9492 = vmatprep.subr.bf16.mxu1 %v12432_v4 }
 0x815   : > { %v6020_v40 = vpop.f32.mrb[32].mxu1 }
 0x816   : > { %v6021_v59 = vadd.f32 %v6020_v40, %v5931_v51  ;;  %v9333_v36 = vpop.f32.mrb[33].mxu1  ;;  %v6852_v40 = vshll.u32 %v6850_v41, 1 }
 0x817   : > { %v6023_v35 = vpop.f32.mrb[34].mxu1 }
 0x818   : > { %v6024_v48 = vadd.f32 %v6023_v35, %v5934_v21  ;;  %v9334_v23 = vpop.f32.mrb[35].mxu1 }
 0x835   : > { %v6135_v33 = vpop.f32.mrb[36].mxu1 }
 0x836   : > { %v6142_v55 = vadd.f32 %v6135_v33, %v6021_v59  ;;  %v9353_v54 = vpop.f32.mrb[37].mxu1 }
 0x837   : > { %v6138_v3 = vpop.f32.mrb[38].mxu1  ;;  %v10140_v54 = vld [vmem:[%s12648_s7 + $0x38] sm:$0xff]  }
 0x838   : > { %v6143_v58 = vadd.f32 %v6138_v3, %v6024_v48  ;;  %v9354_v15 = vpop.f32.mrb[39].mxu1 }
 0x855   : > { %v6248_v10 = vpop.f32.mrb[40].mxu1 }
 0x856   : > { %v6255_v1 = vadd.f32 %v6248_v10, %v6142_v55  ;;  %v9373_v0 = vpop.f32.mrb[41].mxu1  ;;  %v10138_v55 = vld [vmem:[%s12648_s7 + $0x28] sm:$0xff]  }
 0x857   : > { %v6251_v20 = vpop.f32.mrb[42].mxu1  ;;  %9493 = vmatpush3.bf16.msra.mxu1 %v10138_v55 }
 0x858   : > { %v6256_v8 = vadd.f32 %v6251_v20, %v6143_v58  ;;  %v9374_v57 = vpop.f32.mrb[43].mxu1  ;;  %9494 = vmatprep.subr.bf16.mxu1 %v12432_v4 }
 0x875   : > { %v6359_v22 = vpop.f32.mrb[44].mxu1 }
 0x876   : > { %v6366_v11 = vadd.f32 %v6359_v22, %v6255_v1  ;;  %v9393_v18 = vpop.f32.mrb[45].mxu1 }
 0x877   : > { %v6362_v49 = vpop.f32.mrb[46].mxu1 }
 0x878   : > { %v6367_v31 = vadd.f32 %v6362_v49, %v6256_v8  ;;  %v9394_v61 = vpop.f32.mrb[47].mxu1 }
 0x895   : > { %v6472_v26 = vpop.f32.mrb[48].mxu1 }
 0x896   : > { %v6479_v43 = vadd.f32 %v6472_v26, %v6366_v11  ;;  %v9413_v14 = vpop.f32.mrb[49].mxu1 }
 0x897   : > { %v6475_v63 = vpop.f32.mrb[50].mxu1 }
 0x898   : > { %v6480_v12 = vadd.f32 %v6475_v63, %v6367_v31  ;;  %v9414_v9 = vpop.f32.mrb[51].mxu1 }
 0x8b5   : > { %v6589_v29 = vpop.f32.mrb[52].mxu1 }
 0x8b6   : > { %v6596_v6 = vadd.f32 %v6589_v29, %v6479_v43  ;;  %v9433_v42 = vpop.f32.mrb[53].mxu1 }
 0x8b7   : > { %v6592_v45 = vpop.f32.mrb[54].mxu1 }
 0x8b8   : > { %v6597_v32 = vadd.f32 %v6592_v45, %v6480_v12  ;;  %v9434_v37 = vpop.f32.mrb[55].mxu1 }
 0x8d5   : > { %v6702_v52 = vpop.f32.mrb[56].mxu1 }
 0x8d6   : > { %v6709_v13 = vadd.f32 %v6702_v52, %v6596_v6  ;;  %v9453_v62 = vpop.f32.mrb[57].mxu1 }
 0x8d7   : > { %v6705_v27 = vpop.f32.mrb[58].mxu1 }
 0x8d8   : > { %v6824_v39 = vadd.f32 %v12532_v47, %v6709_v13  ;;  %v6710_v17 = vadd.f32 %v6705_v27, %v6597_v32  ;;  %v9454_v34 = vpop.f32.mrb[59].mxu1  ;;  %v6851_v47 = vshll.u32 %v6849_v46, 3 }
 0x8da   : > { %v6833_v38 = vadd.f32 %v8130_v25, %v6824_v39  ;;  %v6825_v51 = vadd.f32 %v12534_v5, %v6710_v17  ;;  %v6853_v59 = vadd.s32 %v6852_v40, %v6851_v47 }
 0x8dc   : > { %v6835_v2 = vmax.f32 %v6833_v38, 0.0  ;;  %v6834_v19 = vadd.f32 %v8130_v25, %v6825_v51  ;;  %vm6854_vm14 = vcmp.eq.s32.totalorder %v11480_v7, %v6853_v59  ;;  %v10139_v7 = vld [vmem:[%s12648_s7 + $0x30] sm:$0xff]  }
 0x8dd   : > { %v8131_v33 = vsel %vm6854_vm14, 1.0, %v12432_v4  ;;  %9495 = vmatpush3.bf16.msra.mxu1 %v10139_v7 }
 0x8de   : > { %6837 = vst [vmem:[#allocation2 + $0x20] sm:$0xff] %v6835_v2  ;;  %v6836_v21 = vmax.f32 %v6834_v19, 0.0  ;;  %9496 = vmatprep.subr.bf16.mxu1 %v12432_v4  ;;  %v6956_v4 = vld [vmem:[%s12649_s8] sm:$0x1] }
 0x8e0   : > { %6838 = vst [vmem:[#allocation2 + $0x28] sm:$0xff] %v6836_v21 }
 0x8e1   : > { %9497 = vmatpush3.bf16.msra.mxu1 %v10140_v54 }
 0x8e7   : > { %v6839_v28 = vld [vmem:[#allocation2 + $0x21] sm:$0xff]  ;;  %v6840_v53 = vld [vmem:[#allocation2 + $0x29] sm:$0xff] }
 0x8e8   : > { %v6842_v50 = vmax.f32 %v6836_v21, %v6840_v53  ;;  %v6841_v24 = vmax.f32 %v6835_v2, %v6839_v28 }
 0x8ea   : > { %6844 = vst [vmem:[#allocation2 + $0x28] sm:$0xff] %v6842_v50  ;;  %6843 = vst [vmem:[#allocation2 + $0x20] sm:$0xff] %v6841_v24 }
 0x8f1   : > { %v6846_v36 = vld [vmem:[#allocation2 + $0x2c] sm:$0xff]  ;;  %v6845_v5 = vld [vmem:[#allocation2 + $0x24] sm:$0xff] }
 0x8f2   : > { %v6848_v35 = vmax.f32 %v6842_v50, %v6846_v36  ;;  %v6847_v48 = vmax.f32 %v6841_v24, %v6845_v5 }
 0x8f4   : > { %v9551_v23 = vpack.c.bf16 %v6848_v35, %v6847_v48 }
 0x8f6   : > { %9552 = vmatpush3.bf16.msra.mxu0 %v9551_v23 }
 0x8f9   : > { %9480 = vmatmul.mubr.msk.f32.vlgmr.msra.gmra.mrb[36].mxu0 %vm6857_vm15, %v8131_v33 }
 0x9cc   : > { %v6927_v3 = vpop.f32.mrb[36].mxu0 }
 0x9cd   : > { %v6932_v58 = vsel %vm6931_vm11, %v6927_v3, 0.0  ;;  %v9481_v15 = vpop.f32.mrb[37].mxu0 }
 0x9ce   : > { %v6933_v10 = vrot.slane %v6932_v58, 4 }
 0x9d0   : > { %v6934_v1 = vadd.f32 %v6933_v10, %v6932_v58 }
 0x9d2   : > { %v6935_v0 = vrot.slane %v6934_v1, 2 }
 0x9d4   : > { %v6936_v20 = vadd.f32 %v6935_v0, %v6934_v1 }
 0x9d6   : > { %v6937_v8 = vrot.slane %v6936_v20, 1 }
 0x9d8   : > { %v6938_v57 = vadd.f32 %v6937_v8, %v6936_v20 }
 0x9da   : > { %v6939_v22 = vpack.c.bf16 %v6938_v57, %v6938_v57 }
 0x9dc   : > { %9499 = vmatmul.mubr.bf16.vlgmr.msra.gmra.mrb[60].mxu1 %v6939_v22 }
 0xaaf   : > { %v7039_v11 = vpop.f32.mrb[60].mxu1 }
 0xab0   : > { %v7040_v18 = vadd.f32 %v7039_v11, %v6956_v4  ;;  %v9500_v49 = vpop.f32.mrb[61].mxu1 }
 0xab1   : > { %v7042_v31 = vpop.f32.mrb[62].mxu1 }
 0xab2   : > { %7045 = vst [vmem:[%s324_s16] sm:$0x1] %v7040_v18  ;;  %v9501_v61 = vpop.f32.mrb[63].mxu1 }
 0xab3   : > { %10159 = shalt.err (!%p10156_p3)
}
 0xab4   : > { %s10160_s27 = scalar_lea.hbm %s12599_s23, 16  ;;  %s10164_s16 = scalar_lea.hbm %s12650_s9, 32 }
 0xab5   : > { %p10161_p4 = scmp.ne.s32.totalorder %s12599_s23, %s10160_s27  ;;  %p10165_p9 = scmp.lt.u32.totalorder %s12599_s23, %s12650_s9 }
 0xab6   : > { %p10166_p10 = scmp.lt.u32.totalorder %s10164_s16, %s10160_s27  ;;  %p10168_p12 = scmp.lt.u32.totalorder %s10160_s27, %s12599_s23 }
 0xab7   : > { %p10162_p7 = pnand %p10161_p4, %p10304_p5 }
 0xab8   : > { %p10167_p11 = por %p10166_p10, %p10165_p9 }
 0xab9   : > { %p10163_p8 = pneg %p10162_p7 }
 0xaba   : > { %p10169_p13 = por %p10168_p12, %p10167_p11 }
 0xabc   : > { %p10170_p0 = pnand %p10169_p13, %p10163_p8 }
 0xabe   : > { %10173 = shalt.err (!%p10170_p0)
}
 0xabf   : > { %9873 = dma.vmem_to_hbm [thread:$0]  (%p10304_p5), %s12601_s17, 16, %s12599_s23, %s7047_s24  }
 0xac0 PF: > { %p9879_p1 = scmp.ge.s32.totalorder %s10208_s12, 2  ;;  %s7071_s13 = sand.u32 1, %s10196_s30  }
 0xac1   : > { %s7072_s25 = scalar_lea.sflag [#allocation4], %s7071_s13 }
 0xac2   : > { %p9876_p2 = pnand %p9879_p1, %p10308_p6 }
 0xac4   : > { %10191 = dma.done.wait (!%p9876_p2), %s7072_s25, 16  }
 0xac5   : > { %10193 = vsyncadd (!%p9876_p2), %s7072_s25, 4294967280  ;;  %p19_p3 = scmp.ge.s32.totalorder %s10291_s15, 4   ;;  %s12918_s30 = smov %s10200_s10 }
 0xac6   : > { %s12919_s10 = smov %s10204_s11  ;;  %s12920_s11 = smov %s10302_s18 }
 0xac7   : > { %s12921_s12 = smov %s10291_s15  ;;  %21 = sbr.rel (!%p19_p3) target bundleno = 3 (0x3), region = 115 }
 0xace   :  { %7076 = vsyncpa [#allocation4], 1 }
 0xacf   :  { %7078 = vsyncpa [#allocation4 + $0x1], 1 }

</bundles_post_ra>
